<compile_context>
chip_gen: v7x
topology: tpu7x:2x2x1
jax: 0.10.0
libtpu: 0.0.40
codegen_flags: <defaults>
</compile_context>

<pallas_src>
import functools
import math

import jax
import jax.numpy as jnp
from jax.experimental import pallas as pl
from jax.experimental.pallas import tpu as pltpu


# ---------------------------------------------------------------------------
# Small helpers
# ---------------------------------------------------------------------------
def _split2(n):
    """Two grid blocks when possible (v7x megacore), else one."""
    return n // 2 if (n % 2 == 0 and n >= 2) else n


def _pick_rows(m):
    """Row tile: half of M when that stays a multiple of 8 (two parallel blocks)."""
    half = m // 2
    if m % 2 == 0 and half % 8 == 0 and half > 0:
        return half
    return m


def _vmem_limit(block_shapes_bytes):
    """VMEM cap derived from the actual block footprint: 2x (double buffering)
    per block plus generous headroom for in-kernel temporaries and the
    (8,128)/(16,128) tile padding of lane-sparse operands; clamped v7x-safe."""
    total = sum(math.prod(s) * b for s, b in block_shapes_bytes)
    need = 64 * total
    return int(min(max(need, 8 << 20), 48 << 20))


def _ln(t, gb_ref, eps=1e-5):
    """LayerNorm over the last axis; gamma/beta stacked as rows of a (2, C) ref."""
    g = gb_ref[0:1, :]
    b = gb_ref[1:2, :]
    mu = jnp.mean(t, axis=-1, keepdims=True)
    var = jnp.mean((t - mu) ** 2, axis=-1, keepdims=True)
    return (t - mu) * jax.lax.rsqrt(var + eps) * g + b


# ---------------------------------------------------------------------------
# Kernel 1: patch-embed + LN0 + LN1 + windowed cross-attention + proj + residual
# ---------------------------------------------------------------------------
def _attn_block_kernel(xp_ref, yp_ref, pe_w_ref, pe_b_ref, ln0_ref, ln1_ref,
                       qw_ref, qb_ref, kw_ref, kb_ref, vw_ref, vb_ref,
                       rpb_ref, pw_ref, pb_ref, o_ref, *, num_heads):
    TW, N, C = o_ref.shape            # TW windows of N tokens, C channels
    PD = xp_ref.shape[-1]             # Cin * p * p
    M = TW * N

    pe_w = pe_w_ref[...]              # (PD, C)  bf16
    pe_b = pe_b_ref[...]              # (1, C)   f32

    # patch embedding (shared weights for x and y) + patch_norm
    xp = xp_ref[...].reshape(M, PD)   # bf16, pre-cast in the wrapper
    yp = yp_ref[...].reshape(M, PD)
    x_tok = jnp.dot(xp, pe_w, preferred_element_type=jnp.float32) + pe_b
    y_tok = jnp.dot(yp, pe_w, preferred_element_type=jnp.float32) + pe_b
    x_tok = _ln(x_tok, ln0_ref)       # residual shortcut lives in f32
    y_tok = _ln(y_tok, ln0_ref)

    # attention layer norms
    xn = _ln(x_tok, ln1_ref).astype(jnp.bfloat16)
    yn = _ln(y_tok, ln1_ref).astype(jnp.bfloat16)

    acc = jnp.zeros((M, C), jnp.float32)
    for h in range(num_heads):        # static unroll; per-head pre-split weights,
        # so no 8-lane activation slicing and no concatenate.
        qh = jnp.dot(xn, qw_ref[h], preferred_element_type=jnp.float32) + qb_ref[h]
        kh = jnp.dot(yn, kw_ref[h], preferred_element_type=jnp.float32) + kb_ref[h]
        vh = jnp.dot(yn, vw_ref[h], preferred_element_type=jnp.float32) + vb_ref[h]
        q3 = qh.reshape(TW, N, -1).astype(jnp.bfloat16)
        k3 = kh.reshape(TW, N, -1).astype(jnp.bfloat16)
        v3 = vh.reshape(TW, N, -1).astype(jnp.bfloat16)

        s = jnp.einsum("bqd,bkd->bqk", q3, k3,
                       preferred_element_type=jnp.float32)          # (TW, N, N)
        s = s + rpb_ref[h]            # relative-position bias (N, N), broadcast
        m = jnp.max(s, axis=-1, keepdims=True)
        p = jnp.exp(s - m)
        p = p * pl.reciprocal(jnp.sum(p, axis=-1, keepdims=True), approx=True)
        oh = jnp.einsum("bqk,bkd->bqd", p.astype(jnp.bfloat16), v3,
                        preferred_element_type=jnp.float32)          # (TW, N, hd)

        # head merge + out-proj fused: concat_h(o_h) @ W == sum_h o_h @ W[h]
        acc = acc + jnp.dot(oh.reshape(M, -1).astype(jnp.bfloat16), pw_ref[h],
                            preferred_element_type=jnp.float32)

    out = x_tok + acc + pb_ref[...]   # residual add, f32
    o_ref[...] = out.reshape(TW, N, C)


def attn_block_pallas(xp, yp, params, *, num_heads):
    nWB, N, PD = xp.shape
    C = params["pb"].shape[-1]
    nH = num_heads
    hd = C // nH
    TW = _split2(nWB)

    vmem = _vmem_limit([
        ((TW, N, PD), 2), ((TW, N, PD), 2), ((PD, C), 2), ((1, C), 4),
        ((2, C), 4), ((2, C), 4),
        ((nH, C, hd), 2), ((nH, 1, hd), 4), ((nH, C, hd), 2), ((nH, 1, hd), 4),
        ((nH, C, hd), 2), ((nH, 1, hd), 4), ((nH, N, N), 4),
        ((nH, hd, C), 2), ((1, C), 4), ((TW, N, C), 4),
    ])

    return pl.pallas_call(
        functools.partial(_attn_block_kernel, num_heads=nH),
        out_shape=jax.ShapeDtypeStruct((nWB, N, C), jnp.float32),
        grid=(nWB // TW,),
        in_specs=[
            pl.BlockSpec((TW, N, PD), lambda w: (w, 0, 0)),
            pl.BlockSpec((TW, N, PD), lambda w: (w, 0, 0)),
            pl.BlockSpec((PD, C), lambda w: (0, 0)),
            pl.BlockSpec((1, C), lambda w: (0, 0)),
            pl.BlockSpec((2, C), lambda w: (0, 0)),
            pl.BlockSpec((2, C), lambda w: (0, 0)),
            pl.BlockSpec((nH, C, hd), lambda w: (0, 0, 0)),
            pl.BlockSpec((nH, 1, hd), lambda w: (0, 0, 0)),
            pl.BlockSpec((nH, C, hd), lambda w: (0, 0, 0)),
            pl.BlockSpec((nH, 1, hd), lambda w: (0, 0, 0)),
            pl.BlockSpec((nH, C, hd), lambda w: (0, 0, 0)),
            pl.BlockSpec((nH, 1, hd), lambda w: (0, 0, 0)),
            pl.BlockSpec((nH, N, N), lambda w: (0, 0, 0)),
            pl.BlockSpec((nH, hd, C), lambda w: (0, 0, 0)),
            pl.BlockSpec((1, C), lambda w: (0, 0)),
        ],
        out_specs=pl.BlockSpec((TW, N, C), lambda w: (w, 0, 0)),
        compiler_params=pltpu.CompilerParams(
            dimension_semantics=("parallel",),
            vmem_limit_bytes=vmem,
        ),
    )(xp, yp, params["pe_w"], params["pe_b"], params["ln0"], params["ln1"],
      params["qw"], params["qb"], params["kw"], params["kb"],
      params["vw"], params["vb"], params["rpb"], params["pw"], params["pb"])


# ---------------------------------------------------------------------------
# Kernel 2: LN2 + fc1 + GELU + fc2 + residual + output LN
# ---------------------------------------------------------------------------
def _mlp_block_kernel(x_ref, ln2_ref, fc1_w_ref, fc1_b_ref, fc2_w_ref, fc2_b_ref,
                      lnout_ref, o_ref):
    x = x_ref[...]                                              # (TM, C) f32
    xn = _ln(x, ln2_ref).astype(jnp.bfloat16)
    h = jnp.dot(xn, fc1_w_ref[...], preferred_element_type=jnp.float32) + fc1_b_ref[...]
    # TODO(synk): PyTorch nn.GELU() defaults to the exact erf form; the tanh
    # approximation is used here (small numeric mismatch).
    h = jax.nn.gelu(h, approximate=True)
    h = jnp.dot(h.astype(jnp.bfloat16), fc2_w_ref[...],
                preferred_element_type=jnp.float32) + fc2_b_ref[...]
    o_ref[...] = _ln(x + h, lnout_ref)


def mlp_block_pallas(tok, params):
    M, C = tok.shape
    hidden = params["fc1_b"].shape[-1]
    TM = _pick_rows(M)

    vmem = _vmem_limit([
        ((TM, C), 4), ((2, C), 4), ((C, hidden), 2), ((1, hidden), 4),
        ((hidden, C), 2), ((1, C), 4), ((2, C), 4), ((TM, C), 4),
    ])

    return pl.pallas_call(
        _mlp_block_kernel,
        out_shape=jax.ShapeDtypeStruct((M, C), jnp.float32),
        grid=(M // TM,),
        in_specs=[
            pl.BlockSpec((TM, C), lambda i: (i, 0)),
            pl.BlockSpec((2, C), lambda i: (0, 0)),
            pl.BlockSpec((C, hidden), lambda i: (0, 0)),
            pl.BlockSpec((1, hidden), lambda i: (0, 0)),
            pl.BlockSpec((hidden, C), lambda i: (0, 0)),
            pl.BlockSpec((1, C), lambda i: (0, 0)),
            pl.BlockSpec((2, C), lambda i: (0, 0)),
        ],
        out_specs=pl.BlockSpec((TM, C), lambda i: (i, 0)),
        compiler_params=pltpu.CompilerParams(
            dimension_semantics=("parallel",),
            vmem_limit_bytes=vmem,
        ),
    )(tok, params["ln2"], params["fc1_w"], params["fc1_b"],
      params["fc2_w"], params["fc2_b"], params["ln_out"])


# ---------------------------------------------------------------------------
# Plain-JAX glue (input patchification / output layout only)
# ---------------------------------------------------------------------------
def to_windowed_patches(t, patch_size, window_size):
    """NCHW -> (B*num_windows, N, Cin*p*p) patch tokens in windowed order."""
    B, Cin, H, W = t.shape
    p, ws = patch_size, window_size
    Hp, Wp = H // p, W // p
    nwh, nww = Hp // ws, Wp // ws
    t = t.reshape(B, Cin, nwh, ws, p, nww, ws, p)
    t = t.transpose(0, 2, 5, 3, 6, 1, 4, 7)     # (B, wi, wj, r, q, Cin, pr, pc)
    return t.reshape(B * nwh * nww, ws * ws, Cin * p * p), nwh, nww


def relative_position_bias(table, ws, num_heads):
    coords = jnp.stack(jnp.meshgrid(jnp.arange(ws), jnp.arange(ws), indexing="ij"))
    cf = coords.reshape(2, -1)                   # (2, N)
    rel = cf[:, :, None] - cf[:, None, :]        # (2, N, N)
    rel = rel.transpose(1, 2, 0) + (ws - 1)
    idx = rel[:, :, 0] * (2 * ws - 1) + rel[:, :, 1]
    N = ws * ws
    bias = table[idx.reshape(-1)].reshape(N, N, num_heads)
    return bias.transpose(2, 0, 1)               # (nH, N, N)


# ---------------------------------------------------------------------------
# Parameters + forward
# ---------------------------------------------------------------------------
def init_params(key, in_chans, patch_size, embed_dim, num_heads, mlp_ratio, window_size):
    ks = jax.random.split(key, 7)
    C, nH = embed_dim, num_heads
    hd = C // nH
    hidden = C * mlp_ratio
    PD = in_chans * patch_size * patch_size
    scale = hd ** -0.5

    def dense(k, shape):
        return (0.02 * jax.random.normal(k, shape)).astype(jnp.float32)

    def ln_gb():
        return jnp.stack([jnp.ones((C,), jnp.float32), jnp.zeros((C,), jnp.float32)])

    # dense PyTorch-equivalent weights; pre-scaled / pre-split / pre-cast once.
    # NOTE: the qk scale is folded into the q projection; re-apply the fold if
    # pretrained PyTorch weights are ever converted.
    q_w = scale * dense(ks[1], (C, C))
    kv_w = dense(ks[2], (C, 2 * C))
    proj_w = dense(ks[3], (C, C))
    rpb_table = dense(ks[4], ((2 * window_size - 1) ** 2, nH))

    def per_head_in(w):  # (C, C) -> (nH, C, hd), bf16 MXU panel per head
        return w.reshape(C, nH, hd).transpose(1, 0, 2).astype(jnp.bfloat16)

    return {
        "pe_w": dense(ks[0], (PD, C)).astype(jnp.bfloat16),
        "pe_b": jnp.zeros((1, C), jnp.float32),
        "ln0": ln_gb(), "ln1": ln_gb(),
        "qw": per_head_in(q_w), "qb": jnp.zeros((nH, 1, hd), jnp.float32),
        "kw": per_head_in(kv_w[:, :C]), "kb": jnp.zeros((nH, 1, hd), jnp.float32),
        "vw": per_head_in(kv_w[:, C:]), "vb": jnp.zeros((nH, 1, hd), jnp.float32),
        # rel-pos-bias gather hoisted out of the forward (baked once here).
        "rpb": relative_position_bias(rpb_table, window_size, nH).astype(jnp.float32),
        "pw": proj_w.reshape(nH, hd, C).astype(jnp.bfloat16),
        "pb": jnp.zeros((1, C), jnp.float32),
        "ln2": ln_gb(),
        "fc1_w": dense(ks[5], (C, hidden)).astype(jnp.bfloat16),
        "fc1_b": jnp.zeros((1, hidden), jnp.float32),
        "fc2_w": dense(ks[6], (hidden, C)).astype(jnp.bfloat16),
        "fc2_b": jnp.zeros((1, C), jnp.float32),
        "ln_out": ln_gb(),
    }


def lwca_forward(params, x, y, *, patch_size, embed_dim, num_heads, window_size):
    B = x.shape[0]
    C = embed_dim
    ws = window_size

    # NCHW -> windowed patch tokens (the only input-side transpose), bf16 MXU feed
    xp, nwh, nww = to_windowed_patches(x, patch_size, ws)
    yp, _, _ = to_windowed_patches(y, patch_size, ws)
    xp = xp.astype(jnp.bfloat16)
    yp = yp.astype(jnp.bfloat16)

    # kernel 1: patch-embed + patch_norm + LN1 + windowed cross-attention
    # (+rel-pos bias) + out-proj + residual, fully fused.
    tok = attn_block_pallas(xp, yp, params, num_heads=num_heads)   # (nWB, N, C) f32

    # kernel 2: LN2 + fc1 + GELU + fc2 + residual + output LN, fully fused.
    tok = mlp_block_pallas(tok.reshape(-1, C), params)             # (B*L, C) f32

    # single inverse permutation of the windowed order back to NCHW
    Hp, Wp = nwh * ws, nww * ws
    out = tok.reshape(B, nwh, nww, ws, ws, C)
    out = out.transpose(0, 5, 1, 3, 2, 4).reshape(B, C, Hp, Wp)
    return out


if __name__ == "__main__":
    # config (small, consistent with a Swin cross-attention stage)
    B, in_chans, H, W = 2, 4, 16, 16
    patch_size, embed_dim, num_heads, window_size, mlp_ratio = 2, 32, 4, 4, 4

    key = jax.random.PRNGKey(0)
    kx, ky, kp = jax.random.split(key, 3)
    x = jax.random.normal(kx, (B, in_chans, H, W), dtype=jnp.float32)
    y = jax.random.normal(ky, (B, in_chans, H, W), dtype=jnp.float32)

    params = init_params(kp, in_chans, patch_size, embed_dim, num_heads,
                         mlp_ratio, window_size)

    fwd = jax.jit(functools.partial(
        lwca_forward, patch_size=patch_size, embed_dim=embed_dim,
        num_heads=num_heads, window_size=window_size))

    out = fwd(params, x, y)
    jax.block_until_ready(out)
    assert out.shape == (B, embed_dim, H // patch_size, W // patch_size), out.shape
    assert jnp.all(jnp.isfinite(out))
    print("KERNEL_OK")
</pallas_src>

<mosaic_0001>
module attributes {stable_mosaic.version = 11 : i64} {
  func.func @_attn_block_kernel(%arg0: i32, %arg1: memref<4x16x16xbf16, #tpu.memory_space<vmem>>, %arg2: memref<4x16x16xbf16, #tpu.memory_space<vmem>>, %arg3: memref<16x32xbf16, #tpu.memory_space<vmem>>, %arg4: memref<1x32xf32, #tpu.memory_space<vmem>>, %arg5: memref<2x32xf32, #tpu.memory_space<vmem>>, %arg6: memref<2x32xf32, #tpu.memory_space<vmem>>, %arg7: memref<4x32x8xbf16, #tpu.memory_space<vmem>>, %arg8: memref<4x1x8xf32, #tpu.memory_space<vmem>>, %arg9: memref<4x32x8xbf16, #tpu.memory_space<vmem>>, %arg10: memref<4x1x8xf32, #tpu.memory_space<vmem>>, %arg11: memref<4x32x8xbf16, #tpu.memory_space<vmem>>, %arg12: memref<4x1x8xf32, #tpu.memory_space<vmem>>, %arg13: memref<4x16x16xf32, #tpu.memory_space<vmem>>, %arg14: memref<4x8x32xbf16, #tpu.memory_space<vmem>>, %arg15: memref<1x32xf32, #tpu.memory_space<vmem>>, %arg16: memref<4x16x32xf32, #tpu.memory_space<vmem>>) attributes {dimension_semantics = [#tpu.dimension_semantics<parallel>], iteration_bounds = array<i64: 2>, scalar_prefetch = 0 : i64, scratch_operands = 0 : i64, tpu.core_type = #tpu.core_type<tc>, window_params = [{transform_indices = @transform_0, window_bounds = array<i64: 4, 16, 16>}, {transform_indices = @transform_1, window_bounds = array<i64: 4, 16, 16>}, {pipeline_mode = #tpu.pipeline_mode<synchronous>, transform_indices = @transform_2, window_bounds = array<i64: 16, 32>}, {pipeline_mode = #tpu.pipeline_mode<synchronous>, transform_indices = @transform_3, window_bounds = array<i64: 1, 32>}, {pipeline_mode = #tpu.pipeline_mode<synchronous>, transform_indices = @transform_4, window_bounds = array<i64: 2, 32>}, {pipeline_mode = #tpu.pipeline_mode<synchronous>, transform_indices = @transform_5, window_bounds = array<i64: 2, 32>}, {pipeline_mode = #tpu.pipeline_mode<synchronous>, transform_indices = @transform_6, window_bounds = array<i64: 4, 32, 8>}, {pipeline_mode = #tpu.pipeline_mode<synchronous>, transform_indices = @transform_7, window_bounds = array<i64: 4, 1, 8>}, {pipeline_mode = #tpu.pipeline_mode<synchronous>, transform_indices = @transform_8, window_bounds = array<i64: 4, 32, 8>}, {pipeline_mode = #tpu.pipeline_mode<synchronous>, transform_indices = @transform_9, window_bounds = array<i64: 4, 1, 8>}, {pipeline_mode = #tpu.pipeline_mode<synchronous>, transform_indices = @transform_10, window_bounds = array<i64: 4, 32, 8>}, {pipeline_mode = #tpu.pipeline_mode<synchronous>, transform_indices = @transform_11, window_bounds = array<i64: 4, 1, 8>}, {pipeline_mode = #tpu.pipeline_mode<synchronous>, transform_indices = @transform_12, window_bounds = array<i64: 4, 16, 16>}, {pipeline_mode = #tpu.pipeline_mode<synchronous>, transform_indices = @transform_13, window_bounds = array<i64: 4, 8, 32>}, {pipeline_mode = #tpu.pipeline_mode<synchronous>, transform_indices = @transform_14, window_bounds = array<i64: 1, 32>}, {transform_indices = @transform_15, window_bounds = array<i64: 4, 16, 32>}]} {
    %c0 = arith.constant 0 : index
    %c0_0 = arith.constant 0 : index
    %0 = vector.load %arg3[%c0, %c0_0] : memref<16x32xbf16, #tpu.memory_space<vmem>>, vector<16x32xbf16>
    %c0_1 = arith.constant 0 : index
    %c0_2 = arith.constant 0 : index
    %1 = vector.load %arg4[%c0_1, %c0_2] : memref<1x32xf32, #tpu.memory_space<vmem>>, vector<1x32xf32>
    %c0_3 = arith.constant 0 : index
    %c0_4 = arith.constant 0 : index
    %c0_5 = arith.constant 0 : index
    %2 = vector.load %arg1[%c0_3, %c0_4, %c0_5] : memref<4x16x16xbf16, #tpu.memory_space<vmem>>, vector<4x16x16xbf16>
    %3 = vector.shape_cast %2 : vector<4x16x16xbf16> to vector<64x16xbf16>
    %c0_6 = arith.constant 0 : index
    %c0_7 = arith.constant 0 : index
    %c0_8 = arith.constant 0 : index
    %4 = vector.load %arg2[%c0_6, %c0_7, %c0_8] : memref<4x16x16xbf16, #tpu.memory_space<vmem>>, vector<4x16x16xbf16>
    %5 = vector.shape_cast %4 : vector<4x16x16xbf16> to vector<64x16xbf16>
    %cst = arith.constant dense<0.000000e+00> : vector<64x32xf32>
    %6 = tpu.matmul %3, %0, %cst {dimension_numbers = #tpu.dot_dimension_numbers<[1], [0], [0], [1], [0, 0, 1, 1], [], []>} : vector<64x16xbf16>, vector<16x32xbf16>, vector<64x32xf32> -> vector<64x32xf32>
    %7 = vector.broadcast %1 : vector<1x32xf32> to vector<64x32xf32>
    %8 = arith.addf %6, %7 : vector<64x32xf32>
    %cst_9 = arith.constant dense<0.000000e+00> : vector<64x32xf32>
    %9 = tpu.matmul %5, %0, %cst_9 {dimension_numbers = #tpu.dot_dimension_numbers<[1], [0], [0], [1], [0, 0, 1, 1], [], []>} : vector<64x16xbf16>, vector<16x32xbf16>, vector<64x32xf32> -> vector<64x32xf32>
    %10 = vector.broadcast %1 : vector<1x32xf32> to vector<64x32xf32>
    %11 = arith.addf %9, %10 : vector<64x32xf32>
    %c0_10 = arith.constant 0 : index
    %c0_11 = arith.constant 0 : index
    %12 = vector.load %arg5[%c0_10, %c0_11] : memref<2x32xf32, #tpu.memory_space<vmem>>, vector<1x32xf32>
    %c1 = arith.constant 1 : index
    %c0_12 = arith.constant 0 : index
    %13 = vector.load %arg5[%c1, %c0_12] : memref<2x32xf32, #tpu.memory_space<vmem>>, vector<1x32xf32>
    %cst_13 = arith.constant dense<0.000000e+00> : vector<64xf32>
    %14 = vector.multi_reduction <add>, %8, %cst_13 [1] : vector<64x32xf32> to vector<64xf32>
    %15 = vector.shape_cast %14 : vector<64xf32> to vector<64x1xf32>
    %cst_14 = arith.constant 3.200000e+01 : f32
    %16 = vector.broadcast %cst_14 : f32 to vector<64x1xf32>
    %17 = arith.divf %15, %16 : vector<64x1xf32>
    %18 = vector.broadcast %17 : vector<64x1xf32> to vector<64x32xf32>
    %19 = arith.subf %8, %18 : vector<64x32xf32>
    %20 = arith.mulf %19, %19 : vector<64x32xf32>
    %cst_15 = arith.constant dense<0.000000e+00> : vector<64xf32>
    %21 = vector.multi_reduction <add>, %20, %cst_15 [1] : vector<64x32xf32> to vector<64xf32>
    %22 = vector.shape_cast %21 : vector<64xf32> to vector<64x1xf32>
    %cst_16 = arith.constant 3.200000e+01 : f32
    %23 = vector.broadcast %cst_16 : f32 to vector<64x1xf32>
    %24 = arith.divf %22, %23 : vector<64x1xf32>
    %25 = vector.broadcast %17 : vector<64x1xf32> to vector<64x32xf32>
    %26 = arith.subf %8, %25 : vector<64x32xf32>
    %cst_17 = arith.constant 9.99999974E-6 : f32
    %27 = vector.broadcast %cst_17 : f32 to vector<64x1xf32>
    %28 = arith.addf %24, %27 : vector<64x1xf32>
    %29 = math.rsqrt %28 : vector<64x1xf32>
    %30 = vector.broadcast %29 : vector<64x1xf32> to vector<64x32xf32>
    %31 = arith.mulf %26, %30 : vector<64x32xf32>
    %32 = vector.broadcast %12 : vector<1x32xf32> to vector<64x32xf32>
    %33 = arith.mulf %31, %32 : vector<64x32xf32>
    %34 = vector.broadcast %13 : vector<1x32xf32> to vector<64x32xf32>
    %35 = arith.addf %33, %34 : vector<64x32xf32>
    %c0_18 = arith.constant 0 : index
    %c0_19 = arith.constant 0 : index
    %36 = vector.load %arg5[%c0_18, %c0_19] : memref<2x32xf32, #tpu.memory_space<vmem>>, vector<1x32xf32>
    %c1_20 = arith.constant 1 : index
    %c0_21 = arith.constant 0 : index
    %37 = vector.load %arg5[%c1_20, %c0_21] : memref<2x32xf32, #tpu.memory_space<vmem>>, vector<1x32xf32>
    %cst_22 = arith.constant dense<0.000000e+00> : vector<64xf32>
    %38 = vector.multi_reduction <add>, %11, %cst_22 [1] : vector<64x32xf32> to vector<64xf32>
    %39 = vector.shape_cast %38 : vector<64xf32> to vector<64x1xf32>
    %cst_23 = arith.constant 3.200000e+01 : f32
    %40 = vector.broadcast %cst_23 : f32 to vector<64x1xf32>
    %41 = arith.divf %39, %40 : vector<64x1xf32>
    %42 = vector.broadcast %41 : vector<64x1xf32> to vector<64x32xf32>
    %43 = arith.subf %11, %42 : vector<64x32xf32>
    %44 = arith.mulf %43, %43 : vector<64x32xf32>
    %cst_24 = arith.constant dense<0.000000e+00> : vector<64xf32>
    %45 = vector.multi_reduction <add>, %44, %cst_24 [1] : vector<64x32xf32> to vector<64xf32>
    %46 = vector.shape_cast %45 : vector<64xf32> to vector<64x1xf32>
    %cst_25 = arith.constant 3.200000e+01 : f32
    %47 = vector.broadcast %cst_25 : f32 to vector<64x1xf32>
    %48 = arith.divf %46, %47 : vector<64x1xf32>
    %49 = vector.broadcast %41 : vector<64x1xf32> to vector<64x32xf32>
    %50 = arith.subf %11, %49 : vector<64x32xf32>
    %cst_26 = arith.constant 9.99999974E-6 : f32
    %51 = vector.broadcast %cst_26 : f32 to vector<64x1xf32>
    %52 = arith.addf %48, %51 : vector<64x1xf32>
    %53 = math.rsqrt %52 : vector<64x1xf32>
    %54 = vector.broadcast %53 : vector<64x1xf32> to vector<64x32xf32>
    %55 = arith.mulf %50, %54 : vector<64x32xf32>
    %56 = vector.broadcast %36 : vector<1x32xf32> to vector<64x32xf32>
    %57 = arith.mulf %55, %56 : vector<64x32xf32>
    %58 = vector.broadcast %37 : vector<1x32xf32> to vector<64x32xf32>
    %59 = arith.addf %57, %58 : vector<64x32xf32>
    %c0_27 = arith.constant 0 : index
    %c0_28 = arith.constant 0 : index
    %60 = vector.load %arg6[%c0_27, %c0_28] : memref<2x32xf32, #tpu.memory_space<vmem>>, vector<1x32xf32>
    %c1_29 = arith.constant 1 : index
    %c0_30 = arith.constant 0 : index
    %61 = vector.load %arg6[%c1_29, %c0_30] : memref<2x32xf32, #tpu.memory_space<vmem>>, vector<1x32xf32>
    %cst_31 = arith.constant dense<0.000000e+00> : vector<64xf32>
    %62 = vector.multi_reduction <add>, %35, %cst_31 [1] : vector<64x32xf32> to vector<64xf32>
    %63 = vector.shape_cast %62 : vector<64xf32> to vector<64x1xf32>
    %cst_32 = arith.constant 3.200000e+01 : f32
    %64 = vector.broadcast %cst_32 : f32 to vector<64x1xf32>
    %65 = arith.divf %63, %64 : vector<64x1xf32>
    %66 = vector.broadcast %65 : vector<64x1xf32> to vector<64x32xf32>
    %67 = arith.subf %35, %66 : vector<64x32xf32>
    %68 = arith.mulf %67, %67 : vector<64x32xf32>
    %cst_33 = arith.constant dense<0.000000e+00> : vector<64xf32>
    %69 = vector.multi_reduction <add>, %68, %cst_33 [1] : vector<64x32xf32> to vector<64xf32>
    %70 = vector.shape_cast %69 : vector<64xf32> to vector<64x1xf32>
    %cst_34 = arith.constant 3.200000e+01 : f32
    %71 = vector.broadcast %cst_34 : f32 to vector<64x1xf32>
    %72 = arith.divf %70, %71 : vector<64x1xf32>
    %73 = vector.broadcast %65 : vector<64x1xf32> to vector<64x32xf32>
    %74 = arith.subf %35, %73 : vector<64x32xf32>
    %cst_35 = arith.constant 9.99999974E-6 : f32
    %75 = vector.broadcast %cst_35 : f32 to vector<64x1xf32>
    %76 = arith.addf %72, %75 : vector<64x1xf32>
    %77 = math.rsqrt %76 : vector<64x1xf32>
    %78 = vector.broadcast %77 : vector<64x1xf32> to vector<64x32xf32>
    %79 = arith.mulf %74, %78 : vector<64x32xf32>
    %80 = vector.broadcast %60 : vector<1x32xf32> to vector<64x32xf32>
    %81 = arith.mulf %79, %80 : vector<64x32xf32>
    %82 = vector.broadcast %61 : vector<1x32xf32> to vector<64x32xf32>
    %83 = arith.addf %81, %82 : vector<64x32xf32>
    %84 = arith.truncf %83 : vector<64x32xf32> to vector<64x32xbf16>
    %c0_36 = arith.constant 0 : index
    %c0_37 = arith.constant 0 : index
    %85 = vector.load %arg6[%c0_36, %c0_37] : memref<2x32xf32, #tpu.memory_space<vmem>>, vector<1x32xf32>
    %c1_38 = arith.constant 1 : index
    %c0_39 = arith.constant 0 : index
    %86 = vector.load %arg6[%c1_38, %c0_39] : memref<2x32xf32, #tpu.memory_space<vmem>>, vector<1x32xf32>
    %cst_40 = arith.constant dense<0.000000e+00> : vector<64xf32>
    %87 = vector.multi_reduction <add>, %59, %cst_40 [1] : vector<64x32xf32> to vector<64xf32>
    %88 = vector.shape_cast %87 : vector<64xf32> to vector<64x1xf32>
    %cst_41 = arith.constant 3.200000e+01 : f32
    %89 = vector.broadcast %cst_41 : f32 to vector<64x1xf32>
    %90 = arith.divf %88, %89 : vector<64x1xf32>
    %91 = vector.broadcast %90 : vector<64x1xf32> to vector<64x32xf32>
    %92 = arith.subf %59, %91 : vector<64x32xf32>
    %93 = arith.mulf %92, %92 : vector<64x32xf32>
    %cst_42 = arith.constant dense<0.000000e+00> : vector<64xf32>
    %94 = vector.multi_reduction <add>, %93, %cst_42 [1] : vector<64x32xf32> to vector<64xf32>
    %95 = vector.shape_cast %94 : vector<64xf32> to vector<64x1xf32>
    %cst_43 = arith.constant 3.200000e+01 : f32
    %96 = vector.broadcast %cst_43 : f32 to vector<64x1xf32>
    %97 = arith.divf %95, %96 : vector<64x1xf32>
    %98 = vector.broadcast %90 : vector<64x1xf32> to vector<64x32xf32>
    %99 = arith.subf %59, %98 : vector<64x32xf32>
    %cst_44 = arith.constant 9.99999974E-6 : f32
    %100 = vector.broadcast %cst_44 : f32 to vector<64x1xf32>
    %101 = arith.addf %97, %100 : vector<64x1xf32>
    %102 = math.rsqrt %101 : vector<64x1xf32>
    %103 = vector.broadcast %102 : vector<64x1xf32> to vector<64x32xf32>
    %104 = arith.mulf %99, %103 : vector<64x32xf32>
    %105 = vector.broadcast %85 : vector<1x32xf32> to vector<64x32xf32>
    %106 = arith.mulf %104, %105 : vector<64x32xf32>
    %107 = vector.broadcast %86 : vector<1x32xf32> to vector<64x32xf32>
    %108 = arith.addf %106, %107 : vector<64x32xf32>
    %109 = arith.truncf %108 : vector<64x32xf32> to vector<64x32xbf16>
    %cst_45 = arith.constant 0.000000e+00 : f32
    %110 = vector.broadcast %cst_45 : f32 to vector<64x32xf32>
    %c0_46 = arith.constant 0 : index
    %c0_47 = arith.constant 0 : index
    %c0_48 = arith.constant 0 : index
    %111 = vector.load %arg7[%c0_46, %c0_47, %c0_48] : memref<4x32x8xbf16, #tpu.memory_space<vmem>>, vector<1x32x8xbf16>
    %112 = vector.shape_cast %111 : vector<1x32x8xbf16> to vector<32x8xbf16>
    %cst_49 = arith.constant dense<0.000000e+00> : vector<64x8xf32>
    %113 = tpu.matmul %84, %112, %cst_49 {dimension_numbers = #tpu.dot_dimension_numbers<[1], [0], [0], [1], [0, 0, 1, 1], [], []>} : vector<64x32xbf16>, vector<32x8xbf16>, vector<64x8xf32> -> vector<64x8xf32>
    %c0_50 = arith.constant 0 : index
    %c0_51 = arith.constant 0 : index
    %c0_52 = arith.constant 0 : index
    %114 = vector.load %arg8[%c0_50, %c0_51, %c0_52] : memref<4x1x8xf32, #tpu.memory_space<vmem>>, vector<1x1x8xf32>
    %115 = vector.shape_cast %114 : vector<1x1x8xf32> to vector<1x8xf32>
    %116 = vector.broadcast %115 : vector<1x8xf32> to vector<64x8xf32>
    %117 = arith.addf %113, %116 : vector<64x8xf32>
    %c0_53 = arith.constant 0 : index
    %c0_54 = arith.constant 0 : index
    %c0_55 = arith.constant 0 : index
    %118 = vector.load %arg9[%c0_53, %c0_54, %c0_55] : memref<4x32x8xbf16, #tpu.memory_space<vmem>>, vector<1x32x8xbf16>
    %119 = vector.shape_cast %118 : vector<1x32x8xbf16> to vector<32x8xbf16>
    %cst_56 = arith.constant dense<0.000000e+00> : vector<64x8xf32>
    %120 = tpu.matmul %109, %119, %cst_56 {dimension_numbers = #tpu.dot_dimension_numbers<[1], [0], [0], [1], [0, 0, 1, 1], [], []>} : vector<64x32xbf16>, vector<32x8xbf16>, vector<64x8xf32> -> vector<64x8xf32>
    %c0_57 = arith.constant 0 : index
    %c0_58 = arith.constant 0 : index
    %c0_59 = arith.constant 0 : index
    %121 = vector.load %arg10[%c0_57, %c0_58, %c0_59] : memref<4x1x8xf32, #tpu.memory_space<vmem>>, vector<1x1x8xf32>
    %122 = vector.shape_cast %121 : vector<1x1x8xf32> to vector<1x8xf32>
    %123 = vector.broadcast %122 : vector<1x8xf32> to vector<64x8xf32>
    %124 = arith.addf %120, %123 : vector<64x8xf32>
    %c0_60 = arith.constant 0 : index
    %c0_61 = arith.constant 0 : index
    %c0_62 = arith.constant 0 : index
    %125 = vector.load %arg11[%c0_60, %c0_61, %c0_62] : memref<4x32x8xbf16, #tpu.memory_space<vmem>>, vector<1x32x8xbf16>
    %126 = vector.shape_cast %125 : vector<1x32x8xbf16> to vector<32x8xbf16>
    %cst_63 = arith.constant dense<0.000000e+00> : vector<64x8xf32>
    %127 = tpu.matmul %109, %126, %cst_63 {dimension_numbers = #tpu.dot_dimension_numbers<[1], [0], [0], [1], [0, 0, 1, 1], [], []>} : vector<64x32xbf16>, vector<32x8xbf16>, vector<64x8xf32> -> vector<64x8xf32>
    %c0_64 = arith.constant 0 : index
    %c0_65 = arith.constant 0 : index
    %c0_66 = arith.constant 0 : index
    %128 = vector.load %arg12[%c0_64, %c0_65, %c0_66] : memref<4x1x8xf32, #tpu.memory_space<vmem>>, vector<1x1x8xf32>
    %129 = vector.shape_cast %128 : vector<1x1x8xf32> to vector<1x8xf32>
    %130 = vector.broadcast %129 : vector<1x8xf32> to vector<64x8xf32>
    %131 = arith.addf %127, %130 : vector<64x8xf32>
    %132 = vector.shape_cast %117 : vector<64x8xf32> to vector<4x16x8xf32>
    %133 = arith.truncf %132 : vector<4x16x8xf32> to vector<4x16x8xbf16>
    %134 = vector.shape_cast %124 : vector<64x8xf32> to vector<4x16x8xf32>
    %135 = arith.truncf %134 : vector<4x16x8xf32> to vector<4x16x8xbf16>
    %136 = vector.shape_cast %131 : vector<64x8xf32> to vector<4x16x8xf32>
    %137 = arith.truncf %136 : vector<4x16x8xf32> to vector<4x16x8xbf16>
    "tpu.trace_start"() <{level = 10 : i32, message = "bqd,bkd->bqk"}> : () -> ()
    %cst_67 = arith.constant dense<0.000000e+00> : vector<4x16x16xf32>
    %138 = tpu.matmul %133, %135, %cst_67 {dimension_numbers = #tpu.dot_dimension_numbers<[2], [2], [1], [1], [0, 0, 0, 1, 1, 1], [0], [0]>} : vector<4x16x8xbf16>, vector<4x16x8xbf16>, vector<4x16x16xf32> -> vector<4x16x16xf32>
    "tpu.trace_stop"() : () -> ()
    %c0_68 = arith.constant 0 : index
    %c0_69 = arith.constant 0 : index
    %c0_70 = arith.constant 0 : index
    %139 = vector.load %arg13[%c0_68, %c0_69, %c0_70] : memref<4x16x16xf32, #tpu.memory_space<vmem>>, vector<1x16x16xf32>
    %140 = vector.shape_cast %139 : vector<1x16x16xf32> to vector<16x16xf32>
    %141 = vector.shape_cast %140 : vector<16x16xf32> to vector<1x16x16xf32>
    %142 = vector.broadcast %141 : vector<1x16x16xf32> to vector<4x16x16xf32>
    %143 = arith.addf %138, %142 : vector<4x16x16xf32>
    %cst_71 = arith.constant dense<0xFF800000> : vector<4x16xf32>
    %144 = vector.multi_reduction <maximumf>, %143, %cst_71 [2] : vector<4x16x16xf32> to vector<4x16xf32>
    %145 = vector.shape_cast %144 : vector<4x16xf32> to vector<4x16x1xf32>
    %146 = vector.broadcast %145 : vector<4x16x1xf32> to vector<4x16x16xf32>
    %147 = arith.subf %143, %146 : vector<4x16x16xf32>
    %148 = math.exp %147 : vector<4x16x16xf32>
    %cst_72 = arith.constant dense<0.000000e+00> : vector<4x16xf32>
    %149 = vector.multi_reduction <add>, %148, %cst_72 [2] : vector<4x16x16xf32> to vector<4x16xf32>
    %150 = vector.shape_cast %149 : vector<4x16xf32> to vector<4x16x1xf32>
    %151 = tpu.reciprocal %150 {approx = true} : vector<4x16x1xf32> -> vector<4x16x1xf32>
    %152 = vector.broadcast %151 : vector<4x16x1xf32> to vector<4x16x16xf32>
    %153 = arith.mulf %148, %152 : vector<4x16x16xf32>
    %154 = arith.truncf %153 : vector<4x16x16xf32> to vector<4x16x16xbf16>
    "tpu.trace_start"() <{level = 10 : i32, message = "bqk,bkd->bqd"}> : () -> ()
    %cst_73 = arith.constant dense<0.000000e+00> : vector<4x16x8xf32>
    %155 = tpu.matmul %154, %137, %cst_73 {dimension_numbers = #tpu.dot_dimension_numbers<[2], [1], [1], [2], [0, 0, 0, 1, 1, 2], [0], [0]>} : vector<4x16x16xbf16>, vector<4x16x8xbf16>, vector<4x16x8xf32> -> vector<4x16x8xf32>
    "tpu.trace_stop"() : () -> ()
    %156 = vector.shape_cast %155 : vector<4x16x8xf32> to vector<64x8xf32>
    %157 = arith.truncf %156 : vector<64x8xf32> to vector<64x8xbf16>
    %c0_74 = arith.constant 0 : index
    %c0_75 = arith.constant 0 : index
    %c0_76 = arith.constant 0 : index
    %158 = vector.load %arg14[%c0_74, %c0_75, %c0_76] : memref<4x8x32xbf16, #tpu.memory_space<vmem>>, vector<1x8x32xbf16>
    %159 = vector.shape_cast %158 : vector<1x8x32xbf16> to vector<8x32xbf16>
    %cst_77 = arith.constant dense<0.000000e+00> : vector<64x32xf32>
    %160 = tpu.matmul %157, %159, %cst_77 {dimension_numbers = #tpu.dot_dimension_numbers<[1], [0], [0], [1], [0, 0, 1, 1], [], []>} : vector<64x8xbf16>, vector<8x32xbf16>, vector<64x32xf32> -> vector<64x32xf32>
    %161 = arith.addf %110, %160 : vector<64x32xf32>
    %c1_78 = arith.constant 1 : index
    %c0_79 = arith.constant 0 : index
    %c0_80 = arith.constant 0 : index
    %162 = vector.load %arg7[%c1_78, %c0_79, %c0_80] : memref<4x32x8xbf16, #tpu.memory_space<vmem>>, vector<1x32x8xbf16>
    %163 = vector.shape_cast %162 : vector<1x32x8xbf16> to vector<32x8xbf16>
    %cst_81 = arith.constant dense<0.000000e+00> : vector<64x8xf32>
    %164 = tpu.matmul %84, %163, %cst_81 {dimension_numbers = #tpu.dot_dimension_numbers<[1], [0], [0], [1], [0, 0, 1, 1], [], []>} : vector<64x32xbf16>, vector<32x8xbf16>, vector<64x8xf32> -> vector<64x8xf32>
    %c1_82 = arith.constant 1 : index
    %c0_83 = arith.constant 0 : index
    %c0_84 = arith.constant 0 : index
    %165 = vector.load %arg8[%c1_82, %c0_83, %c0_84] : memref<4x1x8xf32, #tpu.memory_space<vmem>>, vector<1x1x8xf32>
    %166 = vector.shape_cast %165 : vector<1x1x8xf32> to vector<1x8xf32>
    %167 = vector.broadcast %166 : vector<1x8xf32> to vector<64x8xf32>
    %168 = arith.addf %164, %167 : vector<64x8xf32>
    %c1_85 = arith.constant 1 : index
    %c0_86 = arith.constant 0 : index
    %c0_87 = arith.constant 0 : index
    %169 = vector.load %arg9[%c1_85, %c0_86, %c0_87] : memref<4x32x8xbf16, #tpu.memory_space<vmem>>, vector<1x32x8xbf16>
    %170 = vector.shape_cast %169 : vector<1x32x8xbf16> to vector<32x8xbf16>
    %cst_88 = arith.constant dense<0.000000e+00> : vector<64x8xf32>
    %171 = tpu.matmul %109, %170, %cst_88 {dimension_numbers = #tpu.dot_dimension_numbers<[1], [0], [0], [1], [0, 0, 1, 1], [], []>} : vector<64x32xbf16>, vector<32x8xbf16>, vector<64x8xf32> -> vector<64x8xf32>
    %c1_89 = arith.constant 1 : index
    %c0_90 = arith.constant 0 : index
    %c0_91 = arith.constant 0 : index
    %172 = vector.load %arg10[%c1_89, %c0_90, %c0_91] : memref<4x1x8xf32, #tpu.memory_space<vmem>>, vector<1x1x8xf32>
    %173 = vector.shape_cast %172 : vector<1x1x8xf32> to vector<1x8xf32>
    %174 = vector.broadcast %173 : vector<1x8xf32> to vector<64x8xf32>
    %175 = arith.addf %171, %174 : vector<64x8xf32>
    %c1_92 = arith.constant 1 : index
    %c0_93 = arith.constant 0 : index
    %c0_94 = arith.constant 0 : index
    %176 = vector.load %arg11[%c1_92, %c0_93, %c0_94] : memref<4x32x8xbf16, #tpu.memory_space<vmem>>, vector<1x32x8xbf16>
    %177 = vector.shape_cast %176 : vector<1x32x8xbf16> to vector<32x8xbf16>
    %cst_95 = arith.constant dense<0.000000e+00> : vector<64x8xf32>
    %178 = tpu.matmul %109, %177, %cst_95 {dimension_numbers = #tpu.dot_dimension_numbers<[1], [0], [0], [1], [0, 0, 1, 1], [], []>} : vector<64x32xbf16>, vector<32x8xbf16>, vector<64x8xf32> -> vector<64x8xf32>
    %c1_96 = arith.constant 1 : index
    %c0_97 = arith.constant 0 : index
    %c0_98 = arith.constant 0 : index
    %179 = vector.load %arg12[%c1_96, %c0_97, %c0_98] : memref<4x1x8xf32, #tpu.memory_space<vmem>>, vector<1x1x8xf32>
    %180 = vector.shape_cast %179 : vector<1x1x8xf32> to vector<1x8xf32>
    %181 = vector.broadcast %180 : vector<1x8xf32> to vector<64x8xf32>
    %182 = arith.addf %178, %181 : vector<64x8xf32>
    %183 = vector.shape_cast %168 : vector<64x8xf32> to vector<4x16x8xf32>
    %184 = arith.truncf %183 : vector<4x16x8xf32> to vector<4x16x8xbf16>
    %185 = vector.shape_cast %175 : vector<64x8xf32> to vector<4x16x8xf32>
    %186 = arith.truncf %185 : vector<4x16x8xf32> to vector<4x16x8xbf16>
    %187 = vector.shape_cast %182 : vector<64x8xf32> to vector<4x16x8xf32>
    %188 = arith.truncf %187 : vector<4x16x8xf32> to vector<4x16x8xbf16>
    "tpu.trace_start"() <{level = 10 : i32, message = "bqd,bkd->bqk"}> : () -> ()
    %cst_99 = arith.constant dense<0.000000e+00> : vector<4x16x16xf32>
    %189 = tpu.matmul %184, %186, %cst_99 {dimension_numbers = #tpu.dot_dimension_numbers<[2], [2], [1], [1], [0, 0, 0, 1, 1, 1], [0], [0]>} : vector<4x16x8xbf16>, vector<4x16x8xbf16>, vector<4x16x16xf32> -> vector<4x16x16xf32>
    "tpu.trace_stop"() : () -> ()
    %c1_100 = arith.constant 1 : index
    %c0_101 = arith.constant 0 : index
    %c0_102 = arith.constant 0 : index
    %190 = vector.load %arg13[%c1_100, %c0_101, %c0_102] : memref<4x16x16xf32, #tpu.memory_space<vmem>>, vector<1x16x16xf32>
    %191 = vector.shape_cast %190 : vector<1x16x16xf32> to vector<16x16xf32>
    %192 = vector.shape_cast %191 : vector<16x16xf32> to vector<1x16x16xf32>
    %193 = vector.broadcast %192 : vector<1x16x16xf32> to vector<4x16x16xf32>
    %194 = arith.addf %189, %193 : vector<4x16x16xf32>
    %cst_103 = arith.constant dense<0xFF800000> : vector<4x16xf32>
    %195 = vector.multi_reduction <maximumf>, %194, %cst_103 [2] : vector<4x16x16xf32> to vector<4x16xf32>
    %196 = vector.shape_cast %195 : vector<4x16xf32> to vector<4x16x1xf32>
    %197 = vector.broadcast %196 : vector<4x16x1xf32> to vector<4x16x16xf32>
    %198 = arith.subf %194, %197 : vector<4x16x16xf32>
    %199 = math.exp %198 : vector<4x16x16xf32>
    %cst_104 = arith.constant dense<0.000000e+00> : vector<4x16xf32>
    %200 = vector.multi_reduction <add>, %199, %cst_104 [2] : vector<4x16x16xf32> to vector<4x16xf32>
    %201 = vector.shape_cast %200 : vector<4x16xf32> to vector<4x16x1xf32>
    %202 = tpu.reciprocal %201 {approx = true} : vector<4x16x1xf32> -> vector<4x16x1xf32>
    %203 = vector.broadcast %202 : vector<4x16x1xf32> to vector<4x16x16xf32>
    %204 = arith.mulf %199, %203 : vector<4x16x16xf32>
    %205 = arith.truncf %204 : vector<4x16x16xf32> to vector<4x16x16xbf16>
    "tpu.trace_start"() <{level = 10 : i32, message = "bqk,bkd->bqd"}> : () -> ()
    %cst_105 = arith.constant dense<0.000000e+00> : vector<4x16x8xf32>
    %206 = tpu.matmul %205, %188, %cst_105 {dimension_numbers = #tpu.dot_dimension_numbers<[2], [1], [1], [2], [0, 0, 0, 1, 1, 2], [0], [0]>} : vector<4x16x16xbf16>, vector<4x16x8xbf16>, vector<4x16x8xf32> -> vector<4x16x8xf32>
    "tpu.trace_stop"() : () -> ()
    %207 = vector.shape_cast %206 : vector<4x16x8xf32> to vector<64x8xf32>
    %208 = arith.truncf %207 : vector<64x8xf32> to vector<64x8xbf16>
    %c1_106 = arith.constant 1 : index
    %c0_107 = arith.constant 0 : index
    %c0_108 = arith.constant 0 : index
    %209 = vector.load %arg14[%c1_106, %c0_107, %c0_108] : memref<4x8x32xbf16, #tpu.memory_space<vmem>>, vector<1x8x32xbf16>
    %210 = vector.shape_cast %209 : vector<1x8x32xbf16> to vector<8x32xbf16>
    %cst_109 = arith.constant dense<0.000000e+00> : vector<64x32xf32>
    %211 = tpu.matmul %208, %210, %cst_109 {dimension_numbers = #tpu.dot_dimension_numbers<[1], [0], [0], [1], [0, 0, 1, 1], [], []>} : vector<64x8xbf16>, vector<8x32xbf16>, vector<64x32xf32> -> vector<64x32xf32>
    %212 = arith.addf %161, %211 : vector<64x32xf32>
    %c2 = arith.constant 2 : index
    %c0_110 = arith.constant 0 : index
    %c0_111 = arith.constant 0 : index
    %213 = vector.load %arg7[%c2, %c0_110, %c0_111] : memref<4x32x8xbf16, #tpu.memory_space<vmem>>, vector<1x32x8xbf16>
    %214 = vector.shape_cast %213 : vector<1x32x8xbf16> to vector<32x8xbf16>
    %cst_112 = arith.constant dense<0.000000e+00> : vector<64x8xf32>
    %215 = tpu.matmul %84, %214, %cst_112 {dimension_numbers = #tpu.dot_dimension_numbers<[1], [0], [0], [1], [0, 0, 1, 1], [], []>} : vector<64x32xbf16>, vector<32x8xbf16>, vector<64x8xf32> -> vector<64x8xf32>
    %c2_113 = arith.constant 2 : index
    %c0_114 = arith.constant 0 : index
    %c0_115 = arith.constant 0 : index
    %216 = vector.load %arg8[%c2_113, %c0_114, %c0_115] : memref<4x1x8xf32, #tpu.memory_space<vmem>>, vector<1x1x8xf32>
    %217 = vector.shape_cast %216 : vector<1x1x8xf32> to vector<1x8xf32>
    %218 = vector.broadcast %217 : vector<1x8xf32> to vector<64x8xf32>
    %219 = arith.addf %215, %218 : vector<64x8xf32>
    %c2_116 = arith.constant 2 : index
    %c0_117 = arith.constant 0 : index
    %c0_118 = arith.constant 0 : index
    %220 = vector.load %arg9[%c2_116, %c0_117, %c0_118] : memref<4x32x8xbf16, #tpu.memory_space<vmem>>, vector<1x32x8xbf16>
    %221 = vector.shape_cast %220 : vector<1x32x8xbf16> to vector<32x8xbf16>
    %cst_119 = arith.constant dense<0.000000e+00> : vector<64x8xf32>
    %222 = tpu.matmul %109, %221, %cst_119 {dimension_numbers = #tpu.dot_dimension_numbers<[1], [0], [0], [1], [0, 0, 1, 1], [], []>} : vector<64x32xbf16>, vector<32x8xbf16>, vector<64x8xf32> -> vector<64x8xf32>
    %c2_120 = arith.constant 2 : index
    %c0_121 = arith.constant 0 : index
    %c0_122 = arith.constant 0 : index
    %223 = vector.load %arg10[%c2_120, %c0_121, %c0_122] : memref<4x1x8xf32, #tpu.memory_space<vmem>>, vector<1x1x8xf32>
    %224 = vector.shape_cast %223 : vector<1x1x8xf32> to vector<1x8xf32>
    %225 = vector.broadcast %224 : vector<1x8xf32> to vector<64x8xf32>
    %226 = arith.addf %222, %225 : vector<64x8xf32>
    %c2_123 = arith.constant 2 : index
    %c0_124 = arith.constant 0 : index
    %c0_125 = arith.constant 0 : index
    %227 = vector.load %arg11[%c2_123, %c0_124, %c0_125] : memref<4x32x8xbf16, #tpu.memory_space<vmem>>, vector<1x32x8xbf16>
    %228 = vector.shape_cast %227 : vector<1x32x8xbf16> to vector<32x8xbf16>
    %cst_126 = arith.constant dense<0.000000e+00> : vector<64x8xf32>
    %229 = tpu.matmul %109, %228, %cst_126 {dimension_numbers = #tpu.dot_dimension_numbers<[1], [0], [0], [1], [0, 0, 1, 1], [], []>} : vector<64x32xbf16>, vector<32x8xbf16>, vector<64x8xf32> -> vector<64x8xf32>
    %c2_127 = arith.constant 2 : index
    %c0_128 = arith.constant 0 : index
    %c0_129 = arith.constant 0 : index
    %230 = vector.load %arg12[%c2_127, %c0_128, %c0_129] : memref<4x1x8xf32, #tpu.memory_space<vmem>>, vector<1x1x8xf32>
    %231 = vector.shape_cast %230 : vector<1x1x8xf32> to vector<1x8xf32>
    %232 = vector.broadcast %231 : vector<1x8xf32> to vector<64x8xf32>
    %233 = arith.addf %229, %232 : vector<64x8xf32>
    %234 = vector.shape_cast %219 : vector<64x8xf32> to vector<4x16x8xf32>
    %235 = arith.truncf %234 : vector<4x16x8xf32> to vector<4x16x8xbf16>
    %236 = vector.shape_cast %226 : vector<64x8xf32> to vector<4x16x8xf32>
    %237 = arith.truncf %236 : vector<4x16x8xf32> to vector<4x16x8xbf16>
    %238 = vector.shape_cast %233 : vector<64x8xf32> to vector<4x16x8xf32>
    %239 = arith.truncf %238 : vector<4x16x8xf32> to vector<4x16x8xbf16>
    "tpu.trace_start"() <{level = 10 : i32, message = "bqd,bkd->bqk"}> : () -> ()
    %cst_130 = arith.constant dense<0.000000e+00> : vector<4x16x16xf32>
    %240 = tpu.matmul %235, %237, %cst_130 {dimension_numbers = #tpu.dot_dimension_numbers<[2], [2], [1], [1], [0, 0, 0, 1, 1, 1], [0], [0]>} : vector<4x16x8xbf16>, vector<4x16x8xbf16>, vector<4x16x16xf32> -> vector<4x16x16xf32>
    "tpu.trace_stop"() : () -> ()
    %c2_131 = arith.constant 2 : index
    %c0_132 = arith.constant 0 : index
    %c0_133 = arith.constant 0 : index
    %241 = vector.load %arg13[%c2_131, %c0_132, %c0_133] : memref<4x16x16xf32, #tpu.memory_space<vmem>>, vector<1x16x16xf32>
    %242 = vector.shape_cast %241 : vector<1x16x16xf32> to vector<16x16xf32>
    %243 = vector.shape_cast %242 : vector<16x16xf32> to vector<1x16x16xf32>
    %244 = vector.broadcast %243 : vector<1x16x16xf32> to vector<4x16x16xf32>
    %245 = arith.addf %240, %244 : vector<4x16x16xf32>
    %cst_134 = arith.constant dense<0xFF800000> : vector<4x16xf32>
    %246 = vector.multi_reduction <maximumf>, %245, %cst_134 [2] : vector<4x16x16xf32> to vector<4x16xf32>
    %247 = vector.shape_cast %246 : vector<4x16xf32> to vector<4x16x1xf32>
    %248 = vector.broadcast %247 : vector<4x16x1xf32> to vector<4x16x16xf32>
    %249 = arith.subf %245, %248 : vector<4x16x16xf32>
    %250 = math.exp %249 : vector<4x16x16xf32>
    %cst_135 = arith.constant dense<0.000000e+00> : vector<4x16xf32>
    %251 = vector.multi_reduction <add>, %250, %cst_135 [2] : vector<4x16x16xf32> to vector<4x16xf32>
    %252 = vector.shape_cast %251 : vector<4x16xf32> to vector<4x16x1xf32>
    %253 = tpu.reciprocal %252 {approx = true} : vector<4x16x1xf32> -> vector<4x16x1xf32>
    %254 = vector.broadcast %253 : vector<4x16x1xf32> to vector<4x16x16xf32>
    %255 = arith.mulf %250, %254 : vector<4x16x16xf32>
    %256 = arith.truncf %255 : vector<4x16x16xf32> to vector<4x16x16xbf16>
    "tpu.trace_start"() <{level = 10 : i32, message = "bqk,bkd->bqd"}> : () -> ()
    %cst_136 = arith.constant dense<0.000000e+00> : vector<4x16x8xf32>
    %257 = tpu.matmul %256, %239, %cst_136 {dimension_numbers = #tpu.dot_dimension_numbers<[2], [1], [1], [2], [0, 0, 0, 1, 1, 2], [0], [0]>} : vector<4x16x16xbf16>, vector<4x16x8xbf16>, vector<4x16x8xf32> -> vector<4x16x8xf32>
    "tpu.trace_stop"() : () -> ()
    %258 = vector.shape_cast %257 : vector<4x16x8xf32> to vector<64x8xf32>
    %259 = arith.truncf %258 : vector<64x8xf32> to vector<64x8xbf16>
    %c2_137 = arith.constant 2 : index
    %c0_138 = arith.constant 0 : index
    %c0_139 = arith.constant 0 : index
    %260 = vector.load %arg14[%c2_137, %c0_138, %c0_139] : memref<4x8x32xbf16, #tpu.memory_space<vmem>>, vector<1x8x32xbf16>
    %261 = vector.shape_cast %260 : vector<1x8x32xbf16> to vector<8x32xbf16>
    %cst_140 = arith.constant dense<0.000000e+00> : vector<64x32xf32>
    %262 = tpu.matmul %259, %261, %cst_140 {dimension_numbers = #tpu.dot_dimension_numbers<[1], [0], [0], [1], [0, 0, 1, 1], [], []>} : vector<64x8xbf16>, vector<8x32xbf16>, vector<64x32xf32> -> vector<64x32xf32>
    %263 = arith.addf %212, %262 : vector<64x32xf32>
    %c3 = arith.constant 3 : index
    %c0_141 = arith.constant 0 : index
    %c0_142 = arith.constant 0 : index
    %264 = vector.load %arg7[%c3, %c0_141, %c0_142] : memref<4x32x8xbf16, #tpu.memory_space<vmem>>, vector<1x32x8xbf16>
    %265 = vector.shape_cast %264 : vector<1x32x8xbf16> to vector<32x8xbf16>
    %cst_143 = arith.constant dense<0.000000e+00> : vector<64x8xf32>
    %266 = tpu.matmul %84, %265, %cst_143 {dimension_numbers = #tpu.dot_dimension_numbers<[1], [0], [0], [1], [0, 0, 1, 1], [], []>} : vector<64x32xbf16>, vector<32x8xbf16>, vector<64x8xf32> -> vector<64x8xf32>
    %c3_144 = arith.constant 3 : index
    %c0_145 = arith.constant 0 : index
    %c0_146 = arith.constant 0 : index
    %267 = vector.load %arg8[%c3_144, %c0_145, %c0_146] : memref<4x1x8xf32, #tpu.memory_space<vmem>>, vector<1x1x8xf32>
    %268 = vector.shape_cast %267 : vector<1x1x8xf32> to vector<1x8xf32>
    %269 = vector.broadcast %268 : vector<1x8xf32> to vector<64x8xf32>
    %270 = arith.addf %266, %269 : vector<64x8xf32>
    %c3_147 = arith.constant 3 : index
    %c0_148 = arith.constant 0 : index
    %c0_149 = arith.constant 0 : index
    %271 = vector.load %arg9[%c3_147, %c0_148, %c0_149] : memref<4x32x8xbf16, #tpu.memory_space<vmem>>, vector<1x32x8xbf16>
    %272 = vector.shape_cast %271 : vector<1x32x8xbf16> to vector<32x8xbf16>
    %cst_150 = arith.constant dense<0.000000e+00> : vector<64x8xf32>
    %273 = tpu.matmul %109, %272, %cst_150 {dimension_numbers = #tpu.dot_dimension_numbers<[1], [0], [0], [1], [0, 0, 1, 1], [], []>} : vector<64x32xbf16>, vector<32x8xbf16>, vector<64x8xf32> -> vector<64x8xf32>
    %c3_151 = arith.constant 3 : index
    %c0_152 = arith.constant 0 : index
    %c0_153 = arith.constant 0 : index
    %274 = vector.load %arg10[%c3_151, %c0_152, %c0_153] : memref<4x1x8xf32, #tpu.memory_space<vmem>>, vector<1x1x8xf32>
    %275 = vector.shape_cast %274 : vector<1x1x8xf32> to vector<1x8xf32>
    %276 = vector.broadcast %275 : vector<1x8xf32> to vector<64x8xf32>
    %277 = arith.addf %273, %276 : vector<64x8xf32>
    %c3_154 = arith.constant 3 : index
    %c0_155 = arith.constant 0 : index
    %c0_156 = arith.constant 0 : index
    %278 = vector.load %arg11[%c3_154, %c0_155, %c0_156] : memref<4x32x8xbf16, #tpu.memory_space<vmem>>, vector<1x32x8xbf16>
    %279 = vector.shape_cast %278 : vector<1x32x8xbf16> to vector<32x8xbf16>
    %cst_157 = arith.constant dense<0.000000e+00> : vector<64x8xf32>
    %280 = tpu.matmul %109, %279, %cst_157 {dimension_numbers = #tpu.dot_dimension_numbers<[1], [0], [0], [1], [0, 0, 1, 1], [], []>} : vector<64x32xbf16>, vector<32x8xbf16>, vector<64x8xf32> -> vector<64x8xf32>
    %c3_158 = arith.constant 3 : index
    %c0_159 = arith.constant 0 : index
    %c0_160 = arith.constant 0 : index
    %281 = vector.load %arg12[%c3_158, %c0_159, %c0_160] : memref<4x1x8xf32, #tpu.memory_space<vmem>>, vector<1x1x8xf32>
    %282 = vector.shape_cast %281 : vector<1x1x8xf32> to vector<1x8xf32>
    %283 = vector.broadcast %282 : vector<1x8xf32> to vector<64x8xf32>
    %284 = arith.addf %280, %283 : vector<64x8xf32>
    %285 = vector.shape_cast %270 : vector<64x8xf32> to vector<4x16x8xf32>
    %286 = arith.truncf %285 : vector<4x16x8xf32> to vector<4x16x8xbf16>
    %287 = vector.shape_cast %277 : vector<64x8xf32> to vector<4x16x8xf32>
    %288 = arith.truncf %287 : vector<4x16x8xf32> to vector<4x16x8xbf16>
    %289 = vector.shape_cast %284 : vector<64x8xf32> to vector<4x16x8xf32>
    %290 = arith.truncf %289 : vector<4x16x8xf32> to vector<4x16x8xbf16>
    "tpu.trace_start"() <{level = 10 : i32, message = "bqd,bkd->bqk"}> : () -> ()
    %cst_161 = arith.constant dense<0.000000e+00> : vector<4x16x16xf32>
    %291 = tpu.matmul %286, %288, %cst_161 {dimension_numbers = #tpu.dot_dimension_numbers<[2], [2], [1], [1], [0, 0, 0, 1, 1, 1], [0], [0]>} : vector<4x16x8xbf16>, vector<4x16x8xbf16>, vector<4x16x16xf32> -> vector<4x16x16xf32>
    "tpu.trace_stop"() : () -> ()
    %c3_162 = arith.constant 3 : index
    %c0_163 = arith.constant 0 : index
    %c0_164 = arith.constant 0 : index
    %292 = vector.load %arg13[%c3_162, %c0_163, %c0_164] : memref<4x16x16xf32, #tpu.memory_space<vmem>>, vector<1x16x16xf32>
    %293 = vector.shape_cast %292 : vector<1x16x16xf32> to vector<16x16xf32>
    %294 = vector.shape_cast %293 : vector<16x16xf32> to vector<1x16x16xf32>
    %295 = vector.broadcast %294 : vector<1x16x16xf32> to vector<4x16x16xf32>
    %296 = arith.addf %291, %295 : vector<4x16x16xf32>
    %cst_165 = arith.constant dense<0xFF800000> : vector<4x16xf32>
    %297 = vector.multi_reduction <maximumf>, %296, %cst_165 [2] : vector<4x16x16xf32> to vector<4x16xf32>
    %298 = vector.shape_cast %297 : vector<4x16xf32> to vector<4x16x1xf32>
    %299 = vector.broadcast %298 : vector<4x16x1xf32> to vector<4x16x16xf32>
    %300 = arith.subf %296, %299 : vector<4x16x16xf32>
    %301 = math.exp %300 : vector<4x16x16xf32>
    %cst_166 = arith.constant dense<0.000000e+00> : vector<4x16xf32>
    %302 = vector.multi_reduction <add>, %301, %cst_166 [2] : vector<4x16x16xf32> to vector<4x16xf32>
    %303 = vector.shape_cast %302 : vector<4x16xf32> to vector<4x16x1xf32>
    %304 = tpu.reciprocal %303 {approx = true} : vector<4x16x1xf32> -> vector<4x16x1xf32>
    %305 = vector.broadcast %304 : vector<4x16x1xf32> to vector<4x16x16xf32>
    %306 = arith.mulf %301, %305 : vector<4x16x16xf32>
    %307 = arith.truncf %306 : vector<4x16x16xf32> to vector<4x16x16xbf16>
    "tpu.trace_start"() <{level = 10 : i32, message = "bqk,bkd->bqd"}> : () -> ()
    %cst_167 = arith.constant dense<0.000000e+00> : vector<4x16x8xf32>
    %308 = tpu.matmul %307, %290, %cst_167 {dimension_numbers = #tpu.dot_dimension_numbers<[2], [1], [1], [2], [0, 0, 0, 1, 1, 2], [0], [0]>} : vector<4x16x16xbf16>, vector<4x16x8xbf16>, vector<4x16x8xf32> -> vector<4x16x8xf32>
    "tpu.trace_stop"() : () -> ()
    %309 = vector.shape_cast %308 : vector<4x16x8xf32> to vector<64x8xf32>
    %310 = arith.truncf %309 : vector<64x8xf32> to vector<64x8xbf16>
    %c3_168 = arith.constant 3 : index
    %c0_169 = arith.constant 0 : index
    %c0_170 = arith.constant 0 : index
    %311 = vector.load %arg14[%c3_168, %c0_169, %c0_170] : memref<4x8x32xbf16, #tpu.memory_space<vmem>>, vector<1x8x32xbf16>
    %312 = vector.shape_cast %311 : vector<1x8x32xbf16> to vector<8x32xbf16>
    %cst_171 = arith.constant dense<0.000000e+00> : vector<64x32xf32>
    %313 = tpu.matmul %310, %312, %cst_171 {dimension_numbers = #tpu.dot_dimension_numbers<[1], [0], [0], [1], [0, 0, 1, 1], [], []>} : vector<64x8xbf16>, vector<8x32xbf16>, vector<64x32xf32> -> vector<64x32xf32>
    %314 = arith.addf %263, %313 : vector<64x32xf32>
    %315 = arith.addf %35, %314 : vector<64x32xf32>
    %c0_172 = arith.constant 0 : index
    %c0_173 = arith.constant 0 : index
    %316 = vector.load %arg15[%c0_172, %c0_173] : memref<1x32xf32, #tpu.memory_space<vmem>>, vector<1x32xf32>
    %317 = vector.broadcast %316 : vector<1x32xf32> to vector<64x32xf32>
    %318 = arith.addf %315, %317 : vector<64x32xf32>
    %319 = vector.shape_cast %318 : vector<64x32xf32> to vector<4x16x32xf32>
    %c0_174 = arith.constant 0 : index
    %c0_175 = arith.constant 0 : index
    %c0_176 = arith.constant 0 : index
    %320 = vector.load %arg16[%c0_174, %c0_175, %c0_176] : memref<4x16x32xf32, #tpu.memory_space<vmem>>, vector<4x16x32xf32>
    tpu.vector_store %arg16[%c0_174, %c0_175, %c0_176], %319 {strides = array<i32>} : memref<4x16x32xf32, #tpu.memory_space<vmem>>, vector<4x16x32xf32>,
    return
  }
  func.func @transform_0(%arg0: i32) -> (i32, i32, i32) {
    %c0_i32 = arith.constant 0 : i32
    %c0_i32_0 = arith.constant 0 : i32
    %c0_i32_1 = arith.constant 0 : i32
    return %arg0, %c0_i32, %c0_i32_0 : i32, i32, i32
  }
  func.func @transform_1(%arg0: i32) -> (i32, i32, i32) {
    %c0_i32 = arith.constant 0 : i32
    %c0_i32_0 = arith.constant 0 : i32
    %c0_i32_1 = arith.constant 0 : i32
    return %arg0, %c0_i32, %c0_i32_0 : i32, i32, i32
  }
  func.func @transform_2(%arg0: i32) -> (i32, i32) {
    %c0_i32 = arith.constant 0 : i32
    %c0_i32_0 = arith.constant 0 : i32
    %c0_i32_1 = arith.constant 0 : i32
    return %c0_i32, %c0_i32_0 : i32, i32
  }
  func.func @transform_3(%arg0: i32) -> (i32, i32) {
    %c0_i32 = arith.constant 0 : i32
    %c0_i32_0 = arith.constant 0 : i32
    %c0_i32_1 = arith.constant 0 : i32
    return %c0_i32, %c0_i32_0 : i32, i32
  }
  func.func @transform_4(%arg0: i32) -> (i32, i32) {
    %c0_i32 = arith.constant 0 : i32
    %c0_i32_0 = arith.constant 0 : i32
    %c0_i32_1 = arith.constant 0 : i32
    return %c0_i32, %c0_i32_0 : i32, i32
  }
  func.func @transform_5(%arg0: i32) -> (i32, i32) {
    %c0_i32 = arith.constant 0 : i32
    %c0_i32_0 = arith.constant 0 : i32
    %c0_i32_1 = arith.constant 0 : i32
    return %c0_i32, %c0_i32_0 : i32, i32
  }
  func.func @transform_6(%arg0: i32) -> (i32, i32, i32) {
    %c0_i32 = arith.constant 0 : i32
    %c0_i32_0 = arith.constant 0 : i32
    %c0_i32_1 = arith.constant 0 : i32
    %c0_i32_2 = arith.constant 0 : i32
    return %c0_i32, %c0_i32_0, %c0_i32_1 : i32, i32, i32
  }
  func.func @transform_7(%arg0: i32) -> (i32, i32, i32) {
    %c0_i32 = arith.constant 0 : i32
    %c0_i32_0 = arith.constant 0 : i32
    %c0_i32_1 = arith.constant 0 : i32
    %c0_i32_2 = arith.constant 0 : i32
    return %c0_i32, %c0_i32_0, %c0_i32_1 : i32, i32, i32
  }
  func.func @transform_8(%arg0: i32) -> (i32, i32, i32) {
    %c0_i32 = arith.constant 0 : i32
    %c0_i32_0 = arith.constant 0 : i32
    %c0_i32_1 = arith.constant 0 : i32
    %c0_i32_2 = arith.constant 0 : i32
    return %c0_i32, %c0_i32_0, %c0_i32_1 : i32, i32, i32
  }
  func.func @transform_9(%arg0: i32) -> (i32, i32, i32) {
    %c0_i32 = arith.constant 0 : i32
    %c0_i32_0 = arith.constant 0 : i32
    %c0_i32_1 = arith.constant 0 : i32
    %c0_i32_2 = arith.constant 0 : i32
    return %c0_i32, %c0_i32_0, %c0_i32_1 : i32, i32, i32
  }
  func.func @transform_10(%arg0: i32) -> (i32, i32, i32) {
    %c0_i32 = arith.constant 0 : i32
    %c0_i32_0 = arith.constant 0 : i32
    %c0_i32_1 = arith.constant 0 : i32
    %c0_i32_2 = arith.constant 0 : i32
    return %c0_i32, %c0_i32_0, %c0_i32_1 : i32, i32, i32
  }
  func.func @transform_11(%arg0: i32) -> (i32, i32, i32) {
    %c0_i32 = arith.constant 0 : i32
    %c0_i32_0 = arith.constant 0 : i32
    %c0_i32_1 = arith.constant 0 : i32
    %c0_i32_2 = arith.constant 0 : i32
    return %c0_i32, %c0_i32_0, %c0_i32_1 : i32, i32, i32
  }
  func.func @transform_12(%arg0: i32) -> (i32, i32, i32) {
    %c0_i32 = arith.constant 0 : i32
    %c0_i32_0 = arith.constant 0 : i32
    %c0_i32_1 = arith.constant 0 : i32
    %c0_i32_2 = arith.constant 0 : i32
    return %c0_i32, %c0_i32_0, %c0_i32_1 : i32, i32, i32
  }
  func.func @transform_13(%arg0: i32) -> (i32, i32, i32) {
    %c0_i32 = arith.constant 0 : i32
    %c0_i32_0 = arith.constant 0 : i32
    %c0_i32_1 = arith.constant 0 : i32
    %c0_i32_2 = arith.constant 0 : i32
    return %c0_i32, %c0_i32_0, %c0_i32_1 : i32, i32, i32
  }
  func.func @transform_14(%arg0: i32) -> (i32, i32) {
    %c0_i32 = arith.constant 0 : i32
    %c0_i32_0 = arith.constant 0 : i32
    %c0_i32_1 = arith.constant 0 : i32
    return %c0_i32, %c0_i32_0 : i32, i32
  }
  func.func @transform_15(%arg0: i32) -> (i32, i32, i32) {
    %c0_i32 = arith.constant 0 : i32
    %c0_i32_0 = arith.constant 0 : i32
    %c0_i32_1 = arith.constant 0 : i32
    return %arg0, %c0_i32, %c0_i32_0 : i32, i32, i32
  }
}

module attributes {stable_mosaic.version = 11 : i64} {
  func.func @_mlp_block_kernel(%arg0: i32, %arg1: memref<64x32xf32, #tpu.memory_space<vmem>>, %arg2: memref<2x32xf32, #tpu.memory_space<vmem>>, %arg3: memref<32x128xbf16, #tpu.memory_space<vmem>>, %arg4: memref<1x128xf32, #tpu.memory_space<vmem>>, %arg5: memref<128x32xbf16, #tpu.memory_space<vmem>>, %arg6: memref<1x32xf32, #tpu.memory_space<vmem>>, %arg7: memref<2x32xf32, #tpu.memory_space<vmem>>, %arg8: memref<64x32xf32, #tpu.memory_space<vmem>>) attributes {dimension_semantics = [#tpu.dimension_semantics<parallel>], iteration_bounds = array<i64: 2>, scalar_prefetch = 0 : i64, scratch_operands = 0 : i64, tpu.core_type = #tpu.core_type<tc>, window_params = [{transform_indices = @transform_0, window_bounds = array<i64: 64, 32>}, {pipeline_mode = #tpu.pipeline_mode<synchronous>, transform_indices = @transform_1, window_bounds = array<i64: 2, 32>}, {pipeline_mode = #tpu.pipeline_mode<synchronous>, transform_indices = @transform_2, window_bounds = array<i64: 32, 128>}, {pipeline_mode = #tpu.pipeline_mode<synchronous>, transform_indices = @transform_3, window_bounds = array<i64: 1, 128>}, {pipeline_mode = #tpu.pipeline_mode<synchronous>, transform_indices = @transform_4, window_bounds = array<i64: 128, 32>}, {pipeline_mode = #tpu.pipeline_mode<synchronous>, transform_indices = @transform_5, window_bounds = array<i64: 1, 32>}, {pipeline_mode = #tpu.pipeline_mode<synchronous>, transform_indices = @transform_6, window_bounds = array<i64: 2, 32>}, {transform_indices = @transform_7, window_bounds = array<i64: 64, 32>}]} {
    %c0 = arith.constant 0 : index
    %c0_0 = arith.constant 0 : index
    %0 = vector.load %arg1[%c0, %c0_0] : memref<64x32xf32, #tpu.memory_space<vmem>>, vector<64x32xf32>
    %c0_1 = arith.constant 0 : index
    %c0_2 = arith.constant 0 : index
    %1 = vector.load %arg2[%c0_1, %c0_2] : memref<2x32xf32, #tpu.memory_space<vmem>>, vector<1x32xf32>
    %c1 = arith.constant 1 : index
    %c0_3 = arith.constant 0 : index
    %2 = vector.load %arg2[%c1, %c0_3] : memref<2x32xf32, #tpu.memory_space<vmem>>, vector<1x32xf32>
    %cst = arith.constant dense<0.000000e+00> : vector<64xf32>
    %3 = vector.multi_reduction <add>, %0, %cst [1] : vector<64x32xf32> to vector<64xf32>
    %4 = vector.shape_cast %3 : vector<64xf32> to vector<64x1xf32>
    %cst_4 = arith.constant 3.200000e+01 : f32
    %5 = vector.broadcast %cst_4 : f32 to vector<64x1xf32>
    %6 = arith.divf %4, %5 : vector<64x1xf32>
    %7 = vector.broadcast %6 : vector<64x1xf32> to vector<64x32xf32>
    %8 = arith.subf %0, %7 : vector<64x32xf32>
    %9 = arith.mulf %8, %8 : vector<64x32xf32>
    %cst_5 = arith.constant dense<0.000000e+00> : vector<64xf32>
    %10 = vector.multi_reduction <add>, %9, %cst_5 [1] : vector<64x32xf32> to vector<64xf32>
    %11 = vector.shape_cast %10 : vector<64xf32> to vector<64x1xf32>
    %cst_6 = arith.constant 3.200000e+01 : f32
    %12 = vector.broadcast %cst_6 : f32 to vector<64x1xf32>
    %13 = arith.divf %11, %12 : vector<64x1xf32>
    %14 = vector.broadcast %6 : vector<64x1xf32> to vector<64x32xf32>
    %15 = arith.subf %0, %14 : vector<64x32xf32>
    %cst_7 = arith.constant 9.99999974E-6 : f32
    %16 = vector.broadcast %cst_7 : f32 to vector<64x1xf32>
    %17 = arith.addf %13, %16 : vector<64x1xf32>
    %18 = math.rsqrt %17 : vector<64x1xf32>
    %19 = vector.broadcast %18 : vector<64x1xf32> to vector<64x32xf32>
    %20 = arith.mulf %15, %19 : vector<64x32xf32>
    %21 = vector.broadcast %1 : vector<1x32xf32> to vector<64x32xf32>
    %22 = arith.mulf %20, %21 : vector<64x32xf32>
    %23 = vector.broadcast %2 : vector<1x32xf32> to vector<64x32xf32>
    %24 = arith.addf %22, %23 : vector<64x32xf32>
    %25 = arith.truncf %24 : vector<64x32xf32> to vector<64x32xbf16>
    %c0_8 = arith.constant 0 : index
    %c0_9 = arith.constant 0 : index
    %26 = vector.load %arg3[%c0_8, %c0_9] : memref<32x128xbf16, #tpu.memory_space<vmem>>, vector<32x128xbf16>
    %cst_10 = arith.constant dense<0.000000e+00> : vector<64x128xf32>
    %27 = tpu.matmul %25, %26, %cst_10 {dimension_numbers = #tpu.dot_dimension_numbers<[1], [0], [0], [1], [0, 0, 1, 1], [], []>} : vector<64x32xbf16>, vector<32x128xbf16>, vector<64x128xf32> -> vector<64x128xf32>
    %c0_11 = arith.constant 0 : index
    %c0_12 = arith.constant 0 : index
    %28 = vector.load %arg4[%c0_11, %c0_12] : memref<1x128xf32, #tpu.memory_space<vmem>>, vector<1x128xf32>
    %29 = vector.broadcast %28 : vector<1x128xf32> to vector<64x128xf32>
    %30 = arith.addf %27, %29 : vector<64x128xf32>
    %31 = arith.mulf %30, %30 : vector<64x128xf32>
    %32 = arith.mulf %30, %31 : vector<64x128xf32>
    %cst_13 = arith.constant 4.471500e-02 : f32
    %33 = vector.broadcast %cst_13 : f32 to vector<64x128xf32>
    %34 = arith.mulf %33, %32 : vector<64x128xf32>
    %35 = arith.addf %30, %34 : vector<64x128xf32>
    %cst_14 = arith.constant 0.797884583 : f32
    %36 = vector.broadcast %cst_14 : f32 to vector<64x128xf32>
    %37 = arith.mulf %36, %35 : vector<64x128xf32>
    %38 = math.tanh %37 : vector<64x128xf32>
    %cst_15 = arith.constant 1.000000e+00 : f32
    %39 = vector.broadcast %cst_15 : f32 to vector<64x128xf32>
    %40 = arith.addf %39, %38 : vector<64x128xf32>
    %cst_16 = arith.constant 5.000000e-01 : f32
    %41 = vector.broadcast %cst_16 : f32 to vector<64x128xf32>
    %42 = arith.mulf %41, %40 : vector<64x128xf32>
    %43 = arith.mulf %30, %42 : vector<64x128xf32>
    %44 = arith.truncf %43 : vector<64x128xf32> to vector<64x128xbf16>
    %c0_17 = arith.constant 0 : index
    %c0_18 = arith.constant 0 : index
    %45 = vector.load %arg5[%c0_17, %c0_18] : memref<128x32xbf16, #tpu.memory_space<vmem>>, vector<128x32xbf16>
    %cst_19 = arith.constant dense<0.000000e+00> : vector<64x32xf32>
    %46 = tpu.matmul %44, %45, %cst_19 {dimension_numbers = #tpu.dot_dimension_numbers<[1], [0], [0], [1], [0, 0, 1, 1], [], []>} : vector<64x128xbf16>, vector<128x32xbf16>, vector<64x32xf32> -> vector<64x32xf32>
    %c0_20 = arith.constant 0 : index
    %c0_21 = arith.constant 0 : index
    %47 = vector.load %arg6[%c0_20, %c0_21] : memref<1x32xf32, #tpu.memory_space<vmem>>, vector<1x32xf32>
    %48 = vector.broadcast %47 : vector<1x32xf32> to vector<64x32xf32>
    %49 = arith.addf %46, %48 : vector<64x32xf32>
    %50 = arith.addf %0, %49 : vector<64x32xf32>
    %c0_22 = arith.constant 0 : index
    %c0_23 = arith.constant 0 : index
    %51 = vector.load %arg7[%c0_22, %c0_23] : memref<2x32xf32, #tpu.memory_space<vmem>>, vector<1x32xf32>
    %c1_24 = arith.constant 1 : index
    %c0_25 = arith.constant 0 : index
    %52 = vector.load %arg7[%c1_24, %c0_25] : memref<2x32xf32, #tpu.memory_space<vmem>>, vector<1x32xf32>
    %cst_26 = arith.constant dense<0.000000e+00> : vector<64xf32>
    %53 = vector.multi_reduction <add>, %50, %cst_26 [1] : vector<64x32xf32> to vector<64xf32>
    %54 = vector.shape_cast %53 : vector<64xf32> to vector<64x1xf32>
    %cst_27 = arith.constant 3.200000e+01 : f32
    %55 = vector.broadcast %cst_27 : f32 to vector<64x1xf32>
    %56 = arith.divf %54, %55 : vector<64x1xf32>
    %57 = vector.broadcast %56 : vector<64x1xf32> to vector<64x32xf32>
    %58 = arith.subf %50, %57 : vector<64x32xf32>
    %59 = arith.mulf %58, %58 : vector<64x32xf32>
    %cst_28 = arith.constant dense<0.000000e+00> : vector<64xf32>
    %60 = vector.multi_reduction <add>, %59, %cst_28 [1] : vector<64x32xf32> to vector<64xf32>
    %61 = vector.shape_cast %60 : vector<64xf32> to vector<64x1xf32>
    %cst_29 = arith.constant 3.200000e+01 : f32
    %62 = vector.broadcast %cst_29 : f32 to vector<64x1xf32>
    %63 = arith.divf %61, %62 : vector<64x1xf32>
    %64 = vector.broadcast %56 : vector<64x1xf32> to vector<64x32xf32>
    %65 = arith.subf %50, %64 : vector<64x32xf32>
    %cst_30 = arith.constant 9.99999974E-6 : f32
    %66 = vector.broadcast %cst_30 : f32 to vector<64x1xf32>
    %67 = arith.addf %63, %66 : vector<64x1xf32>
    %68 = math.rsqrt %67 : vector<64x1xf32>
    %69 = vector.broadcast %68 : vector<64x1xf32> to vector<64x32xf32>
    %70 = arith.mulf %65, %69 : vector<64x32xf32>
    %71 = vector.broadcast %51 : vector<1x32xf32> to vector<64x32xf32>
    %72 = arith.mulf %70, %71 : vector<64x32xf32>
    %73 = vector.broadcast %52 : vector<1x32xf32> to vector<64x32xf32>
    %74 = arith.addf %72, %73 : vector<64x32xf32>
    %c0_31 = arith.constant 0 : index
    %c0_32 = arith.constant 0 : index
    %75 = vector.load %arg8[%c0_31, %c0_32] : memref<64x32xf32, #tpu.memory_space<vmem>>, vector<64x32xf32>
    tpu.vector_store %arg8[%c0_31, %c0_32], %74 {strides = array<i32>} : memref<64x32xf32, #tpu.memory_space<vmem>>, vector<64x32xf32>,
    return
  }
  func.func @transform_0(%arg0: i32) -> (i32, i32) {
    %c0_i32 = arith.constant 0 : i32
    %c0_i32_0 = arith.constant 0 : i32
    return %arg0, %c0_i32 : i32, i32
  }
  func.func @transform_1(%arg0: i32) -> (i32, i32) {
    %c0_i32 = arith.constant 0 : i32
    %c0_i32_0 = arith.constant 0 : i32
    %c0_i32_1 = arith.constant 0 : i32
    return %c0_i32, %c0_i32_0 : i32, i32
  }
  func.func @transform_2(%arg0: i32) -> (i32, i32) {
    %c0_i32 = arith.constant 0 : i32
    %c0_i32_0 = arith.constant 0 : i32
    %c0_i32_1 = arith.constant 0 : i32
    return %c0_i32, %c0_i32_0 : i32, i32
  }
  func.func @transform_3(%arg0: i32) -> (i32, i32) {
    %c0_i32 = arith.constant 0 : i32
    %c0_i32_0 = arith.constant 0 : i32
    %c0_i32_1 = arith.constant 0 : i32
    return %c0_i32, %c0_i32_0 : i32, i32
  }
  func.func @transform_4(%arg0: i32) -> (i32, i32) {
    %c0_i32 = arith.constant 0 : i32
    %c0_i32_0 = arith.constant 0 : i32
    %c0_i32_1 = arith.constant 0 : i32
    return %c0_i32, %c0_i32_0 : i32, i32
  }
  func.func @transform_5(%arg0: i32) -> (i32, i32) {
    %c0_i32 = arith.constant 0 : i32
    %c0_i32_0 = arith.constant 0 : i32
    %c0_i32_1 = arith.constant 0 : i32
    return %c0_i32, %c0_i32_0 : i32, i32
  }
  func.func @transform_6(%arg0: i32) -> (i32, i32) {
    %c0_i32 = arith.constant 0 : i32
    %c0_i32_0 = arith.constant 0 : i32
    %c0_i32_1 = arith.constant 0 : i32
    return %c0_i32, %c0_i32_0 : i32, i32
  }
  func.func @transform_7(%arg0: i32) -> (i32, i32) {
    %c0_i32 = arith.constant 0 : i32
    %c0_i32_0 = arith.constant 0 : i32
    return %arg0, %c0_i32 : i32, i32
  }
}

</mosaic_0001>

<bundles_post_ra>
// kernel: lwca_forward.3
= control target key start
LH: loop header
LB: loop body
LE: loop exit
PB: predicated region body
PF: predicated region fallthrough
CT: control target
= control target key end

     0   :  { %s1140_s24 = smov 0   ;;  %s1442_s0 = inlined_call_operand.vmem [shape: f32[128,32], index: 0, kind: input, shape index: {}]   ;;  %s1443_s1 = inlined_call_operand.vmem [shape: f32[2,32], index: 1, kind: input, shape index: {}]   ;;  %s1444_s2 = inlined_call_operand.vmem [shape: bf16[32,128], index: 2, kind: input, shape index: {}]   ;;  %s1445_s3 = inlined_call_operand.vmem [shape: f32[1,128], index: 3, kind: input, shape index: {}]   ;;  %s1446_s4 = inlined_call_operand.vmem [shape: bf16[128,32], index: 4, kind: input, shape index: {}]   ;;  %s1447_s5 = inlined_call_operand.vmem [shape: f32[1,32], index: 5, kind: input, shape index: {}]   ;;  %s1448_s6 = inlined_call_operand.vmem [shape: f32[2,32], index: 6, kind: input, shape index: {}]   ;;  %s1449_s7 = inlined_call_operand.vmem [shape: f32[128,32], index: 7, kind: output, shape index: {}]  }
   0x1 LB: > { %s941_s25 = sadd.s32 4294967295, %s1098_s24   ;;  %p945_p0 = scmp.ge.s32.totalorder %s1098_s24, 1  ;;  %s1098_s24 = sphi %s1140_s24, %s17_s24  }
   0x2   : > { %p238_p1 = scmp.lt.s32.totalorder %s1098_s24, 3 }
   0x4   : > { %p239_p2 = pnand %p945_p0, %p238_p1 }
   0x5   : > { %s946_s26 = sshll.u32 (!%p239_p2), %s941_s25, 3  ;;  %vm293_vm0 = vcmask (!%p239_p2), 261120   ;;  %v1034_v56 = vld [vmem:[%s1444_s2] sm:$0xff] (!%p239_p2)   ;;  %v1035_v57 = vld [vmem:[%s1444_s2 + $0x8] sm:$0xff] (!%p239_p2)  }
   0x6   : > { %242 = sbr.rel (%p239_p2) target bundleno = 1132 (0x46c), region = 48  ;;  %p271_p3 = scmp.lt.s32.totalorder (!%p239_p2), %s946_s26, 15  ;;  %990 = vmatprep.subr.bf16.mxu0 (!%p239_p2), %v1034_v56 }
   0x7   : > { %991 = vmatpush3.bf16.msra.mxu0 (!%p239_p2), %v1034_v56 }
   0x8   : > { %992 = vmatprep.subr.bf16.mxu0 (!%p239_p2), %v1035_v57 }
   0xb   : > { %993 = vmatpush3.bf16.msra.mxu0 (!%p239_p2), %v1035_v57 }
   0xd   : > { %s1451_s26 = smov (!%p271_p3, %s946_s26), 15 }
   0xe   : > { %s947_s27 = sshll.u32 %s1451_s26, 3 }
   0xf   : > { %s274_s30 = scalar_lea.vmem %s1442_s0, %s947_s27  ;;  %s1415_s22 = scalar_lea.vmem %s1449_s7, %s947_s27 }
  0x10   : > { %v1156_v0 = vld [vmem:[%s274_s30] sm:$0xff]  ;;  %v1158_v1 = vld [vmem:[%s274_s30 + $0x10] sm:$0xff]  ;;  %v1160_v2 = vld [vmem:[%s274_s30 + $0x8] sm:$0xff] }
  0x11   : > { %v294_v3 = vsel %vm293_vm0, %v1156_v0, 0.0  ;;  %v300_v4 = vsel %vm293_vm0, %v1158_v1, 0.0  ;;  %v1166_v5 = vld [vmem:[%s274_s30 + $0x18] sm:$0xff]  ;;  %v297_v6 = vsel %vm293_vm0, %v1160_v2, 0.0  ;;  %v1172_v8 = vld [vmem:[%s274_s30 + $0x20] sm:$0xff]  ;;  %v1174_v9 = vld [vmem:[%s274_s30 + $0x28] sm:$0xff] }
  0x12   : > { %295 = vadd.xlane.f32.xlu0 %v294_v3  ;;  %301 = vadd.xlane.f32.xlu1 %v300_v4  ;;  %v303_v7 = vsel %vm293_vm0, %v1166_v5, 0.0  ;;  %v306_v10 = vsel %vm293_vm0, %v1172_v8, 0.0  ;;  %v309_v11 = vsel %vm293_vm0, %v1174_v9, 0.0  ;;  %v1180_v12 = vld [vmem:[%s274_s30 + $0x30] sm:$0xff]  ;;  %v1182_v13 = vld [vmem:[%s274_s30 + $0x38] sm:$0xff] }
  0x13   : > { %v312_v14 = vsel %vm293_vm0, %v1180_v12, 0.0  ;;  %v315_v15 = vsel %vm293_vm0, %v1182_v13, 0.0 }
  0x16   : > { %298 = vadd.xlane.f32.xlu0 %v297_v6  ;;  %304 = vadd.xlane.f32.xlu1 %v303_v7 }
  0x1a   : > { %307 = vadd.xlane.f32.xlu0 %v306_v10  ;;  %310 = vadd.xlane.f32.xlu1 %v309_v11 }
  0x1e   : > { %313 = vadd.xlane.f32.xlu0 %v312_v14  ;;  %316 = vadd.xlane.f32.xlu1 %v315_v15 }
  0x9f   : > { %v296_v16 = vpop.xlane.xlu0 %295  ;;  %v302_v17 = vpop.xlane.xlu1 %301 }
  0xa0   : > { %v319_v18 = vmul.f32 0.03125, %v296_v16  ;;  %v321_v19 = vmul.f32 0.03125, %v302_v17 }
  0xa2   : > { %v1189_v20 = vsub.f32 %v1156_v0, %v319_v18  ;;  %v1192_v21 = vsub.f32 %v1158_v1, %v321_v19 }
  0xa3   : > { %v299_v22 = vpop.xlane.xlu0 %298  ;;  %v305_v23 = vpop.xlane.xlu1 %304 }
  0xa4   : > { %v320_v24 = vmul.f32 0.03125, %v299_v22  ;;  %v322_v25 = vmul.f32 0.03125, %v305_v23  ;;  %v335_v26 = vmul.f32 %v1189_v20, %v1189_v20  ;;  %v337_v27 = vmul.f32 %v1192_v21, %v1192_v21 }
  0xa6   : > { %v1199_v28 = vsub.f32 %v1160_v2, %v320_v24  ;;  %v1202_v29 = vsub.f32 %v1166_v5, %v322_v25  ;;  %v343_v30 = vsel %vm293_vm0, %v335_v26, 0.0  ;;  %v349_v33 = vsel %vm293_vm0, %v337_v27, 0.0 }
  0xa7   : > { %344 = vadd.xlane.f32.xlu0 %v343_v30  ;;  %v308_v31 = vpop.xlane.xlu0 %307  ;;  %v311_v32 = vpop.xlane.xlu1 %310 }
  0xa8   : > { %v323_v34 = vmul.f32 0.03125, %v308_v31  ;;  %v324_v35 = vmul.f32 0.03125, %v311_v32  ;;  %v336_v36 = vmul.f32 %v1199_v28, %v1199_v28  ;;  %v338_v37 = vmul.f32 %v1202_v29, %v1202_v29  ;;  %v950_v31 = vld [vmem:[%s1443_s1] ss:$0 sm:$0xff] }
  0xaa   : > { %v1211_v38 = vsub.f32 %v1172_v8, %v323_v34  ;;  %v1214_v39 = vsub.f32 %v1174_v9, %v324_v35  ;;  %v346_v40 = vsel %vm293_vm0, %v336_v36, 0.0  ;;  %v352_v43 = vsel %vm293_vm0, %v338_v37, 0.0 }
  0xab   : > { %350 = vadd.xlane.f32.xlu0 %v349_v33  ;;  %347 = vadd.xlane.f32.xlu1 %v346_v40  ;;  %v314_v41 = vpop.xlane.xlu0 %313  ;;  %v317_v42 = vpop.xlane.xlu1 %316 }
  0xac   : > { %v325_v44 = vmul.f32 0.03125, %v314_v41  ;;  %v326_v45 = vmul.f32 0.03125, %v317_v42  ;;  %v339_v46 = vmul.f32 %v1211_v38, %v1211_v38  ;;  %v340_v47 = vmul.f32 %v1214_v39, %v1214_v39 }
  0xae   : > { %v1223_v48 = vsub.f32 %v1180_v12, %v325_v44  ;;  %v1226_v49 = vsub.f32 %v1182_v13, %v326_v45  ;;  %v355_v50 = vsel %vm293_vm0, %v339_v46, 0.0  ;;  %v358_v51 = vsel %vm293_vm0, %v340_v47, 0.0 }
  0xaf   : > { %353 = vadd.xlane.f32.xlu1 %v352_v43  ;;  %356 = vadd.xlane.f32.xlu0 %v355_v50 }
  0xb0   : > { %v341_v52 = vmul.f32 %v1223_v48, %v1223_v48  ;;  %v342_v53 = vmul.f32 %v1226_v49, %v1226_v49 }
  0xb2   : > { %v361_v54 = vsel %vm293_vm0, %v341_v52, 0.0  ;;  %v364_v55 = vsel %vm293_vm0, %v342_v53, 0.0 }
  0xb3   : > { %359 = vadd.xlane.f32.xlu1 %v358_v51  ;;  %362 = vadd.xlane.f32.xlu0 %v361_v54 }
  0xb7   : > { %365 = vadd.xlane.f32.xlu1 %v364_v55 }
 0x134   : > { %v345_v58 = vpop.xlane.xlu0 %344 }
 0x135   : > { %v367_v59 = vmul.f32 0.03125, %v345_v58 }
 0x137   : > { %v375_v60 = vadd.f32 1e-05, %v367_v59 }
 0x138   : > { %v348_v61 = vpop.xlane.xlu1 %347  ;;  %v351_v62 = vpop.xlane.xlu0 %350 }
 0x139   : > { %1044 = vrsqrt.f32 %v375_v60  ;;  %v368_v63 = vmul.f32 0.03125, %v348_v61  ;;  %v369_v3 = vmul.f32 0.03125, %v351_v62 }
 0x13b   : > { %v376_v4 = vadd.f32 1e-05, %v368_v63  ;;  %v377_v6 = vadd.f32 1e-05, %v369_v3 }
 0x13c   : > { %v354_v7 = vpop.xlane.xlu1 %353  ;;  %v357_v10 = vpop.xlane.xlu0 %356 }
 0x13d   : > { %1046 = vrsqrt.f32 %v376_v4  ;;  %v370_v11 = vmul.f32 0.03125, %v354_v7  ;;  %v371_v14 = vmul.f32 0.03125, %v357_v10  ;;  %v1039_v7 = vld [vmem:[%s1446_s4 + $0x18] sm:$0xff]   ;;  %v1040_v10 = vld [vmem:[%s1446_s4 + $0x20] sm:$0xff]  }
 0x13e   : > { %1048 = vrsqrt.f32 %v377_v6  ;;  %v1038_v6 = vld [vmem:[%s1446_s4 + $0x10] sm:$0xff]  }
 0x13f   : > { %v378_v15 = vadd.f32 1e-05, %v370_v11  ;;  %v379_v16 = vadd.f32 1e-05, %v371_v14  ;;  %v1041_v11 = vld [vmem:[%s1446_s4 + $0x28] sm:$0xff]   ;;  %v1042_v14 = vld [vmem:[%s1446_s4 + $0x30] sm:$0xff]  }
 0x140   : > { %v360_v17 = vpop.xlane.xlu1 %359  ;;  %v363_v18 = vpop.xlane.xlu0 %362 }
 0x141   : > { %1050 = vrsqrt.f32 %v378_v15  ;;  %v372_v19 = vmul.f32 0.03125, %v360_v17  ;;  %v373_v22 = vmul.f32 0.03125, %v363_v18  ;;  %v1043_v15 = vld [vmem:[%s1446_s4 + $0x38] sm:$0xff]  }
 0x142   : > { %1052 = vrsqrt.f32 %v379_v16  ;;  %v952_v16 = vld [vmem:[%s1445_s3] ss:$0 sm:$0xff] }
 0x143   : > { %v1045_v23 = vpop.eup %1044  ;;  %v380_v24 = vadd.f32 1e-05, %v372_v19  ;;  %v381_v25 = vadd.f32 1e-05, %v373_v22 }
 0x144   : > { %v366_v26 = vpop.xlane.xlu1 %365  ;;  %v391_v27 = vmul.f32 %v1045_v23, %v1189_v20  ;;  %v951_v20 = vld [vmem:[%s1443_s1 + $0x1] ss:$0 sm:$0xff] }
 0x145   : > { %1054 = vrsqrt.f32 %v380_v24  ;;  %v374_v30 = vmul.f32 0.03125, %v366_v26 }
 0x146   : > { %1056 = vrsqrt.f32 %v381_v25  ;;  %v403_v36 = vmul.f32 %v950_v31, %v391_v27 }
 0x147   : > { %v1047_v32 = vpop.eup %1046  ;;  %v382_v33 = vadd.f32 1e-05, %v374_v30 }
 0x148   : > { %v1049_v34 = vpop.eup %1048  ;;  %v392_v35 = vmul.f32 %v1047_v32, %v1199_v28  ;;  %v415_v44 = vadd.f32 %v951_v20, %v403_v36 }
 0x149   : > { %v393_v37 = vmul.f32 %v1049_v34, %v1192_v21  ;;  %1058 = vrsqrt.f32 %v382_v33 }
 0x14a   : > { %v404_v40 = vmul.f32 %v950_v31, %v392_v35 }
 0x14b   : > { %v1051_v41 = vpop.eup %1050  ;;  %v405_v46 = vmul.f32 %v950_v31, %v393_v37 }
 0x14c   : > { %v1053_v42 = vpop.eup %1052  ;;  %v394_v43 = vmul.f32 %v1051_v41, %v1202_v29  ;;  %v416_v45 = vadd.f32 %v951_v20, %v404_v40 }
 0x14d   : > { %v395_v47 = vmul.f32 %v1053_v42, %v1211_v38  ;;  %v417_v53 = vadd.f32 %v951_v20, %v405_v46 }
 0x14e   : > { %v423_v50 = vpack.c.bf16 %v416_v45, %v415_v44  ;;  %v406_v28 = vmul.f32 %v950_v31, %v394_v43 }
 0x14f   : > { %v1055_v51 = vpop.eup %1054  ;;  %v407_v55 = vmul.f32 %v950_v31, %v395_v47 }
 0x150   : > { %v1057_v52 = vpop.eup %1056  ;;  %v396_v21 = vmul.f32 %v1055_v51, %v1214_v39  ;;  %994 = vmatprep.mubr.msk.bf16.mxu0 %vm293_vm0, %v423_v50  ;;  %v418_v54 = vadd.f32 %v951_v20, %v406_v28 }
 0x151   : > { %v397_v56 = vmul.f32 %v1057_v52, %v1223_v48  ;;  %v419_v38 = vadd.f32 %v951_v20, %v407_v55  ;;  %v1036_v48 = vld [vmem:[%s1446_s4] sm:$0xff]  }
 0x152   : > { %v424_v57 = vpack.c.bf16 %v418_v54, %v417_v53  ;;  %v408_v29 = vmul.f32 %v950_v31, %v396_v21  ;;  %1002 = vmatprep.subr.bf16.mxu1 %v1036_v48 }
 0x153   : > { %v1059_v58 = vpop.eup %1058  ;;  %v409_v61 = vmul.f32 %v950_v31, %v397_v56  ;;  %1003 = vmatpush3.bf16.msra.mxu1 %v1036_v48 }
 0x154   : > { %v398_v59 = vmul.f32 %v1059_v58, %v1226_v49  ;;  %995 = vmatmul.mubr.msk.bf16.vlgmr.msra.gmra.mrb[0].mxu0 %vm293_vm0, %v424_v57  ;;  %v420_v60 = vadd.f32 %v951_v20, %v408_v29  ;;  %v1037_v49 = vld [vmem:[%s1446_s4 + $0x8] sm:$0xff]  }
 0x155   : > { %v421_v39 = vadd.f32 %v951_v20, %v409_v61  ;;  %1004 = vmatprep.subr.bf16.mxu1 %v1037_v49 }
 0x156   : > { %v425_v62 = vpack.c.bf16 %v420_v60, %v419_v38  ;;  %v410_v63 = vmul.f32 %v950_v31, %v398_v59 }
 0x157   : > { %1005 = vmatpush3.bf16.msra.mxu1 %v1037_v49 }
 0x158   : > { %998 = vmatprep.mubr.msk.bf16.mxu0 %vm293_vm0, %v425_v62  ;;  %v422_v3 = vadd.f32 %v951_v20, %v410_v63  ;;  %1006 = vmatprep.subr.bf16.mxu1 %v1038_v6 }
 0x15a   : > { %v426_v4 = vpack.c.bf16 %v422_v3, %v421_v39 }
 0x15b   : > { %1007 = vmatpush3.bf16.msra.mxu1 %v1038_v6 }
 0x15c   : > { %999 = vmatmul.mubr.msk.bf16.gmra.mrb[4].mxu0 %vm293_vm0, %v426_v4  ;;  %1008 = vmatprep.subr.bf16.mxu1 %v1039_v7 }
 0x15f   : > { %1009 = vmatpush3.bf16.msra.mxu1 %v1039_v7 }
 0x160   : > { %1010 = vmatprep.subr.bf16.mxu1 %v1040_v10 }
 0x163   : > { %1011 = vmatpush3.bf16.msra.mxu1 %v1040_v10 }
 0x164   : > { %1012 = vmatprep.subr.bf16.mxu1 %v1041_v11 }
 0x167   : > { %1013 = vmatpush3.bf16.msra.mxu1 %v1041_v11 }
 0x168   : > { %1014 = vmatprep.subr.bf16.mxu1 %v1042_v14 }
 0x16b   : > { %1015 = vmatpush3.bf16.msra.mxu1 %v1042_v14 }
 0x16c   : > { %1016 = vmatprep.subr.bf16.mxu1 %v1043_v15 }
 0x16f   : > { %1017 = vmatpush3.bf16.msra.mxu1 %v1043_v15 }
 0x227   : > { %v996_v17 = vpop.f32.mrb[0].mxu0 }
 0x228   : > { %v1287_v18 = vadd.f32 %v996_v17, %v952_v16  ;;  %v496_v19 = vpop.f32.mrb[1].mxu0 }
 0x229   : > { %v1289_v22 = vadd.f32 %v952_v16, %v496_v19  ;;  %v997_v23 = vpop.f32.mrb[2].mxu0 }
 0x22a   : > { %v529_v24 = vmul.f32 %v1287_v18, %v1287_v18  ;;  %v1293_v25 = vadd.f32 %v997_v23, %v952_v16  ;;  %v499_v26 = vpop.f32.mrb[3].mxu0 }
 0x22b   : > { %v527_v27 = vmul.f32 %v1289_v22, %v1289_v22  ;;  %v1297_v30 = vadd.f32 %v952_v16, %v499_v26 }
 0x22c   : > { %v537_v31 = vmul.f32 %v529_v24, %v1287_v18  ;;  %v530_v32 = vmul.f32 %v1293_v25, %v1293_v25 }
 0x22d   : > { %v535_v33 = vmul.f32 %v527_v27, %v1289_v22  ;;  %v528_v34 = vmul.f32 %v1297_v30, %v1297_v30 }
 0x22e   : > { %v545_v35 = vmul.f32 0.044715, %v537_v31  ;;  %v538_v36 = vmul.f32 %v530_v32, %v1293_v25 }
 0x22f   : > { %v543_v37 = vmul.f32 0.044715, %v535_v33  ;;  %v536_v20 = vmul.f32 %v528_v34, %v1297_v30  ;;  %v1000_v40 = vpop.f32.mrb[4].mxu0 }
 0x230   : > { %v553_v41 = vadd.f32 %v545_v35, %v1287_v18  ;;  %v546_v42 = vmul.f32 0.044715, %v538_v36  ;;  %v1308_v43 = vadd.f32 %v1000_v40, %v952_v16  ;;  %v512_v44 = vpop.f32.mrb[5].mxu0 }
 0x231   : > { %v544_v45 = vmul.f32 0.044715, %v536_v20  ;;  %v1310_v46 = vadd.f32 %v952_v16, %v512_v44  ;;  %v1001_v47 = vpop.f32.mrb[6].mxu0  ;;  %v551_v50 = vadd.f32 %v543_v37, %v1289_v22 }
 0x232   : > { %v561_v28 = vmul.f32 0.7978846, %v553_v41  ;;  %v554_v51 = vadd.f32 %v546_v42, %v1293_v25  ;;  %v533_v52 = vmul.f32 %v1308_v43, %v1308_v43  ;;  %v1316_v21 = vadd.f32 %v1001_v47, %v952_v16  ;;  %v515_v53 = vpop.f32.mrb[7].mxu0 }
 0x233   : > { %v531_v54 = vmul.f32 %v1310_v46, %v1310_v46  ;;  %v1320_v55 = vadd.f32 %v952_v16, %v515_v53  ;;  %v552_v56 = vadd.f32 %v544_v45, %v1297_v30  ;;  %v559_v57 = vmul.f32 0.7978846, %v551_v50 }
 0x234   : > { %1060 = vtanh.f32 %v561_v28  ;;  %v562_v29 = vmul.f32 0.7978846, %v554_v51  ;;  %v541_v58 = vmul.f32 %v533_v52, %v1308_v43  ;;  %v534_v59 = vmul.f32 %v1316_v21, %v1316_v21 }
 0x235   : > { %v539_v38 = vmul.f32 %v531_v54, %v1310_v46  ;;  %v532_v60 = vmul.f32 %v1320_v55, %v1320_v55  ;;  %v560_v61 = vmul.f32 0.7978846, %v552_v56  ;;  %1062 = vtanh.f32 %v559_v57 }
 0x236   : > { %1064 = vtanh.f32 %v562_v29  ;;  %v549_v62 = vmul.f32 0.044715, %v541_v58  ;;  %v542_v63 = vmul.f32 %v534_v59, %v1316_v21 }
 0x237   : > { %v547_v39 = vmul.f32 0.044715, %v539_v38  ;;  %v540_v3 = vmul.f32 %v532_v60, %v1320_v55  ;;  %1066 = vtanh.f32 %v560_v61  ;;  %v959_v60 = vld [vmem:[%s1447_s5] ss:$0 sm:$0xff] }
 0x238   : > { %v557_v4 = vadd.f32 %v549_v62, %v1308_v43  ;;  %v550_v48 = vmul.f32 0.044715, %v542_v63 }
 0x239   : > { %v555_v49 = vadd.f32 %v547_v39, %v1310_v46  ;;  %v548_v6 = vmul.f32 0.044715, %v540_v3 }
 0x23a   : > { %v565_v7 = vmul.f32 0.7978846, %v557_v4  ;;  %v558_v10 = vadd.f32 %v550_v48, %v1316_v21 }
 0x23b   : > { %v563_v11 = vmul.f32 0.7978846, %v555_v49  ;;  %v556_v14 = vadd.f32 %v548_v6, %v1320_v55 }
 0x23c   : > { %1068 = vtanh.f32 %v565_v7  ;;  %v566_v15 = vmul.f32 0.7978846, %v558_v10 }
 0x23d   : > { %1070 = vtanh.f32 %v563_v11  ;;  %v564_v16 = vmul.f32 0.7978846, %v556_v14 }
 0x23e   : > { %v1061_v17 = vpop.eup %1060  ;;  %1072 = vtanh.f32 %v566_v15 }
 0x23f   : > { %v1063_v19 = vpop.eup %1062  ;;  %1074 = vtanh.f32 %v564_v16  ;;  %v577_v23 = vadd.f32 1.0, %v1061_v17 }
 0x240   : > { %v1065_v24 = vpop.eup %1064  ;;  %v575_v26 = vadd.f32 1.0, %v1063_v19 }
 0x241   : > { %v1067_v27 = vpop.eup %1066  ;;  %v578_v31 = vadd.f32 1.0, %v1065_v24  ;;  %v585_v32 = vmul.f32 0.5, %v577_v23 }
 0x242   : > { %v576_v33 = vadd.f32 1.0, %v1067_v27  ;;  %v583_v34 = vmul.f32 0.5, %v575_v26 }
 0x243   : > { %v586_v35 = vmul.f32 0.5, %v578_v31  ;;  %v593_v37 = vmul.f32 %v585_v32, %v1287_v18 }
 0x244   : > { %v584_v36 = vmul.f32 0.5, %v576_v33  ;;  %v591_v41 = vmul.f32 %v583_v34, %v1289_v22 }
 0x245   : > { %v594_v20 = vmul.f32 %v586_v35, %v1293_v25 }
 0x246   : > { %v1069_v40 = vpop.eup %1068  ;;  %v592_v42 = vmul.f32 %v584_v36, %v1297_v30 }
 0x247   : > { %v1071_v44 = vpop.eup %1070  ;;  %v600_v45 = vpack.c.bf16 %v594_v20, %v593_v37  ;;  %v581_v47 = vadd.f32 1.0, %v1069_v40 }
 0x248   : > { %v1073_v50 = vpop.eup %1072  ;;  %v599_v28 = vpack.c.bf16 %v592_v42, %v591_v41  ;;  %v579_v51 = vadd.f32 1.0, %v1071_v44 }
 0x249   : > { %v1075_v52 = vpop.eup %1074  ;;  %v582_v53 = vadd.f32 1.0, %v1073_v50  ;;  %v589_v54 = vmul.f32 0.5, %v581_v47 }
 0x24a   : > { %1018 = vmatprep.mubr.bf16.mxu1 %v599_v28  ;;  %v580_v56 = vadd.f32 1.0, %v1075_v52  ;;  %v587_v57 = vmul.f32 0.5, %v579_v51 }
 0x24b   : > { %1019 = vmatmul.mubr.bf16.vlgmr.msra.gmra.mrb[0].mxu1 %v600_v45  ;;  %v590_v18 = vmul.f32 0.5, %v582_v53  ;;  %v597_v29 = vmul.f32 %v589_v54, %v1308_v43 }
 0x24c   : > { %v588_v25 = vmul.f32 0.5, %v580_v56  ;;  %v595_v30 = vmul.f32 %v587_v57, %v1310_v46 }
 0x24d   : > { %v598_v22 = vmul.f32 %v590_v18, %v1316_v21 }
 0x24e   : > { %v596_v58 = vmul.f32 %v588_v25, %v1320_v55 }
 0x24f   : > { %v602_v59 = vpack.c.bf16 %v598_v22, %v597_v29 }
 0x250   : > { %v601_v38 = vpack.c.bf16 %v596_v58, %v595_v30 }
 0x252   : > { %1022 = vmatprep.mubr.bf16.mxu1 %v601_v38 }
 0x253   : > { %1023 = vmatmul.mubr.bf16.gmra.mrb[4].mxu1 %v602_v59 }
 0x31e   : > { %v1020_v61 = vpop.f32.mrb[0].mxu1 }
 0x31f   : > { %v717_v62 = vadd.f32 %v1020_v61, %v959_v60  ;;  %v708_v63 = vpop.f32.mrb[1].mxu1 }
 0x320   : > { %v709_v39 = vadd.f32 %v959_v60, %v708_v63  ;;  %v1021_v3 = vpop.f32.mrb[2].mxu1 }
 0x321   : > { %v720_v43 = vadd.f32 %v1021_v3, %v959_v60  ;;  %v711_v4 = vpop.f32.mrb[3].mxu1  ;;  %v741_v21 = vadd.f32 %v717_v62, %v1158_v1 }
 0x322   : > { %v712_v46 = vadd.f32 %v959_v60, %v711_v4  ;;  %v739_v49 = vadd.f32 %v709_v39, %v1156_v0 }
 0x323   : > { %v755_v55 = vsel %vm293_vm0, %v741_v21, 0.0  ;;  %v742_v48 = vadd.f32 %v720_v43, %v1166_v5 }
 0x324   : > { %756 = vadd.xlane.f32.xlu0 %v755_v55  ;;  %v740_v7 = vadd.f32 %v712_v46, %v1160_v2  ;;  %v749_v14 = vsel %vm293_vm0, %v739_v49, 0.0 }
 0x325   : > { %v758_v6 = vsel %vm293_vm0, %v742_v48, 0.0 }
 0x326   : > { %759 = vadd.xlane.f32.xlu1 %v758_v6  ;;  %v1024_v10 = vpop.f32.mrb[4].mxu1  ;;  %v752_v19 = vsel %vm293_vm0, %v740_v7, 0.0 }
 0x327   : > { %v724_v11 = vpop.f32.mrb[5].mxu1  ;;  %v733_v15 = vadd.f32 %v1024_v10, %v959_v60 }
 0x328   : > { %v725_v16 = vadd.f32 %v959_v60, %v724_v11  ;;  %750 = vadd.xlane.f32.xlu0 %v749_v14  ;;  %v1025_v1 = vpop.f32.mrb[6].mxu1 }
 0x329   : > { %v727_v17 = vpop.f32.mrb[7].mxu1  ;;  %v736_v5 = vadd.f32 %v1025_v1, %v959_v60  ;;  %v745_v26 = vadd.f32 %v733_v15, %v1180_v12 }
 0x32a   : > { %v728_v23 = vadd.f32 %v959_v60, %v727_v17  ;;  %753 = vadd.xlane.f32.xlu1 %v752_v19  ;;  %v743_v0 = vadd.f32 %v725_v16, %v1172_v8 }
 0x32b   : > { %v746_v31 = vadd.f32 %v736_v5, %v1182_v13  ;;  %v767_v32 = vsel %vm293_vm0, %v745_v26, 0.0 }
 0x32c   : > { %v761_v24 = vsel %vm293_vm0, %v743_v0, 0.0  ;;  %v744_v2 = vadd.f32 %v728_v23, %v1174_v9 }
 0x32d   : > { %762 = vadd.xlane.f32.xlu0 %v761_v24  ;;  %v770_v33 = vsel %vm293_vm0, %v746_v31, 0.0 }
 0x32e   : > { %v764_v27 = vsel %vm293_vm0, %v744_v2, 0.0 }
 0x32f   : > { %765 = vadd.xlane.f32.xlu1 %v764_v27 }
 0x331   : > { %768 = vadd.xlane.f32.xlu0 %v767_v32 }
 0x333   : > { %771 = vadd.xlane.f32.xlu1 %v770_v33 }
 0x3b1   : > { %v757_v34 = vpop.xlane.xlu0 %756 }
 0x3b2   : > { %v775_v8 = vmul.f32 0.03125, %v757_v34 }
 0x3b3   : > { %v760_v35 = vpop.xlane.xlu1 %759 }
 0x3b4   : > { %v1362_v36 = vsub.f32 %v741_v21, %v775_v8  ;;  %v776_v9 = vmul.f32 0.03125, %v760_v35 }
 0x3b5   : > { %v751_v37 = vpop.xlane.xlu0 %750 }
 0x3b6   : > { %v1364_v12 = vsub.f32 %v742_v48, %v776_v9  ;;  %v773_v20 = vmul.f32 0.03125, %v751_v37  ;;  %v791_v13 = vmul.f32 %v1362_v36, %v1362_v36  ;;  %v969_v9 = vld [vmem:[%s1448_s6 + $0x1] ss:$0 sm:$0xff] }
 0x3b7   : > { %v754_v40 = vpop.xlane.xlu1 %753 }
 0x3b8   : > { %v1368_v41 = vsub.f32 %v739_v49, %v773_v20  ;;  %v774_v42 = vmul.f32 0.03125, %v754_v40  ;;  %v803_v44 = vsel %vm293_vm0, %v791_v13, 0.0  ;;  %v792_v45 = vmul.f32 %v1364_v12, %v1364_v12 }
 0x3b9   : > { %804 = vadd.xlane.f32.xlu0 %v803_v44 }
 0x3ba   : > { %v1373_v47 = vsub.f32 %v740_v7, %v774_v42  ;;  %v763_v50 = vpop.xlane.xlu0 %762  ;;  %v806_v28 = vsel %vm293_vm0, %v792_v45, 0.0  ;;  %v789_v51 = vmul.f32 %v1368_v41, %v1368_v41 }
 0x3bb   : > { %v777_v52 = vmul.f32 0.03125, %v763_v50  ;;  %807 = vadd.xlane.f32.xlu1 %v806_v28 }
 0x3bc   : > { %v766_v53 = vpop.xlane.xlu1 %765  ;;  %v797_v54 = vsel %vm293_vm0, %v789_v51, 0.0  ;;  %v790_v56 = vmul.f32 %v1373_v47, %v1373_v47 }
 0x3bd   : > { %v1381_v57 = vsub.f32 %v743_v0, %v777_v52  ;;  %v778_v18 = vmul.f32 0.03125, %v766_v53  ;;  %798 = vadd.xlane.f32.xlu0 %v797_v54 }
 0x3be   : > { %v769_v25 = vpop.xlane.xlu0 %768  ;;  %v800_v29 = vsel %vm293_vm0, %v790_v56, 0.0 }
 0x3bf   : > { %v1384_v22 = vsub.f32 %v744_v2, %v778_v18  ;;  %v779_v30 = vmul.f32 0.03125, %v769_v25  ;;  %801 = vadd.xlane.f32.xlu1 %v800_v29  ;;  %v793_v58 = vmul.f32 %v1381_v57, %v1381_v57 }
 0x3c0   : > { %v772_v59 = vpop.xlane.xlu1 %771 }
 0x3c1   : > { %v1388_v38 = vsub.f32 %v745_v26, %v779_v30  ;;  %v780_v60 = vmul.f32 0.03125, %v772_v59  ;;  %v809_v61 = vsel %vm293_vm0, %v793_v58, 0.0  ;;  %v794_v62 = vmul.f32 %v1384_v22, %v1384_v22 }
 0x3c2   : > { %810 = vadd.xlane.f32.xlu0 %v809_v61 }
 0x3c3   : > { %v1393_v63 = vsub.f32 %v746_v31, %v780_v60  ;;  %v812_v39 = vsel %vm293_vm0, %v794_v62, 0.0  ;;  %v795_v3 = vmul.f32 %v1388_v38, %v1388_v38  ;;  %v968_v31 = vld [vmem:[%s1448_s6] ss:$0 sm:$0xff] }
 0x3c4   : > { %813 = vadd.xlane.f32.xlu1 %v812_v39 }
 0x3c5   : > { %v815_v43 = vsel %vm293_vm0, %v795_v3, 0.0  ;;  %v796_v4 = vmul.f32 %v1393_v63, %v1393_v63 }
 0x3c6   : > { %816 = vadd.xlane.f32.xlu0 %v815_v43 }
 0x3c7   : > { %v818_v21 = vsel %vm293_vm0, %v796_v4, 0.0 }
 0x3c8   : > { %819 = vadd.xlane.f32.xlu1 %v818_v21 }
 0x446   : > { %v805_v46 = vpop.xlane.xlu0 %804 }
 0x447   : > { %v823_v55 = vmul.f32 0.03125, %v805_v46 }
 0x448   : > { %v808_v48 = vpop.xlane.xlu1 %807 }
 0x449   : > { %v831_v49 = vadd.f32 1e-05, %v823_v55  ;;  %v824_v6 = vmul.f32 0.03125, %v808_v48 }
 0x44a   : > { %v799_v7 = vpop.xlane.xlu0 %798 }
 0x44b   : > { %1076 = vrsqrt.f32 %v831_v49  ;;  %v832_v10 = vadd.f32 1e-05, %v824_v6  ;;  %v821_v11 = vmul.f32 0.03125, %v799_v7 }
 0x44c   : > { %v802_v14 = vpop.xlane.xlu1 %801 }
 0x44d   : > { %1078 = vrsqrt.f32 %v832_v10  ;;  %v829_v15 = vadd.f32 1e-05, %v821_v11  ;;  %v822_v16 = vmul.f32 0.03125, %v802_v14 }
 0x44f   : > { %1080 = vrsqrt.f32 %v829_v15  ;;  %v830_v1 = vadd.f32 1e-05, %v822_v16  ;;  %v811_v17 = vpop.xlane.xlu0 %810 }
 0x450   : > { %v825_v19 = vmul.f32 0.03125, %v811_v17 }
 0x451   : > { %1082 = vrsqrt.f32 %v830_v1  ;;  %v814_v5 = vpop.xlane.xlu1 %813 }
 0x452   : > { %v833_v23 = vadd.f32 1e-05, %v825_v19  ;;  %v826_v0 = vmul.f32 0.03125, %v814_v5 }
 0x453   : > { %v817_v24 = vpop.xlane.xlu0 %816 }
 0x454   : > { %1084 = vrsqrt.f32 %v833_v23  ;;  %v834_v2 = vadd.f32 1e-05, %v826_v0  ;;  %v827_v26 = vmul.f32 0.03125, %v817_v24 }
 0x455   : > { %v1077_v27 = vpop.eup %1076  ;;  %v820_v32 = vpop.xlane.xlu1 %819 }
 0x456   : > { %v847_v33 = vmul.f32 %v1077_v27, %v1362_v36  ;;  %1086 = vrsqrt.f32 %v834_v2  ;;  %v835_v34 = vadd.f32 1e-05, %v827_v26  ;;  %v828_v8 = vmul.f32 0.03125, %v820_v32 }
 0x457   : > { %v1079_v35 = vpop.eup %1078 }
 0x458   : > { %v859_v37 = vmul.f32 %v968_v31, %v847_v33  ;;  %v848_v20 = vmul.f32 %v1079_v35, %v1364_v12  ;;  %1088 = vrsqrt.f32 %v835_v34  ;;  %v836_v13 = vadd.f32 1e-05, %v828_v8 }
 0x459   : > { %v1081_v40 = vpop.eup %1080 }
 0x45a   : > { %v871_v36 = vadd.f32 %v969_v9, %v859_v37  ;;  %v860_v42 = vmul.f32 %v968_v31, %v848_v20  ;;  %v845_v44 = vmul.f32 %v1081_v40, %v1368_v41  ;;  %1090 = vrsqrt.f32 %v836_v13 }
 0x45b   : > { %v1083_v45 = vpop.eup %1082 }
 0x45c   : > { %879 = vst.msk [vmem:[%s1415_s22 + $0x10] sm:$0xff] %vm293_vm0, %v871_v36  ;;  %v872_v12 = vadd.f32 %v969_v9, %v860_v42  ;;  %v857_v50 = vmul.f32 %v968_v31, %v845_v44  ;;  %v846_v28 = vmul.f32 %v1083_v45, %v1373_v47 }
 0x45e   : > { %v1085_v51 = vpop.eup %1084  ;;  %880 = vst.msk [vmem:[%s1415_s22 + $0x18] sm:$0xff] %vm293_vm0, %v872_v12  ;;  %v869_v52 = vadd.f32 %v969_v9, %v857_v50  ;;  %v858_v53 = vmul.f32 %v968_v31, %v846_v28 }
 0x45f   : > { %v849_v54 = vmul.f32 %v1085_v51, %v1381_v57 }
 0x460   : > { %v1087_v56 = vpop.eup %1086  ;;  %877 = vst.msk [vmem:[%s1415_s22] sm:$0xff] %vm293_vm0, %v869_v52  ;;  %v870_v41 = vadd.f32 %v969_v9, %v858_v53 }
 0x461   : > { %v861_v18 = vmul.f32 %v968_v31, %v849_v54  ;;  %v850_v25 = vmul.f32 %v1087_v56, %v1384_v22 }
 0x462   : > { %v1089_v29 = vpop.eup %1088  ;;  %878 = vst.msk [vmem:[%s1415_s22 + $0x8] sm:$0xff] %vm293_vm0, %v870_v41 }
 0x463   : > { %v873_v47 = vadd.f32 %v969_v9, %v861_v18  ;;  %v862_v30 = vmul.f32 %v968_v31, %v850_v25  ;;  %v851_v58 = vmul.f32 %v1089_v29, %v1388_v38 }
 0x464   : > { %v1091_v59 = vpop.eup %1090 }
 0x465   : > { %881 = vst.msk [vmem:[%s1415_s22 + $0x20] sm:$0xff] %vm293_vm0, %v873_v47  ;;  %v874_v57 = vadd.f32 %v969_v9, %v862_v30  ;;  %v863_v60 = vmul.f32 %v968_v31, %v851_v58  ;;  %v852_v61 = vmul.f32 %v1091_v59, %v1393_v63 }
 0x467   : > { %882 = vst.msk [vmem:[%s1415_s22 + $0x28] sm:$0xff] %vm293_vm0, %v874_v57  ;;  %v875_v62 = vadd.f32 %v969_v9, %v863_v60  ;;  %v864_v39 = vmul.f32 %v968_v31, %v852_v61 }
 0x469   : > { %883 = vst.msk [vmem:[%s1415_s22 + $0x30] sm:$0xff] %vm293_vm0, %v875_v62  ;;  %v876_v22 = vadd.f32 %v969_v9, %v864_v39 }
 0x46b   : > { %884 = vst.msk [vmem:[%s1415_s22 + $0x38] sm:$0xff] %vm293_vm0, %v876_v22 }
 0x46c PF: > { %s17_s24 = sadd.s32 1, %s1098_s24  }
 0x46d   : > { %p14_p4 = scmp.ge.s32.totalorder %s17_s24, 4  }
 0x46f   :  { %16 = sbr.rel (!%p14_p4) target bundleno = 1 (0x1), region = 78 }

// kernel: lwca_forward.2
= control target key start
LH: loop header
LB: loop body
LE: loop exit
PB: predicated region body
PF: predicated region fallthrough
CT: control target
= control target key end

     0   :  { %s5853_s18 = smov 0   ;;  %s6974_s0 = inlined_call_operand.vmem [shape: bf16[8,16,16], index: 0, kind: input, shape index: {}]   ;;  %s6975_s1 = inlined_call_operand.vmem [shape: bf16[8,16,16], index: 1, kind: input, shape index: {}]   ;;  %s6976_s2 = inlined_call_operand.vmem [shape: bf16[16,32], index: 2, kind: input, shape index: {}]   ;;  %s6977_s3 = inlined_call_operand.vmem [shape: f32[1,32], index: 3, kind: input, shape index: {}]   ;;  %s6978_s4 = inlined_call_operand.vmem [shape: f32[2,32], index: 4, kind: input, shape index: {}]   ;;  %s6979_s5 = inlined_call_operand.vmem [shape: f32[2,32], index: 5, kind: input, shape index: {}]   ;;  %s6980_s6 = inlined_call_operand.vmem [shape: bf16[4,32,8], index: 6, kind: input, shape index: {}]   ;;  %s6981_s7 = inlined_call_operand.vmem [shape: f32[4,1,8], index: 7, kind: input, shape index: {}]   ;;  %s6982_s8 = inlined_call_operand.vmem [shape: bf16[4,32,8], index: 8, kind: input, shape index: {}]   ;;  %s6983_s9 = inlined_call_operand.vmem [shape: f32[4,1,8], index: 9, kind: input, shape index: {}]   ;;  %s6984_s10 = inlined_call_operand.vmem [shape: bf16[4,32,8], index: 10, kind: input, shape index: {}]   ;;  %s6985_s11 = inlined_call_operand.vmem [shape: f32[4,1,8], index: 11, kind: input, shape index: {}]   ;;  %s6986_s12 = inlined_call_operand.vmem [shape: f32[4,16,16], index: 12, kind: input, shape index: {}]   ;;  %s6987_s13 = inlined_call_operand.vmem [shape: bf16[4,8,32], index: 13, kind: input, shape index: {}]   ;;  %s6988_s14 = inlined_call_operand.vmem [shape: f32[1,32], index: 14, kind: input, shape index: {}]   ;;  %s6989_s15 = inlined_call_operand.vmem [shape: f32[8,16,32], index: 15, kind: output, shape index: {}]  }
   0x1 LB: > { %s4708_s19 = sadd.s32 4294967295, %s5769_s18   ;;  %p4712_p0 = scmp.ge.s32.totalorder %s5769_s18, 1  ;;  %s5769_s18 = sphi %s5853_s18, %s25_s18  }
   0x2   : > { %p451_p1 = scmp.lt.s32.totalorder %s5769_s18, 3 }
   0x4   : > { %p452_p2 = pnand %p4712_p0, %p451_p1 }
   0x5   : > { %v5538_v0 = vld [vmem:[%s6976_s2] sm:$0xff] (!%p452_p2)   ;;  %s4713_s22 = sshll.u32 (!%p452_p2), %s4708_s19, 2  ;;  %vm580_vm0 = vcmask (!%p452_p2), 130048   ;;  %vm757_vm1 = vcmask (!%p452_p2), 261120   ;;  %vm5772_vm2 = vmmov (!%p452_p2), 0   ;;  %vm1567_vm3 = vcmask (!%p452_p2), 64512  }
   0x6   : > { %455 = sbr.rel (%p452_p2) target bundleno = 4672 (0x1240), region = 80  ;;  %p508_p3 = scmp.lt.s32.totalorder (!%p452_p2), %s4713_s22, 7  ;;  %5498 = vmatprep.subr.bf16.mxu1 (!%p452_p2), %v5538_v0  ;;  %5102 = vmatprep.subr.bf16.mxu0 (!%p452_p2), %v5538_v0  ;;  %v4722_v17 = vld [vmem:[%s6977_s3] ss:$0 sm:$0xff] (!%p452_p2)  ;;  %vm2788_vm4 = vcmask (!%p452_p2), 1043456  }
   0x7   : > { %5499 = vmatpush3.bf16.msra.mxu1 (!%p452_p2), %v5538_v0  ;;  %5103 = vmatpush3.bf16.msra.mxu0 (!%p452_p2), %v5538_v0 }
   0x8   : > { %5112 = vmatprep.subr.bf16.mxu1 (!%p452_p2), %v5538_v0 }
   0xd   : > { %s6991_s22 = smov (!%p508_p3, %s4713_s22), 7 }
   0xe   : > { %s4933_s23 = sshll.u32 %s6991_s22, 3  ;;  %s4935_s17 = sshll.u32 %s6991_s22, 4 }
   0xf   : > { %s512_s26 = scalar_lea.vmem %s6974_s0, %s4933_s23  ;;  %s519_s29 = scalar_lea.vmem %s6975_s1, %s4933_s23 }
  0x10   : > { %v5539_v1 = vld [vmem:[%s512_s26 + $0x10] sm:$0xff]   ;;  %v5540_v2 = vld [vmem:[%s512_s26 + $0x18] sm:$0xff]   ;;  %v5541_v3 = vld [vmem:[%s519_s29] sm:$0xff]   ;;  %s526_s24 = scalar_lea.vmem %s6989_s15, %s4935_s17 }
  0x11   : > { %5108 = vmatprep.mubr.msk.bf16.mxu1 %vm580_vm0, %v5539_v1  ;;  %v5543_v4 = vld [vmem:[%s512_s26] sm:$0xff]   ;;  %v5544_v5 = vld [vmem:[%s512_s26 + $0x8] sm:$0xff]   ;;  %v5545_v7 = vld [vmem:[%s519_s29 + $0x10] sm:$0xff]  }
  0x12   : > { %5109 = vmatmul.mubr.msk.bf16.vlgmr.msra.gmra.mrb[0].mxu1 %vm580_vm0, %v5540_v2  ;;  %v5542_v6 = vld [vmem:[%s519_s29 + $0x8] sm:$0xff]   ;;  %5104 = vmatprep.mubr.msk.bf16.mxu0 %vm580_vm0, %v5543_v4  ;;  %v5546_v8 = vld [vmem:[%s519_s29 + $0x18] sm:$0xff]  }
  0x13   : > { %5113 = vmatpush3.bf16.msra.mxu1 %v5538_v0  ;;  %5114 = vmatprep.mubr.msk.bf16.mxu1 %vm580_vm0, %v5541_v3 }
  0x14   : > { %5105 = vmatmul.mubr.msk.bf16.vlgmr.msra.gmra.mrb[0].mxu0 %vm580_vm0, %v5544_v5 }
  0x1a   : > { %5115 = vmatmul.mubr.msk.bf16.vlgmr.msra.gmra.mrb[4].mxu1 %vm580_vm0, %v5542_v6 }
  0x1b   : > { %5118 = vmatprep.mubr.msk.bf16.mxu1 %vm580_vm0, %v5545_v7 }
  0x22   : > { %5119 = vmatmul.mubr.msk.bf16.gmra.mrb[8].mxu1 %vm580_vm0, %v5546_v8 }
  0xe5   : > { %v5110_v9 = vpop.f32.mrb[0].mxu1 }
  0xe6   : > { %v643_v10 = vpop.f32.mrb[1].mxu1  ;;  %v5928_v54 = vadd.f32 %v5110_v9, %v4722_v17 }
  0xe7   : > { %v5111_v11 = vpop.f32.mrb[2].mxu1  ;;  %v5106_v13 = vpop.f32.mrb[0].mxu0  ;;  %v5920_v50 = vadd.f32 %v4722_v17, %v643_v10 }
  0xe8   : > { %v646_v12 = vpop.f32.mrb[3].mxu1  ;;  %v627_v14 = vpop.f32.mrb[1].mxu0  ;;  %v5898_v39 = vadd.f32 %v5106_v13, %v4722_v17  ;;  %v5924_v52 = vadd.f32 %v5111_v11, %v4722_v17  ;;  %v776_v57 = vsel %vm757_vm1, %v5928_v54, 0.0 }
  0xe9   : > { %v5107_v15 = vpop.f32.mrb[2].mxu0  ;;  %v5888_v29 = vadd.f32 %v4722_v17, %v627_v14  ;;  %v5918_v49 = vadd.f32 %v4722_v17, %v646_v12  ;;  %v770_v55 = vsel %vm757_vm1, %v5920_v50, 0.0 }
  0xea   : > { %v630_v16 = vpop.f32.mrb[3].mxu0  ;;  %v5896_v37 = vadd.f32 %v5107_v15, %v4722_v17  ;;  %v764_v43 = vsel %vm757_vm1, %v5898_v39, 0.0  ;;  %v779_v56 = vsel %vm757_vm1, %v5924_v52, 0.0 }
  0xeb   : > { %v5886_v28 = vadd.f32 %v4722_v17, %v630_v16  ;;  %v758_v35 = vsel %vm757_vm1, %v5888_v29, 0.0  ;;  %v773_v53 = vsel %vm757_vm1, %v5918_v49, 0.0 }
  0xec   : > { %v767_v42 = vsel %vm757_vm1, %v5896_v37, 0.0 }
  0xed   : > { %v5116_v18 = vpop.f32.mrb[4].mxu1  ;;  %v761_v33 = vsel %vm757_vm1, %v5886_v28, 0.0 }
  0xee   : > { %v733_v19 = vadd.f32 %v5116_v18, %v4722_v17  ;;  %v724_v20 = vpop.f32.mrb[5].mxu1 }
  0xef   : > { %v725_v21 = vadd.f32 %v4722_v17, %v724_v20  ;;  %v5117_v22 = vpop.f32.mrb[6].mxu1 }
  0xf0   : > { %v736_v23 = vadd.f32 %v5117_v22, %v4722_v17  ;;  %v727_v24 = vpop.f32.mrb[7].mxu1  ;;  %v893_v25 = vsel %vm757_vm1, %v733_v19, 0.0 }
  0xf1   : > { %v728_v26 = vadd.f32 %v4722_v17, %v727_v24  ;;  %894 = vadd.xlane.f32.xlu1 %v893_v25  ;;  %v887_v27 = vsel %vm757_vm1, %v725_v21, 0.0 }
  0xf2   : > { %888 = vadd.xlane.f32.xlu0 %v887_v27  ;;  %v896_v30 = vsel %vm757_vm1, %v736_v23, 0.0 }
  0xf3   : > { %v890_v31 = vsel %vm757_vm1, %v728_v26, 0.0 }
  0xf5   : > { %897 = vadd.xlane.f32.xlu1 %v896_v30  ;;  %v5120_v32 = vpop.f32.mrb[8].mxu1 }
  0xf6   : > { %891 = vadd.xlane.f32.xlu0 %v890_v31  ;;  %v740_v34 = vpop.f32.mrb[9].mxu1  ;;  %v5914_v47 = vadd.f32 %v5120_v32, %v4722_v17 }
  0xf7   : > { %v5121_v36 = vpop.f32.mrb[10].mxu1  ;;  %v5902_v41 = vadd.f32 %v4722_v17, %v740_v34 }
  0xf8   : > { %v743_v38 = vpop.f32.mrb[11].mxu1  ;;  %v5908_v44 = vadd.f32 %v5121_v36, %v4722_v17  ;;  %v905_v51 = vsel %vm757_vm1, %v5914_v47, 0.0 }
  0xf9   : > { %762 = vadd.xlane.f32.xlu1 %v761_v33  ;;  %v5900_v40 = vadd.f32 %v4722_v17, %v743_v38  ;;  %v899_v46 = vsel %vm757_vm1, %v5902_v41, 0.0 }
  0xfa   : > { %759 = vadd.xlane.f32.xlu0 %v758_v35  ;;  %v908_v48 = vsel %vm757_vm1, %v5908_v44, 0.0 }
  0xfb   : > { %v902_v45 = vsel %vm757_vm1, %v5900_v40, 0.0 }
  0xfd   : > { %768 = vadd.xlane.f32.xlu1 %v767_v42 }
  0xfe   : > { %765 = vadd.xlane.f32.xlu0 %v764_v43 }
 0x101   : > { %903 = vadd.xlane.f32.xlu1 %v902_v45 }
 0x102   : > { %900 = vadd.xlane.f32.xlu0 %v899_v46 }
 0x105   : > { %909 = vadd.xlane.f32.xlu1 %v908_v48 }
 0x106   : > { %906 = vadd.xlane.f32.xlu0 %v905_v51 }
 0x109   : > { %774 = vadd.xlane.f32.xlu1 %v773_v53 }
 0x10a   : > { %771 = vadd.xlane.f32.xlu0 %v770_v55 }
 0x10d   : > { %780 = vadd.xlane.f32.xlu1 %v779_v56 }
 0x10e   : > { %777 = vadd.xlane.f32.xlu0 %v776_v57 }
 0x17e   : > { %v895_v58 = vpop.xlane.xlu1 %894 }
 0x17f   : > { %v913_v59 = vmul.f32 0.03125, %v895_v58  ;;  %v889_v60 = vpop.xlane.xlu0 %888 }
 0x180   : > { %v911_v61 = vmul.f32 0.03125, %v889_v60 }
 0x181   : > { %v5936_v62 = vsub.f32 %v733_v19, %v913_v59 }
 0x182   : > { %v5938_v63 = vsub.f32 %v725_v21, %v911_v61  ;;  %v898_v0 = vpop.xlane.xlu1 %897 }
 0x183   : > { %v914_v1 = vmul.f32 0.03125, %v898_v0  ;;  %v892_v2 = vpop.xlane.xlu0 %891  ;;  %v929_v9 = vmul.f32 %v5936_v62, %v5936_v62 }
 0x184   : > { %v912_v3 = vmul.f32 0.03125, %v892_v2  ;;  %v927_v4 = vmul.f32 %v5938_v63, %v5938_v63 }
 0x185   : > { %v5942_v5 = vsub.f32 %v736_v23, %v914_v1  ;;  %v941_v18 = vsel %vm757_vm1, %v929_v9, 0.0 }
 0x186   : > { %v5944_v6 = vsub.f32 %v728_v26, %v912_v3  ;;  %v763_v7 = vpop.xlane.xlu1 %762  ;;  %v935_v8 = vsel %vm757_vm1, %v927_v4, 0.0 }
 0x187   : > { %v784_v10 = vmul.f32 0.03125, %v763_v7  ;;  %936 = vadd.xlane.f32.xlu0 %v935_v8  ;;  %v760_v11 = vpop.xlane.xlu0 %759  ;;  %v930_v19 = vmul.f32 %v5942_v5, %v5942_v5 }
 0x188   : > { %v783_v12 = vmul.f32 0.03125, %v760_v11  ;;  %v928_v13 = vmul.f32 %v5944_v6, %v5944_v6 }
 0x189   : > { %v5952_v14 = vsub.f32 %v5886_v28, %v784_v10  ;;  %v944_v28 = vsel %vm757_vm1, %v930_v19, 0.0 }
 0x18a   : > { %v5955_v15 = vsub.f32 %v5888_v29, %v783_v12  ;;  %v769_v16 = vpop.xlane.xlu1 %768  ;;  %v938_v17 = vsel %vm757_vm1, %v928_v13, 0.0 }
 0x18b   : > { %v786_v20 = vmul.f32 0.03125, %v769_v16  ;;  %939 = vadd.xlane.f32.xlu1 %v938_v17  ;;  %942 = vadd.xlane.f32.xlu0 %v941_v18  ;;  %v766_v21 = vpop.xlane.xlu0 %765  ;;  %v800_v24 = vmul.f32 %v5952_v14, %v5952_v14 }
 0x18c   : > { %v785_v22 = vmul.f32 0.03125, %v766_v21  ;;  %v799_v23 = vmul.f32 %v5955_v15, %v5955_v15 }
 0x18d   : > { %v5966_v25 = vsub.f32 %v5896_v37, %v786_v20  ;;  %v810_v34 = vsel %vm757_vm1, %v800_v24, 0.0 }
 0x18e   : > { %v5969_v26 = vsub.f32 %v5898_v39, %v785_v22  ;;  %v904_v27 = vpop.xlane.xlu1 %903  ;;  %v807_v29 = vsel %vm757_vm1, %v799_v23, 0.0 }
 0x18f   : > { %v916_v30 = vmul.f32 0.03125, %v904_v27  ;;  %945 = vadd.xlane.f32.xlu1 %v944_v28  ;;  %808 = vadd.xlane.f32.xlu0 %v807_v29  ;;  %v901_v31 = vpop.xlane.xlu0 %900  ;;  %v802_v39 = vmul.f32 %v5966_v25, %v5966_v25 }
 0x190   : > { %v915_v32 = vmul.f32 0.03125, %v901_v31  ;;  %v801_v33 = vmul.f32 %v5969_v26, %v5969_v26 }
 0x191   : > { %v5977_v35 = vsub.f32 %v5900_v40, %v916_v30  ;;  %v816_v51 = vsel %vm757_vm1, %v802_v39, 0.0 }
 0x192   : > { %v5980_v36 = vsub.f32 %v5902_v41, %v915_v32  ;;  %v910_v37 = vpop.xlane.xlu1 %909  ;;  %v813_v38 = vsel %vm757_vm1, %v801_v33, 0.0 }
 0x193   : > { %v918_v42 = vmul.f32 0.03125, %v910_v37  ;;  %811 = vadd.xlane.f32.xlu1 %v810_v34  ;;  %814 = vadd.xlane.f32.xlu0 %v813_v38  ;;  %v907_v43 = vpop.xlane.xlu0 %906  ;;  %v932_v55 = vmul.f32 %v5977_v35, %v5977_v35 }
 0x194   : > { %v917_v45 = vmul.f32 0.03125, %v907_v43  ;;  %v931_v46 = vmul.f32 %v5980_v36, %v5980_v36 }
 0x195   : > { %v5988_v40 = vsub.f32 %v5908_v44, %v918_v42  ;;  %v950_v0 = vsel %vm757_vm1, %v932_v55, 0.0 }
 0x196   : > { %v5991_v41 = vsub.f32 %v5914_v47, %v917_v45  ;;  %v775_v48 = vpop.xlane.xlu1 %774  ;;  %v947_v53 = vsel %vm757_vm1, %v931_v46, 0.0  ;;  %v6031_v45 = vld [vmem:[%s6978_s4] ss:$0 sm:$0xff] }
 0x197   : > { %v788_v56 = vmul.f32 0.03125, %v775_v48  ;;  %817 = vadd.xlane.f32.xlu1 %v816_v51  ;;  %948 = vadd.xlane.f32.xlu0 %v947_v53  ;;  %v772_v57 = vpop.xlane.xlu0 %771  ;;  %v934_v47 = vmul.f32 %v5988_v40, %v5988_v40 }
 0x198   : > { %v787_v58 = vmul.f32 0.03125, %v772_v57  ;;  %v933_v44 = vmul.f32 %v5991_v41, %v5991_v41 }
 0x199   : > { %v6002_v59 = vsub.f32 %v5918_v49, %v788_v56  ;;  %v956_v8 = vsel %vm757_vm1, %v934_v47, 0.0  ;;  %v6037_v56 = vld [vmem:[%s6978_s4 + $0x1] ss:$0 sm:$0xff] }
 0x19a   : > { %v6005_v60 = vsub.f32 %v5920_v50, %v787_v58  ;;  %v781_v61 = vpop.xlane.xlu1 %780  ;;  %v953_v1 = vsel %vm757_vm1, %v933_v44, 0.0 }
 0x19b   : > { %v790_v2 = vmul.f32 0.03125, %v781_v61  ;;  %951 = vadd.xlane.f32.xlu1 %v950_v0  ;;  %954 = vadd.xlane.f32.xlu0 %v953_v1  ;;  %v778_v3 = vpop.xlane.xlu0 %777  ;;  %v804_v10 = vmul.f32 %v6002_v59, %v6002_v59 }
 0x19c   : > { %v789_v4 = vmul.f32 0.03125, %v778_v3  ;;  %v803_v7 = vmul.f32 %v6005_v60, %v6005_v60 }
 0x19d   : > { %v6013_v49 = vsub.f32 %v5924_v52, %v790_v2  ;;  %v822_v12 = vsel %vm757_vm1, %v804_v10, 0.0 }
 0x19e   : > { %v6016_v50 = vsub.f32 %v5928_v54, %v789_v4  ;;  %v819_v9 = vsel %vm757_vm1, %v803_v7, 0.0 }
 0x19f   : > { %957 = vadd.xlane.f32.xlu1 %v956_v8  ;;  %820 = vadd.xlane.f32.xlu0 %v819_v9  ;;  %v806_v52 = vmul.f32 %v6013_v49, %v6013_v49 }
 0x1a0   : > { %v805_v11 = vmul.f32 %v6016_v50, %v6016_v50 }
 0x1a1   : > { %v828_v54 = vsel %vm757_vm1, %v806_v52, 0.0 }
 0x1a2   : > { %v825_v13 = vsel %vm757_vm1, %v805_v11, 0.0 }
 0x1a3   : > { %823 = vadd.xlane.f32.xlu1 %v822_v12  ;;  %826 = vadd.xlane.f32.xlu0 %v825_v13 }
 0x1a7   : > { %829 = vadd.xlane.f32.xlu1 %v828_v54 }
 0x214   : > { %v937_v16 = vpop.xlane.xlu0 %936 }
 0x215   : > { %v959_v17 = vmul.f32 0.03125, %v937_v16 }
 0x217   : > { %v967_v18 = vadd.f32 1e-05, %v959_v17 }
 0x218   : > { %v940_v19 = vpop.xlane.xlu1 %939  ;;  %v943_v20 = vpop.xlane.xlu0 %942 }
 0x219   : > { %5571 = vrsqrt.f32 %v967_v18  ;;  %v960_v21 = vmul.f32 0.03125, %v940_v19  ;;  %v961_v22 = vmul.f32 0.03125, %v943_v20 }
 0x21b   : > { %v968_v23 = vadd.f32 1e-05, %v960_v21  ;;  %v969_v24 = vadd.f32 1e-05, %v961_v22 }
 0x21c   : > { %v946_v27 = vpop.xlane.xlu1 %945  ;;  %v809_v28 = vpop.xlane.xlu0 %808 }
 0x21d   : > { %5573 = vrsqrt.f32 %v968_v23  ;;  %v962_v29 = vmul.f32 0.03125, %v946_v27  ;;  %v831_v30 = vmul.f32 0.03125, %v809_v28 }
 0x21e   : > { %5575 = vrsqrt.f32 %v969_v24 }
 0x21f   : > { %v970_v31 = vadd.f32 1e-05, %v962_v29  ;;  %v839_v32 = vadd.f32 1e-05, %v831_v30 }
 0x220   : > { %v812_v33 = vpop.xlane.xlu1 %811  ;;  %v815_v34 = vpop.xlane.xlu0 %814 }
 0x221   : > { %5577 = vrsqrt.f32 %v970_v31  ;;  %v832_v37 = vmul.f32 0.03125, %v812_v33  ;;  %v833_v38 = vmul.f32 0.03125, %v815_v34 }
 0x222   : > { %5579 = vrsqrt.f32 %v839_v32 }
 0x223   : > { %v5572_v39 = vpop.eup %5571  ;;  %v840_v42 = vadd.f32 1e-05, %v832_v37  ;;  %v841_v43 = vadd.f32 1e-05, %v833_v38 }
 0x224   : > { %v818_v46 = vpop.xlane.xlu1 %817  ;;  %v949_v48 = vpop.xlane.xlu0 %948  ;;  %v983_v51 = vmul.f32 %v5572_v39, %v5938_v63 }
 0x225   : > { %5581 = vrsqrt.f32 %v840_v42  ;;  %v834_v53 = vmul.f32 0.03125, %v818_v46  ;;  %v963_v55 = vmul.f32 0.03125, %v949_v48 }
 0x226   : > { %5583 = vrsqrt.f32 %v841_v43  ;;  %v991_v57 = vmul.f32 %v6031_v45, %v983_v51 }
 0x227   : > { %v5574_v58 = vpop.eup %5573  ;;  %v842_v44 = vadd.f32 1e-05, %v834_v53  ;;  %v971_v47 = vadd.f32 1e-05, %v963_v55 }
 0x228   : > { %v5576_v61 = vpop.eup %5575  ;;  %v952_v0 = vpop.xlane.xlu1 %951  ;;  %v6041_v2 = vadd.f32 %v6037_v56, %v991_v57  ;;  %v984_v63 = vmul.f32 %v5574_v58, %v5944_v6 }
 0x229   : > { %v955_v1 = vpop.xlane.xlu0 %954  ;;  %5585 = vrsqrt.f32 %v842_v44  ;;  %v964_v3 = vmul.f32 0.03125, %v952_v0  ;;  %v985_v7 = vmul.f32 %v5576_v61, %v5936_v62 }
 0x22a   : > { %v965_v4 = vmul.f32 0.03125, %v955_v1  ;;  %5587 = vrsqrt.f32 %v971_v47  ;;  %v1141_v8 = vsel %vm757_vm1, %v6041_v2, 0.0  ;;  %v992_v9 = vmul.f32 %v6031_v45, %v984_v63 }
 0x22b   : > { %v5578_v10 = vpop.eup %5577  ;;  %v972_v11 = vadd.f32 1e-05, %v964_v3  ;;  %1142 = vadd.xlane.f32.xlu0 %v1141_v8  ;;  %v993_v13 = vmul.f32 %v6031_v45, %v985_v7 }
 0x22c   : > { %v973_v12 = vadd.f32 1e-05, %v965_v4  ;;  %v5580_v52 = vpop.eup %5579  ;;  %v958_v54 = vpop.xlane.xlu1 %957  ;;  %v6050_v16 = vadd.f32 %v6037_v56, %v992_v9  ;;  %v986_v62 = vmul.f32 %v5578_v10, %v5942_v5 }
 0x22d   : > { %v821_v6 = vpop.xlane.xlu0 %820  ;;  %5589 = vrsqrt.f32 %v972_v11  ;;  %v966_v17 = vmul.f32 0.03125, %v958_v54  ;;  %v6054_v19 = vadd.f32 %v6037_v56, %v993_v13  ;;  %v855_v22 = vmul.f32 %v5580_v52, %v5955_v15 }
 0x22e   : > { %v835_v18 = vmul.f32 0.03125, %v821_v6  ;;  %5591 = vrsqrt.f32 %v973_v12  ;;  %v1144_v20 = vsel %vm757_vm1, %v6050_v16, 0.0  ;;  %v994_v21 = vmul.f32 %v6031_v45, %v986_v62 }
 0x22f   : > { %v5582_v23 = vpop.eup %5581  ;;  %v974_v24 = vadd.f32 1e-05, %v966_v17  ;;  %1145 = vadd.xlane.f32.xlu1 %v1144_v20  ;;  %v1147_v5 = vsel %vm757_vm1, %v6054_v19, 0.0  ;;  %v867_v32 = vmul.f32 %v6031_v45, %v855_v22 }
 0x230   : > { %v843_v27 = vadd.f32 1e-05, %v835_v18  ;;  %v5584_v28 = vpop.eup %5583  ;;  %1148 = vadd.xlane.f32.xlu0 %v1147_v5  ;;  %v824_v29 = vpop.xlane.xlu1 %823  ;;  %v6063_v31 = vadd.f32 %v6037_v56, %v994_v21  ;;  %v856_v33 = vmul.f32 %v5582_v23, %v5952_v14 }
 0x231   : > { %v827_v30 = vpop.xlane.xlu0 %826  ;;  %5593 = vrsqrt.f32 %v974_v24  ;;  %v836_v15 = vmul.f32 0.03125, %v824_v29  ;;  %v857_v37 = vmul.f32 %v5584_v28, %v5969_v26  ;;  %v6071_v39 = vadd.f32 %v6037_v56, %v867_v32 }
 0x232   : > { %v837_v34 = vmul.f32 0.03125, %v827_v30  ;;  %5595 = vrsqrt.f32 %v843_v27  ;;  %v1150_v38 = vsel %vm757_vm1, %v6063_v31, 0.0  ;;  %v868_v42 = vmul.f32 %v6031_v45, %v856_v33 }
 0x233   : > { %v5586_v43 = vpop.eup %5585  ;;  %v844_v46 = vadd.f32 1e-05, %v836_v15  ;;  %1151 = vadd.xlane.f32.xlu1 %v1150_v38  ;;  %v869_v14 = vmul.f32 %v6031_v45, %v857_v37  ;;  %v1009_v53 = vsel %vm757_vm1, %v6071_v39, 0.0 }
 0x234   : > { %v845_v48 = vadd.f32 1e-05, %v837_v34  ;;  %v5588_v51 = vpop.eup %5587  ;;  %v830_v26 = vpop.xlane.xlu1 %829  ;;  %v6078_v55 = vadd.f32 %v6037_v56, %v868_v42  ;;  %v858_v57 = vmul.f32 %v5586_v43, %v5966_v25  ;;  %1010 = vadd.xlane.f32.xlu0 %v1009_v53 }
 0x235   : > { %5597 = vrsqrt.f32 %v844_v46  ;;  %v838_v58 = vmul.f32 0.03125, %v830_v26  ;;  %v6082_v44 = vadd.f32 %v6037_v56, %v869_v14  ;;  %v987_v47 = vmul.f32 %v5588_v51, %v5980_v36 }
 0x236   : > { %5599 = vrsqrt.f32 %v845_v48  ;;  %v1012_v61 = vsel %vm757_vm1, %v6078_v55, 0.0  ;;  %v870_v0 = vmul.f32 %v6031_v45, %v858_v57 }
 0x237   : > { %v5590_v1 = vpop.eup %5589  ;;  %v846_v63 = vadd.f32 1e-05, %v838_v58  ;;  %1013 = vadd.xlane.f32.xlu1 %v1012_v61  ;;  %v1015_v25 = vsel %vm757_vm1, %v6082_v44, 0.0  ;;  %v995_v3 = vmul.f32 %v6031_v45, %v987_v47 }
 0x238   : > { %v5592_v4 = vpop.eup %5591  ;;  %v6092_v7 = vadd.f32 %v6037_v56, %v870_v0  ;;  %v988_v36 = vmul.f32 %v5590_v1, %v5977_v35  ;;  %1016 = vadd.xlane.f32.xlu0 %v1015_v25 }
 0x239   : > { %5601 = vrsqrt.f32 %v846_v63  ;;  %v6096_v8 = vadd.f32 %v6037_v56, %v995_v3  ;;  %v989_v9 = vmul.f32 %v5592_v4, %v5991_v41 }
 0x23a   : > { %v1018_v10 = vsel %vm757_vm1, %v6092_v7, 0.0  ;;  %v996_v11 = vmul.f32 %v6031_v45, %v988_v36 }
 0x23b   : > { %v5594_v12 = vpop.eup %5593  ;;  %1019 = vadd.xlane.f32.xlu1 %v1018_v10  ;;  %v1153_v13 = vsel %vm757_vm1, %v6096_v8, 0.0  ;;  %v997_v52 = vmul.f32 %v6031_v45, %v989_v9 }
 0x23c   : > { %v5596_v35 = vpop.eup %5595  ;;  %v6106_v54 = vadd.f32 %v6037_v56, %v996_v11  ;;  %v990_v6 = vmul.f32 %v5594_v12, %v5988_v40  ;;  %1154 = vadd.xlane.f32.xlu0 %v1153_v13 }
 0x23d   : > { %v6110_v41 = vadd.f32 %v6037_v56, %v997_v52  ;;  %v859_v62 = vmul.f32 %v5596_v35, %v6005_v60 }
 0x23e   : > { %v1156_v17 = vsel %vm757_vm1, %v6106_v54, 0.0  ;;  %v998_v18 = vmul.f32 %v6031_v45, %v990_v6 }
 0x23f   : > { %v5598_v20 = vpop.eup %5597  ;;  %1157 = vadd.xlane.f32.xlu1 %v1156_v17  ;;  %v1159_v21 = vsel %vm757_vm1, %v6110_v41, 0.0  ;;  %v871_v22 = vmul.f32 %v6031_v45, %v859_v62 }
 0x240   : > { %v5600_v23 = vpop.eup %5599  ;;  %v6120_v40 = vadd.f32 %v6037_v56, %v998_v18  ;;  %v860_v24 = vmul.f32 %v5598_v20, %v6002_v59  ;;  %1160 = vadd.xlane.f32.xlu0 %v1159_v21 }
 0x241   : > { %v6124_v60 = vadd.f32 %v6037_v56, %v871_v22  ;;  %v861_v27 = vmul.f32 %v5600_v23, %v6016_v50 }
 0x242   : > { %v1162_v5 = vsel %vm757_vm1, %v6120_v40, 0.0  ;;  %v872_v28 = vmul.f32 %v6031_v45, %v860_v24 }
 0x243   : > { %v5602_v29 = vpop.eup %5601  ;;  %1163 = vadd.xlane.f32.xlu1 %v1162_v5  ;;  %v1021_v30 = vsel %vm757_vm1, %v6124_v60, 0.0  ;;  %v873_v32 = vmul.f32 %v6031_v45, %v861_v27 }
 0x244   : > { %v6134_v59 = vadd.f32 %v6037_v56, %v872_v28  ;;  %v862_v33 = vmul.f32 %v5602_v29, %v6013_v49  ;;  %1022 = vadd.xlane.f32.xlu0 %v1021_v30 }
 0x245   : > { %v6138_v50 = vadd.f32 %v6037_v56, %v873_v32 }
 0x246   : > { %v1024_v15 = vsel %vm757_vm1, %v6134_v59, 0.0  ;;  %v874_v34 = vmul.f32 %v6031_v45, %v862_v33 }
 0x247   : > { %1025 = vadd.xlane.f32.xlu1 %v1024_v15  ;;  %v1027_v37 = vsel %vm757_vm1, %v6138_v50, 0.0 }
 0x248   : > { %v6146_v38 = vadd.f32 %v6037_v56, %v874_v34  ;;  %1028 = vadd.xlane.f32.xlu0 %v1027_v37 }
 0x24a   : > { %v1030_v49 = vsel %vm757_vm1, %v6146_v38, 0.0 }
 0x24b   : > { %1031 = vadd.xlane.f32.xlu1 %v1030_v49 }
 0x2b8   : > { %v1143_v42 = vpop.xlane.xlu0 %1142 }
 0x2b9   : > { %v1165_v43 = vmul.f32 0.03125, %v1143_v42 }
 0x2bb   : > { %v6151_v46 = vsub.f32 %v6041_v2, %v1165_v43 }
 0x2bc   : > { %v1146_v48 = vpop.xlane.xlu1 %1145 }
 0x2bd   : > { %v1166_v14 = vmul.f32 0.03125, %v1146_v48  ;;  %v1149_v45 = vpop.xlane.xlu0 %1148  ;;  %v1181_v51 = vmul.f32 %v6151_v46, %v6151_v46 }
 0x2be   : > { %v1167_v53 = vmul.f32 0.03125, %v1149_v45 }
 0x2bf   : > { %v6156_v56 = vsub.f32 %v6050_v16, %v1166_v14  ;;  %v1189_v26 = vsel %vm757_vm1, %v1181_v51, 0.0 }
 0x2c0   : > { %v6160_v57 = vsub.f32 %v6054_v19, %v1167_v53  ;;  %v1152_v58 = vpop.xlane.xlu1 %1151  ;;  %1190 = vadd.xlane.f32.xlu0 %v1189_v26 }
 0x2c1   : > { %v1168_v47 = vmul.f32 0.03125, %v1152_v58  ;;  %v1182_v2 = vmul.f32 %v6156_v56, %v6156_v56  ;;  %v1011_v61 = vpop.xlane.xlu0 %1010 }
 0x2c2   : > { %v1183_v0 = vmul.f32 %v6160_v57, %v6160_v57  ;;  %v1033_v16 = vmul.f32 0.03125, %v1011_v61 }
 0x2c3   : > { %v6167_v1 = vsub.f32 %v6063_v31, %v1168_v47  ;;  %v1192_v63 = vsel %vm757_vm1, %v1182_v2, 0.0 }
 0x2c4   : > { %1193 = vadd.xlane.f32.xlu1 %v1192_v63  ;;  %v1014_v25 = vpop.xlane.xlu1 %1013  ;;  %v1195_v19 = vsel %vm757_vm1, %v1183_v0, 0.0  ;;  %v6172_v3 = vsub.f32 %v6071_v39, %v1033_v16 }
 0x2c5   : > { %v1034_v4 = vmul.f32 0.03125, %v1014_v25  ;;  %1196 = vadd.xlane.f32.xlu0 %v1195_v19  ;;  %v1184_v36 = vmul.f32 %v6167_v1, %v6167_v1  ;;  %v1017_v9 = vpop.xlane.xlu0 %1016 }
 0x2c6   : > { %v1035_v31 = vmul.f32 0.03125, %v1017_v9  ;;  %v1049_v12 = vmul.f32 %v6172_v3, %v6172_v3 }
 0x2c7   : > { %v6177_v10 = vsub.f32 %v6078_v55, %v1034_v4  ;;  %v1198_v11 = vsel %vm757_vm1, %v1184_v36, 0.0 }
 0x2c8   : > { %1199 = vadd.xlane.f32.xlu1 %v1198_v11  ;;  %v1020_v13 = vpop.xlane.xlu1 %1019  ;;  %v6183_v52 = vsub.f32 %v6082_v44, %v1035_v31  ;;  %v1057_v6 = vsel %vm757_vm1, %v1049_v12, 0.0 }
 0x2c9   : > { %v1036_v35 = vmul.f32 0.03125, %v1020_v13  ;;  %v1050_v62 = vmul.f32 %v6177_v10, %v6177_v10  ;;  %1058 = vadd.xlane.f32.xlu0 %v1057_v6  ;;  %v1155_v17 = vpop.xlane.xlu0 %1154  ;;  %v5548_v6 = vld [vmem:[%s6982_s8 + $0x8] sm:$0xff]  }
 0x2ca   : > { %v1169_v20 = vmul.f32 0.03125, %v1155_v17  ;;  %v1051_v22 = vmul.f32 %v6183_v52, %v6183_v52  ;;  %v5550_v17 = vld [vmem:[%s6980_s6 + $0x8] sm:$0xff]  }
 0x2cb   : > { %v6189_v18 = vsub.f32 %v6092_v7, %v1036_v35  ;;  %v1060_v21 = vsel %vm757_vm1, %v1050_v62, 0.0  ;;  %v5547_v35 = vld [vmem:[%s6982_s8] sm:$0xff]  }
 0x2cc   : > { %1061 = vadd.xlane.f32.xlu1 %v1060_v21  ;;  %v1158_v23 = vpop.xlane.xlu1 %1157  ;;  %v6195_v24 = vsub.f32 %v6096_v8, %v1169_v20  ;;  %v1063_v5 = vsel %vm757_vm1, %v1051_v22, 0.0  ;;  %5134 = vmatprep.subr.bf16.mxu1 %v5547_v35  ;;  %v5549_v62 = vld [vmem:[%s6980_s6] sm:$0xff]  }
 0x2cd   : > { %v1170_v27 = vmul.f32 0.03125, %v1158_v23  ;;  %v1052_v28 = vmul.f32 %v6189_v18, %v6189_v18  ;;  %1064 = vadd.xlane.f32.xlu0 %v1063_v5  ;;  %v1161_v29 = vpop.xlane.xlu0 %1160  ;;  %5135 = vmatpush3.bf16.msra.mxu1 %v5547_v35  ;;  %v6261_v20 = vld [vmem:[%s6984_s10] sm:$0xff]  }
 0x2ce   : > { %v1171_v32 = vmul.f32 0.03125, %v1161_v29  ;;  %v1185_v15 = vmul.f32 %v6195_v24, %v6195_v24  ;;  %5136 = vmatprep.subr.bf16.mxu1 %v5548_v6  ;;  %5122 = vmatprep.subr.bf16.mxu0 %v5549_v62 }
 0x2cf   : > { %v6201_v30 = vsub.f32 %v6106_v54, %v1170_v27  ;;  %v1066_v33 = vsel %vm757_vm1, %v1052_v28, 0.0  ;;  %5123 = vmatpush3.bf16.msra.mxu0 %v5549_v62 }
 0x2d0   : > { %1067 = vadd.xlane.f32.xlu1 %v1066_v33  ;;  %v1164_v8 = vpop.xlane.xlu1 %1163  ;;  %v6207_v34 = vsub.f32 %v6110_v41, %v1171_v32  ;;  %v1201_v49 = vsel %vm757_vm1, %v1185_v15, 0.0  ;;  %5124 = vmatprep.subr.bf16.mxu0 %v5550_v17 }
 0x2d1   : > { %v1172_v37 = vmul.f32 0.03125, %v1164_v8  ;;  %v1186_v42 = vmul.f32 %v6201_v30, %v6201_v30  ;;  %1202 = vadd.xlane.f32.xlu0 %v1201_v49  ;;  %v1023_v54 = vpop.xlane.xlu0 %1022  ;;  %5137 = vmatpush3.bf16.msra.mxu1 %v5548_v6 }
 0x2d2   : > { %v1037_v48 = vmul.f32 0.03125, %v1023_v54  ;;  %v1187_v45 = vmul.f32 %v6207_v34, %v6207_v34 }
 0x2d3   : > { %v6213_v43 = vsub.f32 %v6120_v40, %v1172_v37  ;;  %v1204_v14 = vsel %vm757_vm1, %v1186_v42, 0.0  ;;  %5125 = vmatpush3.bf16.msra.mxu0 %v5550_v17 }
 0x2d4   : > { %1205 = vadd.xlane.f32.xlu1 %v1204_v14  ;;  %v1026_v41 = vpop.xlane.xlu1 %1025  ;;  %v6219_v51 = vsub.f32 %v6124_v60, %v1037_v48  ;;  %v1207_v26 = vsel %vm757_vm1, %v1187_v45, 0.0  ;;  %5146 = vmatprep.subr.bf16.mxu0 %v6261_v20 }
 0x2d5   : > { %v1038_v53 = vmul.f32 0.03125, %v1026_v41  ;;  %v1188_v58 = vmul.f32 %v6213_v43, %v6213_v43  ;;  %1208 = vadd.xlane.f32.xlu0 %v1207_v26  ;;  %v1029_v40 = vpop.xlane.xlu0 %1028 }
 0x2d6   : > { %v1039_v2 = vmul.f32 0.03125, %v1029_v40  ;;  %v1053_v0 = vmul.f32 %v6219_v51, %v6219_v51 }
 0x2d7   : > { %v6225_v47 = vsub.f32 %v6134_v59, %v1038_v53  ;;  %v1210_v61 = vsel %vm757_vm1, %v1188_v58, 0.0 }
 0x2d8   : > { %1211 = vadd.xlane.f32.xlu1 %v1210_v61  ;;  %v1032_v16 = vpop.xlane.xlu1 %1031  ;;  %v6231_v63 = vsub.f32 %v6138_v50, %v1039_v2  ;;  %v1069_v19 = vsel %vm757_vm1, %v1053_v0, 0.0  ;;  %v6268_v2 = vld [vmem:[%s6979_s5] ss:$0 sm:$0xff] }
 0x2d9   : > { %v1040_v25 = vmul.f32 0.03125, %v1032_v16  ;;  %v1054_v4 = vmul.f32 %v6225_v47, %v6225_v47  ;;  %1070 = vadd.xlane.f32.xlu0 %v1069_v19 }
 0x2da   : > { %v1055_v31 = vmul.f32 %v6231_v63, %v6231_v63 }
 0x2db   : > { %v6237_v36 = vsub.f32 %v6146_v38, %v1040_v25  ;;  %v1072_v9 = vsel %vm757_vm1, %v1054_v4, 0.0 }
 0x2dc   : > { %1073 = vadd.xlane.f32.xlu1 %v1072_v9  ;;  %v1075_v11 = vsel %vm757_vm1, %v1055_v31, 0.0 }
 0x2dd   : > { %v1056_v12 = vmul.f32 %v6237_v36, %v6237_v36  ;;  %1076 = vadd.xlane.f32.xlu0 %v1075_v11 }
 0x2df   : > { %v1078_v13 = vsel %vm757_vm1, %v1056_v12, 0.0  ;;  %v6275_v12 = vld [vmem:[%s6979_s5 + $0x1] ss:$0 sm:$0xff] }
 0x2e0   : > { %1079 = vadd.xlane.f32.xlu1 %v1078_v13 }
 0x34d   : > { %v1191_v21 = vpop.xlane.xlu0 %1190 }
 0x34e   : > { %v1213_v22 = vmul.f32 0.03125, %v1191_v21 }
 0x350   : > { %v1221_v23 = vadd.f32 1e-05, %v1213_v22 }
 0x351   : > { %v1194_v27 = vpop.xlane.xlu1 %1193 }
 0x352   : > { %5603 = vrsqrt.f32 %v1221_v23  ;;  %v1214_v5 = vmul.f32 0.03125, %v1194_v27  ;;  %v1197_v28 = vpop.xlane.xlu0 %1196 }
 0x353   : > { %v1215_v29 = vmul.f32 0.03125, %v1197_v28 }
 0x354   : > { %v1222_v32 = vadd.f32 1e-05, %v1214_v5 }
 0x355   : > { %v1223_v33 = vadd.f32 1e-05, %v1215_v29  ;;  %v1200_v15 = vpop.xlane.xlu1 %1199 }
 0x356   : > { %5605 = vrsqrt.f32 %v1222_v32  ;;  %v1216_v8 = vmul.f32 0.03125, %v1200_v15  ;;  %v1059_v37 = vpop.xlane.xlu0 %1058 }
 0x357   : > { %5607 = vrsqrt.f32 %v1223_v33  ;;  %v1081_v42 = vmul.f32 0.03125, %v1059_v37 }
 0x358   : > { %v1224_v49 = vadd.f32 1e-05, %v1216_v8 }
 0x359   : > { %v1062_v54 = vpop.xlane.xlu1 %1061  ;;  %v1089_v48 = vadd.f32 1e-05, %v1081_v42 }
 0x35a   : > { %5609 = vrsqrt.f32 %v1224_v49  ;;  %v1082_v14 = vmul.f32 0.03125, %v1062_v54  ;;  %v1065_v45 = vpop.xlane.xlu0 %1064 }
 0x35b   : > { %5611 = vrsqrt.f32 %v1089_v48  ;;  %v1083_v26 = vmul.f32 0.03125, %v1065_v45 }
 0x35c   : > { %v5604_v41 = vpop.eup %5603  ;;  %v1090_v53 = vadd.f32 1e-05, %v1082_v14 }
 0x35d   : > { %v1237_v58 = vmul.f32 %v5604_v41, %v6151_v46  ;;  %v1068_v40 = vpop.xlane.xlu1 %1067  ;;  %v1091_v61 = vadd.f32 1e-05, %v1083_v26 }
 0x35e   : > { %5613 = vrsqrt.f32 %v1090_v53  ;;  %v1084_v0 = vmul.f32 0.03125, %v1068_v40  ;;  %v1203_v16 = vpop.xlane.xlu0 %1202 }
 0x35f   : > { %5615 = vrsqrt.f32 %v1091_v61  ;;  %v1217_v4 = vmul.f32 0.03125, %v1203_v16  ;;  %v1245_v31 = vmul.f32 %v6268_v2, %v1237_v58 }
 0x360   : > { %v5606_v25 = vpop.eup %5605  ;;  %v1092_v19 = vadd.f32 1e-05, %v1084_v0 }
 0x361   : > { %v5608_v9 = vpop.eup %5607  ;;  %v1238_v11 = vmul.f32 %v5606_v25, %v6156_v56  ;;  %v1206_v46 = vpop.xlane.xlu1 %1205  ;;  %v1225_v35 = vadd.f32 1e-05, %v1217_v4  ;;  %v1253_v56 = vadd.f32 %v6275_v12, %v1245_v31 }
 0x362   : > { %v1239_v13 = vmul.f32 %v5608_v9, %v6160_v57  ;;  %5617 = vrsqrt.f32 %v1092_v19  ;;  %v1218_v6 = vmul.f32 0.03125, %v1206_v46  ;;  %v1209_v17 = vpop.xlane.xlu0 %1208 }
 0x363   : > { %v1246_v62 = vmul.f32 %v6268_v2, %v1238_v11  ;;  %5619 = vrsqrt.f32 %v1225_v35  ;;  %v1219_v23 = vmul.f32 0.03125, %v1209_v17 }
 0x364   : > { %v5610_v21 = vpop.eup %5609  ;;  %v1226_v22 = vadd.f32 1e-05, %v1218_v6  ;;  %v1247_v5 = vmul.f32 %v6268_v2, %v1239_v13 }
 0x365   : > { %v1254_v27 = vadd.f32 %v6275_v12, %v1246_v62  ;;  %v1240_v28 = vmul.f32 %v5610_v21, %v6167_v1  ;;  %v1212_v29 = vpop.xlane.xlu1 %1211  ;;  %v5612_v57 = vpop.eup %5611  ;;  %v1227_v32 = vadd.f32 1e-05, %v1219_v23 }
 0x366   : > { %5621 = vrsqrt.f32 %v1226_v22  ;;  %v1220_v33 = vmul.f32 0.03125, %v1212_v29  ;;  %v1105_v37 = vmul.f32 %v5612_v57, %v6172_v3  ;;  %v1071_v49 = vpop.xlane.xlu0 %1070  ;;  %v1255_v14 = vadd.f32 %v6275_v12, %v1247_v5  ;;  %v5552_v57 = vld [vmem:[%s6984_s10 + $0x8] sm:$0xff]  }
 0x367   : > { %v6283_v15 = vpack.c.bf16 %v1254_v27, %v1253_v56  ;;  %v1248_v8 = vmul.f32 %v6268_v2, %v1240_v28  ;;  %5623 = vrsqrt.f32 %v1227_v32  ;;  %v1085_v48 = vmul.f32 0.03125, %v1071_v49 }
 0x368   : > { %v5614_v42 = vpop.eup %5613  ;;  %v1228_v54 = vadd.f32 1e-05, %v1220_v33  ;;  %v1117_v53 = vmul.f32 %v6268_v2, %v1105_v37 }
 0x369   : > { %v1256_v1 = vadd.f32 %v6275_v12, %v1248_v8  ;;  %v1106_v45 = vmul.f32 %v5614_v42, %v6177_v10  ;;  %v1074_v41 = vpop.xlane.xlu1 %1073  ;;  %5138 = vmatprep.mubr.msk.bf16.mxu1 %vm757_vm1, %v6283_v15  ;;  %v5616_v26 = vpop.eup %5615  ;;  %v1093_v3 = vadd.f32 1e-05, %v1085_v48 }
 0x36a   : > { %5625 = vrsqrt.f32 %v1228_v54  ;;  %v1086_v58 = vmul.f32 0.03125, %v1074_v41  ;;  %v1107_v61 = vmul.f32 %v5616_v26, %v6183_v52  ;;  %v1077_v0 = vpop.xlane.xlu0 %1076  ;;  %v1129_v11 = vadd.f32 %v6275_v12, %v1117_v53 }
 0x36b   : > { %v6293_v40 = vpack.c.bf16 %v1256_v1, %v1255_v14  ;;  %v1118_v16 = vmul.f32 %v6268_v2, %v1106_v45  ;;  %5627 = vrsqrt.f32 %v1093_v3  ;;  %v1087_v19 = vmul.f32 0.03125, %v1077_v0 }
 0x36c   : > { %v5618_v25 = vpop.eup %5617  ;;  %v1094_v10 = vadd.f32 1e-05, %v1086_v58  ;;  %v1119_v4 = vmul.f32 %v6268_v2, %v1107_v61 }
 0x36d   : > { %v1108_v9 = vmul.f32 %v5618_v25, %v6189_v18  ;;  %v1080_v31 = vpop.xlane.xlu1 %1079  ;;  %5139 = vmatmul.mubr.msk.bf16.vlgmr.msra.gmra.mrb[12].mxu1 %vm757_vm1, %v6293_v40  ;;  %v1130_v46 = vadd.f32 %v6275_v12, %v1118_v16  ;;  %v5620_v52 = vpop.eup %5619  ;;  %v1095_v13 = vadd.f32 1e-05, %v1087_v19 }
 0x36e   : > { %5629 = vrsqrt.f32 %v1094_v10  ;;  %v1088_v35 = vmul.f32 0.03125, %v1080_v31  ;;  %v1241_v62 = vmul.f32 %v5620_v52, %v6195_v24  ;;  %v1131_v56 = vadd.f32 %v6275_v12, %v1119_v4  ;;  %v4751_v10 = vld [vmem:[%s6983_s9] ss:$0 sm:$0xff] }
 0x36f   : > { %v1120_v6 = vmul.f32 %v6268_v2, %v1108_v9  ;;  %v6305_v17 = vpack.c.bf16 %v1130_v46, %v1129_v11  ;;  %5631 = vrsqrt.f32 %v1095_v13 }
 0x370   : > { %v5622_v21 = vpop.eup %5621  ;;  %v1096_v18 = vadd.f32 1e-05, %v1088_v35  ;;  %v1249_v22 = vmul.f32 %v6268_v2, %v1241_v62  ;;  %v4744_v62 = vld [vmem:[%s6981_s7] ss:$0 sm:$0xff] }
 0x371   : > { %v1242_v23 = vmul.f32 %v5622_v21, %v6201_v30  ;;  %5126 = vmatprep.mubr.msk.bf16.mxu0 %vm757_vm1, %v6305_v17  ;;  %v1132_v27 = vadd.f32 %v6275_v12, %v1120_v6  ;;  %v5624_v5 = vpop.eup %5623 }
 0x372   : > { %5633 = vrsqrt.f32 %v1096_v18  ;;  %v1243_v28 = vmul.f32 %v5624_v5, %v6207_v34  ;;  %v1257_v32 = vadd.f32 %v6275_v12, %v1249_v22 }
 0x373   : > { %v1250_v24 = vmul.f32 %v6268_v2, %v1242_v23  ;;  %v6315_v29 = vpack.c.bf16 %v1132_v27, %v1131_v56 }
 0x374   : > { %v5626_v30 = vpop.eup %5625  ;;  %v1251_v8 = vmul.f32 %v6268_v2, %v1243_v28 }
 0x375   : > { %v1258_v33 = vadd.f32 %v6275_v12, %v1250_v24  ;;  %v1244_v37 = vmul.f32 %v5626_v30, %v6213_v43  ;;  %5127 = vmatmul.mubr.msk.bf16.vlgmr.msra.gmra.mrb[4].mxu0 %vm757_vm1, %v6315_v29  ;;  %v5628_v49 = vpop.eup %5627 }
 0x376   : > { %5147 = vmatpush3.bf16.msra.mxu0 %v6261_v20  ;;  %v1109_v54 = vmul.f32 %v5628_v49, %v6219_v51  ;;  %v1259_v14 = vadd.f32 %v6275_v12, %v1251_v8 }
 0x377   : > { %v6327_v34 = vpack.c.bf16 %v1258_v33, %v1257_v32  ;;  %v1252_v42 = vmul.f32 %v6268_v2, %v1244_v37  ;;  %5148 = vmatprep.subr.bf16.mxu0 %v5552_v57 }
 0x378   : > { %v5630_v48 = vpop.eup %5629  ;;  %v1121_v45 = vmul.f32 %v6268_v2, %v1109_v54 }
 0x379   : > { %v1260_v1 = vadd.f32 %v6275_v12, %v1252_v42  ;;  %v1110_v43 = vmul.f32 %v5630_v48, %v6225_v47  ;;  %5142 = vmatprep.mubr.msk.bf16.mxu1 %vm757_vm1, %v6327_v34  ;;  %v5632_v20 = vpop.eup %5631 }
 0x37a   : > { %5149 = vmatpush3.bf16.msra.mxu0 %v5552_v57  ;;  %v1111_v53 = vmul.f32 %v5632_v20, %v6231_v63  ;;  %v1133_v47 = vadd.f32 %v6275_v12, %v1121_v45 }
 0x37b   : > { %v6337_v41 = vpack.c.bf16 %v1260_v1, %v1259_v14  ;;  %v1122_v51 = vmul.f32 %v6268_v2, %v1110_v43 }
 0x37c   : > { %v5634_v26 = vpop.eup %5633  ;;  %v1123_v61 = vmul.f32 %v6268_v2, %v1111_v53 }
 0x37d   : > { %v1112_v3 = vmul.f32 %v5634_v26, %v6237_v36  ;;  %5143 = vmatmul.mubr.msk.bf16.gmra.mrb[16].mxu1 %vm757_vm1, %v6337_v41  ;;  %v1134_v58 = vadd.f32 %v6275_v12, %v1122_v51 }
 0x37e   : > { %v1135_v63 = vadd.f32 %v6275_v12, %v1123_v61 }
 0x37f   : > { %v6347_v0 = vpack.c.bf16 %v1134_v58, %v1133_v47  ;;  %v1124_v16 = vmul.f32 %v6268_v2, %v1112_v3  ;;  %v5771_v2 = vmov 0.0  }
 0x380   : > { %5158 = vmatprep.subr.bf16.mxu1 %v5771_v2  ;;  %5170 = vmatprep.subr.bf16.mxu0 %v5771_v2 }
 0x381   : > { %5130 = vmatprep.mubr.msk.bf16.mxu0 %vm757_vm1, %v6347_v0  ;;  %v1136_v36 = vadd.f32 %v6275_v12, %v1124_v16  ;;  %5160 = vmatprep.mubr.msk.bf16.mxu1 %vm5772_vm2, %v5771_v2 }
 0x383   : > { %v6354_v25 = vpack.c.bf16 %v1136_v36, %v1135_v63 }
 0x385   : > { %5131 = vmatmul.mubr.msk.bf16.gmra.mrb[8].mxu0 %vm757_vm1, %v6354_v25 }
 0x386   : > { %5150 = vmatprep.mubr.msk.bf16.mxu0 %vm757_vm1, %v6283_v15 }
 0x38d   : > { %5151 = vmatmul.mubr.msk.bf16.vlgmr.msra.gmra.mrb[12].mxu0 %vm757_vm1, %v6293_v40 }
 0x38e   : > { %5154 = vmatprep.mubr.msk.bf16.mxu0 %vm757_vm1, %v6327_v34 }
 0x395   : > { %5155 = vmatmul.mubr.msk.bf16.gmra.mrb[16].mxu0 %vm757_vm1, %v6337_v41 }
 0x396   : > { %5172 = vmatprep.mubr.msk.bf16.mxu0 %vm5772_vm2, %v5771_v2 }
 0x440   : > { %v5140_v12 = vpop.f32.mrb[12].mxu1 }
 0x441   : > { %v1434_v19 = vpop.f32.mrb[13].mxu1  ;;  %v1443_v9 = vadd.f32 %v5140_v12, %v4751_v10  ;;  %v4758_v12 = vld [vmem:[%s6985_s11] ss:$0 sm:$0xff] }
 0x442   : > { %v5141_v4 = vpop.f32.mrb[14].mxu1  ;;  %v1435_v46 = vadd.f32 %v4751_v10, %v1434_v19 }
 0x443   : > { %v1446_v31 = vadd.f32 %v5141_v4, %v4751_v10  ;;  %v1437_v11 = vpop.f32.mrb[15].mxu1 }
 0x444   : > { %v1438_v52 = vadd.f32 %v4751_v10, %v1437_v11 }
 0x445   : > { %v1558_v13 = vpack.c.bf16 %v1446_v31, %v1443_v9 }
 0x446   : > { %v1557_v35 = vpack.c.bf16 %v1438_v52, %v1435_v46 }
 0x447   : > { %v1619_v32 = vsel %vm1567_vm3, %v1558_v13, 0 }
 0x448   : > { %v5128_v6 = vpop.f32.mrb[4].mxu0  ;;  %v1572_v21 = vsel %vm1567_vm3, %v1557_v35, 0 }
 0x449   : > { %v1334_v18 = vpop.f32.mrb[5].mxu0  ;;  %5159 = vmatpush3.bf16.xpose.msra.mxu1 %v1572_v21  ;;  %v1343_v23 = vadd.f32 %v5128_v6, %v4744_v62 }
 0x44a   : > { %v5129_v22 = vpop.f32.mrb[6].mxu0  ;;  %5164 = vmatprep.subr.bf16.mxu1 %v5771_v2  ;;  %v1335_v5 = vadd.f32 %v4744_v62, %v1334_v18 }
 0x44b   : > { %v1346_v56 = vadd.f32 %v5129_v22, %v4744_v62  ;;  %v1337_v27 = vpop.f32.mrb[7].mxu0 }
 0x44c   : > { %v1338_v24 = vadd.f32 %v4744_v62, %v1337_v27 }
 0x44d   : > { %v1554_v28 = vpack.c.bf16 %v1346_v56, %v1343_v23 }
 0x44e   : > { %v1553_v57 = vpack.c.bf16 %v1338_v24, %v1335_v5 }
 0x450   : > { %v5144_v30 = vpop.f32.mrb[16].mxu1  ;;  %5161 = vmatmul.mubr.msk.bf16.vlgmr.msra.gmra.mrb[20].mxu1 %vm1567_vm3, %v1553_v57 }
 0x451   : > { %v1450_v33 = vpop.f32.mrb[17].mxu1  ;;  %5165 = vmatpush3.bf16.xpose.msra.mxu1 %v1619_v32  ;;  %5166 = vmatprep.mubr.msk.bf16.mxu1 %vm5772_vm2, %v5771_v2  ;;  %v1459_v37 = vadd.f32 %v5144_v30, %v4751_v10  ;;  %v1565_v32 = vld [vmem:[%s6986_s12] sm:$0xff] }
 0x452   : > { %v5145_v8 = vpop.f32.mrb[18].mxu1  ;;  %5176 = vmatprep.subr.bf16.mxu1 %v5771_v2  ;;  %v1451_v54 = vadd.f32 %v4751_v10, %v1450_v33 }
 0x453   : > { %v1462_v49 = vadd.f32 %v5145_v8, %v4751_v10  ;;  %v1453_v42 = vpop.f32.mrb[19].mxu1 }
 0x454   : > { %v1454_v48 = vadd.f32 %v4751_v10, %v1453_v42 }
 0x455   : > { %v1560_v14 = vpack.c.bf16 %v1462_v49, %v1459_v37  ;;  %v1566_v49 = vld [vmem:[%s6986_s12 + $0x8] sm:$0xff] }
 0x456   : > { %v1559_v1 = vpack.c.bf16 %v1454_v48, %v1451_v54 }
 0x457   : > { %v1713_v43 = vsel %vm1567_vm3, %v1560_v14, 0 }
 0x458   : > { %v5132_v45 = vpop.f32.mrb[8].mxu0  ;;  %5167 = vmatmul.mubr.msk.bf16.vlgmr.msra.gmra.mrb[24].mxu1 %vm1567_vm3, %v1554_v28  ;;  %v1666_v20 = vsel %vm1567_vm3, %v1559_v1, 0 }
 0x459   : > { %v1350_v53 = vpop.f32.mrb[9].mxu0  ;;  %5171 = vmatpush3.bf16.xpose.msra.mxu0 %v1666_v20  ;;  %5177 = vmatpush3.bf16.xpose.msra.mxu1 %v1713_v43  ;;  %v1359_v26 = vadd.f32 %v5132_v45, %v4744_v62 }
 0x45a   : > { %v5133_v51 = vpop.f32.mrb[10].mxu0  ;;  %5178 = vmatprep.mubr.msk.bf16.mxu1 %vm5772_vm2, %v5771_v2  ;;  %5188 = vmatprep.subr.bf16.mxu1 %v5771_v2  ;;  %v1351_v58 = vadd.f32 %v4744_v62, %v1350_v53 }
 0x45b   : > { %v1362_v3 = vadd.f32 %v5133_v51, %v4744_v62  ;;  %v1353_v47 = vpop.f32.mrb[11].mxu0  ;;  %5182 = vmatprep.subr.bf16.mxu0 %v5771_v2 }
 0x45c   : > { %v1354_v61 = vadd.f32 %v4744_v62, %v1353_v47 }
 0x45d   : > { %v1556_v16 = vpack.c.bf16 %v1362_v3, %v1359_v26 }
 0x45e   : > { %v1555_v63 = vpack.c.bf16 %v1354_v61, %v1351_v58 }
 0x460   : > { %v5152_v36 = vpop.f32.mrb[12].mxu0  ;;  %5173 = vmatmul.mubr.msk.bf16.vlgmr.msra.gmra.mrb[20].mxu0 %vm1567_vm3, %v1555_v63  ;;  %5179 = vmatmul.mubr.msk.bf16.vlgmr.msra.gmra.mrb[28].mxu1 %vm1567_vm3, %v1556_v16 }
 0x461   : > { %v1522_v10 = vpop.f32.mrb[13].mxu0  ;;  %5190 = vmatprep.mubr.msk.bf16.mxu1 %vm5772_vm2, %v5771_v2  ;;  %5184 = vmatprep.mubr.msk.bf16.mxu0 %vm5772_vm2, %v5771_v2  ;;  %v1531_v4 = vadd.f32 %v5152_v36, %v4758_v12 }
 0x462   : > { %v5153_v19 = vpop.f32.mrb[14].mxu0  ;;  %v1523_v11 = vadd.f32 %v4758_v12, %v1522_v10 }
 0x463   : > { %v1534_v9 = vadd.f32 %v5153_v19, %v4758_v12  ;;  %v1525_v31 = vpop.f32.mrb[15].mxu0 }
 0x464   : > { %v1526_v46 = vadd.f32 %v4758_v12, %v1525_v31 }
 0x465   : > { %v1562_v52 = vpack.c.bf16 %v1534_v9, %v1531_v4 }
 0x466   : > { %v1561_v13 = vpack.c.bf16 %v1526_v46, %v1523_v11 }
 0x467   : > { %5189 = vmatpush3.bf16.msra.mxu1 %v1562_v52 }
 0x468   : > { %v5156_v35 = vpop.f32.mrb[16].mxu0  ;;  %5183 = vmatpush3.bf16.msra.mxu0 %v1561_v13  ;;  %5200 = vmatprep.subr.bf16.mxu1 %v5771_v2 }
 0x469   : > { %v6402_v6 = vadd.f32 %v5156_v35, %v4758_v12  ;;  %v1538_v62 = vpop.f32.mrb[17].mxu0  ;;  %5194 = vmatprep.subr.bf16.mxu0 %v5771_v2 }
 0x46a   : > { %v6405_v21 = vadd.f32 %v4758_v12, %v1538_v62  ;;  %v5157_v18 = vpop.f32.mrb[18].mxu0 }
 0x46b   : > { %v6407_v22 = vadd.f32 %v5157_v18, %v4758_v12  ;;  %v1541_v23 = vpop.f32.mrb[19].mxu0 }
 0x46c   : > { %v6409_v56 = vadd.f32 %v4758_v12, %v1541_v23 }
 0x46d   : > { %v1564_v27 = vpack.c.bf16 %v6407_v22, %v6402_v6  ;;  %v5555_v22 = vld [vmem:[%s6982_s8 + $0x18] sm:$0xff]  }
 0x46e   : > { %v1563_v5 = vpack.c.bf16 %v6409_v56, %v6405_v21  ;;  %v5556_v56 = vld [vmem:[%s6980_s6 + $0x18] sm:$0xff]  }
 0x523   : > { %v1608_v24 = vpop.f32.mrb[20].mxu1 }
 0x524   : > { %v5162_v28 = vpop.f32.mrb[21].mxu1  ;;  %v1609_v54 = vadd.f32 %v1608_v24, %v1565_v32 }
 0x525   : > { %v1611_v57 = vpop.f32.mrb[22].mxu1 }
 0x526   : > { %v5163_v30 = vpop.f32.mrb[23].mxu1  ;;  %v1612_v43 = vadd.f32 %v1611_v57, %v1566_v49  ;;  %v1756_v20 = vsel %vm580_vm0, %v1609_v54, -inf }
 0x528   : > { %v1759_v58 = vsel %vm580_vm0, %v1612_v43, -inf }
 0x52b   : > { %v1655_v33 = vpop.f32.mrb[24].mxu1 }
 0x52c   : > { %v1656_v8 = vadd.f32 %v1655_v33, %v1565_v32  ;;  %v5168_v37 = vpop.f32.mrb[25].mxu1 }
 0x52d   : > { %v1658_v42 = vpop.f32.mrb[26].mxu1 }
 0x52e   : > { %v1659_v48 = vadd.f32 %v1658_v42, %v1566_v49  ;;  %v5169_v14 = vpop.f32.mrb[27].mxu1  ;;  %v1762_v1 = vsel %vm580_vm0, %v1656_v8, -inf }
 0x52f   : > { %1763 = vmax.xlane.f32.xlu0 %v1762_v1 }
 0x530   : > { %v1765_v45 = vsel %vm580_vm0, %v1659_v48, -inf }
 0x531   : > { %1766 = vmax.xlane.f32.xlu1 %v1765_v45 }
 0x533   : > { %1757 = vmax.xlane.f32.xlu0 %v1756_v20  ;;  %v1702_v53 = vpop.f32.mrb[20].mxu0  ;;  %v1749_v51 = vpop.f32.mrb[28].mxu1 }
 0x534   : > { %v1750_v26 = vadd.f32 %v1749_v51, %v1565_v32  ;;  %v5174_v3 = vpop.f32.mrb[21].mxu0  ;;  %v5180_v47 = vpop.f32.mrb[29].mxu1  ;;  %v1703_v63 = vadd.f32 %v1702_v53, %v1565_v32 }
 0x535   : > { %1760 = vmax.xlane.f32.xlu1 %v1759_v58  ;;  %v1705_v61 = vpop.f32.mrb[22].mxu0  ;;  %v1752_v16 = vpop.f32.mrb[30].mxu1 }
 0x536   : > { %v1753_v36 = vadd.f32 %v1752_v16, %v1566_v49  ;;  %v5175_v12 = vpop.f32.mrb[23].mxu0  ;;  %v5181_v10 = vpop.f32.mrb[31].mxu1  ;;  %v1774_v19 = vsel %vm580_vm0, %v1750_v26, -inf  ;;  %v1706_v4 = vadd.f32 %v1705_v61, %v1566_v49  ;;  %v1768_v31 = vsel %vm580_vm0, %v1703_v63, -inf }
 0x537   : > { %1775 = vmax.xlane.f32.xlu0 %v1774_v19 }
 0x538   : > { %v1777_v9 = vsel %vm580_vm0, %v1753_v36, -inf  ;;  %v1771_v11 = vsel %vm580_vm0, %v1706_v4, -inf }
 0x539   : > { %1778 = vmax.xlane.f32.xlu1 %v1777_v9 }
 0x53b   : > { %1769 = vmax.xlane.f32.xlu0 %v1768_v31 }
 0x53d   : > { %1772 = vmax.xlane.f32.xlu1 %v1771_v11 }
 0x5bc   : > { %v1764_v46 = vpop.xlane.xlu0 %1763 }
 0x5bd   : > { %v1782_v52 = vsub.f32 %v1656_v8, %v1764_v46 }
 0x5be   : > { %v1767_v13 = vpop.xlane.xlu1 %1766 }
 0x5bf   : > { %v1792_v35 = vmul.f32 1.442695, %v1782_v52  ;;  %v1783_v62 = vsub.f32 %v1659_v48, %v1767_v13 }
 0x5c0   : > { %v1758_v18 = vpop.xlane.xlu0 %1757 }
 0x5c1   : > { %5635 = vpow2.f32 %v1792_v35  ;;  %v1794_v23 = vmul.f32 1.442695, %v1783_v62  ;;  %v1780_v24 = vsub.f32 %v1609_v54, %v1758_v18 }
 0x5c2   : > { %v1761_v28 = vpop.xlane.xlu1 %1760 }
 0x5c3   : > { %5637 = vpow2.f32 %v1794_v23  ;;  %v1788_v57 = vmul.f32 1.442695, %v1780_v24  ;;  %v1781_v30 = vsub.f32 %v1612_v43, %v1761_v28 }
 0x5c4   : > { %v1776_v32 = vpop.xlane.xlu0 %1775 }
 0x5c5   : > { %5639 = vpow2.f32 %v1788_v57  ;;  %v1790_v33 = vmul.f32 1.442695, %v1781_v30  ;;  %v1786_v37 = vsub.f32 %v1750_v26, %v1776_v32 }
 0x5c6   : > { %v1779_v49 = vpop.xlane.xlu1 %1778 }
 0x5c7   : > { %5641 = vpow2.f32 %v1790_v33  ;;  %v1800_v42 = vmul.f32 1.442695, %v1786_v37  ;;  %v1787_v14 = vsub.f32 %v1753_v36, %v1779_v49  ;;  %v5553_v37 = vld [vmem:[%s6982_s8 + $0x10] sm:$0xff]  }
 0x5c8   : > { %v1770_v8 = vpop.xlane.xlu0 %1769 }
 0x5c9   : > { %5643 = vpow2.f32 %v1800_v42  ;;  %v1802_v1 = vmul.f32 1.442695, %v1787_v14  ;;  %v1784_v48 = vsub.f32 %v1703_v63, %v1770_v8 }
 0x5ca   : > { %v1773_v45 = vpop.xlane.xlu1 %1772 }
 0x5cb   : > { %v5636_v20 = vpop.eup %5635  ;;  %5645 = vpow2.f32 %v1802_v1  ;;  %v1796_v54 = vmul.f32 1.442695, %v1784_v48  ;;  %v1785_v53 = vsub.f32 %v1706_v4, %v1773_v45  ;;  %v5554_v48 = vld [vmem:[%s6980_s6 + $0x10] sm:$0xff]  }
 0x5cc   : > { %v1810_v51 = vsel %vm580_vm0, %v5636_v20, 0.0 }
 0x5cd   : > { %v5638_v43 = vpop.eup %5637  ;;  %5647 = vpow2.f32 %v1796_v54  ;;  %v1798_v3 = vmul.f32 1.442695, %v1785_v53  ;;  %1811 = vadd.xlane.f32.xlu0 %v1810_v51 }
 0x5ce   : > { %v1813_v26 = vsel %vm580_vm0, %v5638_v43, 0.0 }
 0x5cf   : > { %v5640_v47 = vpop.eup %5639  ;;  %5649 = vpow2.f32 %v1798_v3  ;;  %1814 = vadd.xlane.f32.xlu1 %v1813_v26  ;;  %v5558_v3 = vld [vmem:[%s6984_s10 + $0x18] sm:$0xff]  }
 0x5d0   : > { %v1804_v58 = vsel %vm580_vm0, %v5640_v47, 0.0 }
 0x5d1   : > { %v5642_v61 = vpop.eup %5641  ;;  %1805 = vadd.xlane.f32.xlu0 %v1804_v58 }
 0x5d2   : > { %v1807_v16 = vsel %vm580_vm0, %v5642_v61, 0.0 }
 0x5d3   : > { %v5644_v63 = vpop.eup %5643  ;;  %1808 = vadd.xlane.f32.xlu1 %v1807_v16 }
 0x5d4   : > { %v1822_v36 = vsel %vm580_vm0, %v5644_v63, 0.0 }
 0x5d5   : > { %v5646_v12 = vpop.eup %5645  ;;  %1823 = vadd.xlane.f32.xlu0 %v1822_v36 }
 0x5d6   : > { %v1825_v10 = vsel %vm580_vm0, %v5646_v12, 0.0 }
 0x5d7   : > { %v5648_v19 = vpop.eup %5647  ;;  %1826 = vadd.xlane.f32.xlu1 %v1825_v10 }
 0x5d8   : > { %v1816_v4 = vsel %vm580_vm0, %v5648_v19, 0.0 }
 0x5d9   : > { %v5650_v9 = vpop.eup %5649  ;;  %1817 = vadd.xlane.f32.xlu0 %v1816_v4 }
 0x5da   : > { %v1819_v31 = vsel %vm580_vm0, %v5650_v9, 0.0 }
 0x5db   : > { %1820 = vadd.xlane.f32.xlu1 %v1819_v31 }
 0x65a   : > { %v1812_v11 = vpop.xlane.xlu0 %1811 }
 0x65b   : > { %5651 = vrcp.f32 %v1812_v11 }
 0x65c   : > { %v1815_v46 = vpop.xlane.xlu1 %1814 }
 0x65d   : > { %5653 = vrcp.f32 %v1815_v46 }
 0x65e   : > { %v1806_v52 = vpop.xlane.xlu0 %1805 }
 0x65f   : > { %5655 = vrcp.f32 %v1806_v52 }
 0x660   : > { %v1809_v13 = vpop.xlane.xlu1 %1808 }
 0x661   : > { %5657 = vrcp.f32 %v1809_v13 }
 0x662   : > { %v1824_v35 = vpop.xlane.xlu0 %1823 }
 0x663   : > { %5659 = vrcp.f32 %v1824_v35 }
 0x664   : > { %v1827_v62 = vpop.xlane.xlu1 %1826 }
 0x665   : > { %v5652_v18 = vpop.eup %5651  ;;  %5661 = vrcp.f32 %v1827_v62 }
 0x666   : > { %v1818_v23 = vpop.xlane.xlu0 %1817  ;;  %v1838_v28 = vmul.f32 %v5652_v18, %v5636_v20 }
 0x667   : > { %v5654_v24 = vpop.eup %5653  ;;  %5663 = vrcp.f32 %v1818_v23 }
 0x668   : > { %v1839_v57 = vmul.f32 %v5654_v24, %v5638_v43  ;;  %v1821_v30 = vpop.xlane.xlu1 %1820  ;;  %v4790_v24 = vld [vmem:[%s6983_s9 + $0x1] ss:$0 sm:$0xff] }
 0x669   : > { %v5656_v32 = vpop.eup %5655  ;;  %5665 = vrcp.f32 %v1821_v30 }
 0x66a   : > { %v1845_v33 = vpack.c.bf16 %v1839_v57, %v1838_v28  ;;  %v1836_v42 = vmul.f32 %v5656_v32, %v5640_v47 }
 0x66b   : > { %v5658_v49 = vpop.eup %5657 }
 0x66c   : > { %v1837_v14 = vmul.f32 %v5658_v49, %v5642_v61  ;;  %5191 = vmatmul.mubr.msk.bf16.vlgmr.msra.gmra.mrb[32].mxu1 %vm580_vm0, %v1845_v33  ;;  %v4778_v49 = vld [vmem:[%s6981_s7 + $0x1] ss:$0 sm:$0xff] }
 0x66d   : > { %v5660_v8 = vpop.eup %5659  ;;  %5201 = vmatpush3.bf16.msra.mxu1 %v1564_v27  ;;  %5202 = vmatprep.mubr.msk.bf16.mxu1 %vm5772_vm2, %v5771_v2 }
 0x66e   : > { %v1844_v1 = vpack.c.bf16 %v1837_v14, %v1836_v42  ;;  %5218 = vmatprep.subr.bf16.mxu1 %v5553_v37  ;;  %v1842_v20 = vmul.f32 %v5660_v8, %v5644_v63 }
 0x66f   : > { %v5662_v45 = vpop.eup %5661 }
 0x670   : > { %v1843_v54 = vmul.f32 %v5662_v45, %v5646_v12  ;;  %5185 = vmatmul.mubr.msk.bf16.vlgmr.msra.gmra.mrb[24].mxu0 %vm580_vm0, %v1844_v1 }
 0x671   : > { %v5664_v53 = vpop.eup %5663  ;;  %5195 = vmatpush3.bf16.msra.mxu0 %v1563_v5  ;;  %5196 = vmatprep.mubr.msk.bf16.mxu0 %vm5772_vm2, %v5771_v2  ;;  %v5557_v5 = vld [vmem:[%s6984_s10 + $0x10] sm:$0xff]  }
 0x672   : > { %v1847_v6 = vpack.c.bf16 %v1843_v54, %v1842_v20  ;;  %5206 = vmatprep.subr.bf16.mxu0 %v5554_v48  ;;  %v1840_v51 = vmul.f32 %v5664_v53, %v5648_v19 }
 0x673   : > { %v5666_v27 = vpop.eup %5665 }
 0x674   : > { %v1841_v43 = vmul.f32 %v5666_v27, %v5650_v9  ;;  %5203 = vmatmul.mubr.msk.bf16.vlgmr.msra.gmra.mrb[36].mxu1 %vm580_vm0, %v1847_v6 }
 0x675   : > { %5219 = vmatpush3.bf16.msra.mxu1 %v5553_v37  ;;  %5222 = vmatprep.mubr.msk.bf16.mxu1 %vm757_vm1, %v6283_v15 }
 0x676   : > { %v1846_v21 = vpack.c.bf16 %v1841_v43, %v1840_v51  ;;  %5220 = vmatprep.subr.bf16.mxu1 %v5555_v22 }
 0x678   : > { %5197 = vmatmul.mubr.msk.bf16.vlgmr.msra.gmra.mrb[28].mxu0 %vm580_vm0, %v1846_v21 }
 0x679   : > { %5207 = vmatpush3.bf16.msra.mxu0 %v5554_v48  ;;  %5210 = vmatprep.mubr.msk.bf16.mxu0 %vm757_vm1, %v6305_v17 }
 0x67a   : > { %5221 = vmatpush3.bf16.msra.mxu1 %v5555_v22  ;;  %5208 = vmatprep.subr.bf16.mxu0 %v5556_v56 }
 0x67b   : > { %5242 = vmatprep.subr.bf16.mxu1 %v5771_v2 }
 0x67d   : > { %5223 = vmatmul.mubr.msk.bf16.vlgmr.msra.gmra.mrb[40].mxu1 %vm757_vm1, %v6293_v40  ;;  %5209 = vmatpush3.bf16.msra.mxu0 %v5556_v56 }
 0x67e   : > { %5226 = vmatprep.mubr.msk.bf16.mxu1 %vm757_vm1, %v6327_v34  ;;  %5230 = vmatprep.subr.bf16.mxu0 %v5557_v5 }
 0x680   : > { %5211 = vmatmul.mubr.msk.bf16.vlgmr.msra.gmra.mrb[32].mxu0 %vm757_vm1, %v6315_v29 }
 0x681   : > { %5214 = vmatprep.mubr.msk.bf16.mxu0 %vm757_vm1, %v6347_v0  ;;  %5231 = vmatpush3.bf16.msra.mxu0 %v5557_v5 }
 0x682   : > { %5232 = vmatprep.subr.bf16.mxu0 %v5558_v3 }
 0x685   : > { %5227 = vmatmul.mubr.msk.bf16.gmra.mrb[44].mxu1 %vm757_vm1, %v6337_v41  ;;  %5233 = vmatpush3.bf16.msra.mxu0 %v5558_v3 }
 0x686   : > { %5244 = vmatprep.mubr.msk.bf16.mxu1 %vm5772_vm2, %v5771_v2  ;;  %5254 = vmatprep.subr.bf16.mxu0 %v5771_v2 }
 0x688   : > { %5215 = vmatmul.mubr.msk.bf16.gmra.mrb[36].mxu0 %vm757_vm1, %v6354_v25 }
 0x689   : > { %5234 = vmatprep.mubr.msk.bf16.mxu0 %vm757_vm1, %v6283_v15 }
 0x690   : > { %5235 = vmatmul.mubr.msk.bf16.vlgmr.msra.gmra.mrb[40].mxu0 %vm757_vm1, %v6293_v40 }
 0x691   : > { %5238 = vmatprep.mubr.msk.bf16.mxu0 %vm757_vm1, %v6327_v34 }
 0x698   : > { %5239 = vmatmul.mubr.msk.bf16.gmra.mrb[44].mxu0 %vm757_vm1, %v6337_v41 }
 0x699   : > { %5256 = vmatprep.mubr.msk.bf16.mxu0 %vm5772_vm2, %v5771_v2 }
 0x73f   : > { %v6499_v26 = vpop.f32.mrb[32].mxu1 }
 0x740   : > { %v5192_v47 = vpop.f32.mrb[33].mxu1 }
 0x741   : > { %v6501_v58 = vpop.f32.mrb[34].mxu1 }
 0x742   : > { %v2025_v61 = vpack.c.bf16 %v6501_v58, %v6499_v26  ;;  %v5193_v16 = vpop.f32.mrb[35].mxu1 }
 0x743   : > { %v6505_v63 = vpop.f32.mrb[24].mxu0 }
 0x744   : > { %v5186_v36 = vpop.f32.mrb[25].mxu0 }
 0x745   : > { %v6507_v12 = vpop.f32.mrb[26].mxu0 }
 0x746   : > { %v2024_v10 = vpack.c.bf16 %v6507_v12, %v6505_v63  ;;  %v5187_v19 = vpop.f32.mrb[27].mxu0 }
 0x747   : > { %v6511_v4 = vpop.f32.mrb[36].mxu1 }
 0x748   : > { %v5204_v9 = vpop.f32.mrb[37].mxu1 }
 0x749   : > { %v6513_v31 = vpop.f32.mrb[38].mxu1 }
 0x74a   : > { %v2027_v11 = vpack.c.bf16 %v6513_v31, %v6511_v4  ;;  %v5205_v46 = vpop.f32.mrb[39].mxu1 }
 0x74b   : > { %v6517_v52 = vpop.f32.mrb[28].mxu0 }
 0x74c   : > { %v5198_v13 = vpop.f32.mrb[29].mxu0 }
 0x74d   : > { %v6519_v35 = vpop.f32.mrb[30].mxu0 }
 0x74e   : > { %v2026_v62 = vpack.c.bf16 %v6519_v35, %v6517_v52  ;;  %v5199_v18 = vpop.f32.mrb[31].mxu0 }
 0x750   : > { %v5224_v23 = vpop.f32.mrb[40].mxu1 }
 0x751   : > { %v2178_v28 = vpop.f32.mrb[41].mxu1  ;;  %v2187_v30 = vadd.f32 %v5224_v23, %v4790_v24 }
 0x752   : > { %v5225_v57 = vpop.f32.mrb[42].mxu1  ;;  %v2179_v42 = vadd.f32 %v4790_v24, %v2178_v28 }
 0x753   : > { %v2190_v32 = vadd.f32 %v5225_v57, %v4790_v24  ;;  %v2181_v33 = vpop.f32.mrb[43].mxu1  ;;  %v5212_v37 = vpop.f32.mrb[32].mxu0 }
 0x754   : > { %v2182_v14 = vadd.f32 %v4790_v24, %v2181_v33  ;;  %v2088_v8 = vpop.f32.mrb[33].mxu0  ;;  %v2097_v20 = vadd.f32 %v5212_v37, %v4778_v49 }
 0x755   : > { %v2304_v1 = vpack.c.bf16 %v2190_v32, %v2187_v30  ;;  %v5213_v48 = vpop.f32.mrb[34].mxu0  ;;  %v2089_v6 = vadd.f32 %v4778_v49, %v2088_v8 }
 0x756   : > { %v2303_v45 = vpack.c.bf16 %v2182_v14, %v2179_v42  ;;  %v2100_v54 = vadd.f32 %v5213_v48, %v4778_v49  ;;  %v2091_v53 = vpop.f32.mrb[35].mxu0 }
 0x757   : > { %v2092_v22 = vadd.f32 %v4778_v49, %v2091_v53  ;;  %v2365_v42 = vsel %vm1567_vm3, %v2304_v1, 0 }
 0x758   : > { %v2300_v27 = vpack.c.bf16 %v2100_v54, %v2097_v20  ;;  %v5228_v51 = vpop.f32.mrb[44].mxu1  ;;  %v2318_v43 = vsel %vm1567_vm3, %v2303_v45, 0 }
 0x759   : > { %v2299_v21 = vpack.c.bf16 %v2092_v22, %v2089_v6  ;;  %v2194_v56 = vpop.f32.mrb[45].mxu1  ;;  %5243 = vmatpush3.bf16.xpose.msra.mxu1 %v2318_v43  ;;  %v2203_v3 = vadd.f32 %v5228_v51, %v4790_v24 }
 0x75a   : > { %v5229_v5 = vpop.f32.mrb[46].mxu1  ;;  %5248 = vmatprep.subr.bf16.mxu1 %v5771_v2  ;;  %v2195_v19 = vadd.f32 %v4790_v24, %v2194_v56 }
 0x75b   : > { %v2206_v47 = vadd.f32 %v5229_v5, %v4790_v24  ;;  %v2197_v16 = vpop.f32.mrb[47].mxu1  ;;  %v5216_v36 = vpop.f32.mrb[36].mxu0 }
 0x75c   : > { %v2198_v9 = vadd.f32 %v4790_v24, %v2197_v16  ;;  %v2104_v46 = vpop.f32.mrb[37].mxu0  ;;  %v2113_v28 = vadd.f32 %v5216_v36, %v4778_v49 }
 0x75d   : > { %v2306_v13 = vpack.c.bf16 %v2206_v47, %v2203_v3  ;;  %v5217_v18 = vpop.f32.mrb[38].mxu0  ;;  %v2105_v32 = vadd.f32 %v4778_v49, %v2104_v46 }
 0x75e   : > { %v2305_v23 = vpack.c.bf16 %v2198_v9, %v2195_v19  ;;  %v2116_v57 = vadd.f32 %v5217_v18, %v4778_v49  ;;  %v2107_v30 = vpop.f32.mrb[39].mxu0 }
 0x75f   : > { %v2108_v33 = vadd.f32 %v4778_v49, %v2107_v30  ;;  %v4802_v49 = vld [vmem:[%s6985_s11 + $0x1] ss:$0 sm:$0xff]  ;;  %v2459_v51 = vsel %vm1567_vm3, %v2306_v13, 0 }
 0x760   : > { %v2302_v37 = vpack.c.bf16 %v2116_v57, %v2113_v28  ;;  %5245 = vmatmul.mubr.msk.bf16.vlgmr.msra.gmra.mrb[48].mxu1 %vm1567_vm3, %v2299_v21  ;;  %v2412_v14 = vsel %vm1567_vm3, %v2305_v23, 0  ;;  %v4809_v28 = vld [vmem:[%s6986_s12 + $0x10] sm:$0xff] }
 0x761   : > { %v2301_v8 = vpack.c.bf16 %v2108_v33, %v2105_v32  ;;  %5249 = vmatpush3.bf16.xpose.msra.mxu1 %v2365_v42  ;;  %5255 = vmatpush3.bf16.xpose.msra.mxu0 %v2412_v14  ;;  %v4810_v42 = vld [vmem:[%s6986_s12 + $0x18] sm:$0xff] }
 0x762   : > { %5250 = vmatprep.mubr.msk.bf16.mxu1 %vm5772_vm2, %v5771_v2  ;;  %5260 = vmatprep.subr.bf16.mxu1 %v5771_v2 }
 0x763   : > { %v5236_v24 = vpop.f32.mrb[40].mxu0  ;;  %5266 = vmatprep.subr.bf16.mxu0 %v5771_v2 }
 0x764   : > { %v2268_v48 = vpop.f32.mrb[41].mxu0  ;;  %v2277_v1 = vadd.f32 %v5236_v24, %v4802_v49 }
 0x765   : > { %v5237_v45 = vpop.f32.mrb[42].mxu0  ;;  %v2269_v53 = vadd.f32 %v4802_v49, %v2268_v48 }
 0x766   : > { %v2280_v20 = vadd.f32 %v5237_v45, %v4802_v49  ;;  %v2271_v54 = vpop.f32.mrb[43].mxu0 }
 0x767   : > { %v2272_v6 = vadd.f32 %v4802_v49, %v2271_v54 }
 0x768   : > { %v2308_v22 = vpack.c.bf16 %v2280_v20, %v2277_v1  ;;  %5251 = vmatmul.mubr.msk.bf16.vlgmr.msra.gmra.mrb[52].mxu1 %vm1567_vm3, %v2300_v27  ;;  %5257 = vmatmul.mubr.msk.bf16.vlgmr.msra.gmra.mrb[48].mxu0 %vm1567_vm3, %v2301_v8 }
 0x769   : > { %v2307_v43 = vpack.c.bf16 %v2272_v6, %v2269_v53  ;;  %5261 = vmatpush3.bf16.xpose.msra.mxu1 %v2459_v51  ;;  %5262 = vmatprep.mubr.msk.bf16.mxu1 %vm5772_vm2, %v5771_v2 }
 0x76a   : > { %5272 = vmatprep.subr.bf16.mxu1 %v5771_v2  ;;  %5268 = vmatprep.mubr.msk.bf16.mxu0 %vm5772_vm2, %v5771_v2 }
 0x76b   : > { %v5240_v21 = vpop.f32.mrb[44].mxu0  ;;  %5267 = vmatpush3.bf16.msra.mxu0 %v2307_v43 }
 0x76c   : > { %v6549_v56 = vadd.f32 %v5240_v21, %v4802_v49  ;;  %v2284_v5 = vpop.f32.mrb[45].mxu0  ;;  %5278 = vmatprep.subr.bf16.mxu0 %v5771_v2 }
 0x76d   : > { %v6552_v27 = vadd.f32 %v4802_v49, %v2284_v5  ;;  %v5241_v3 = vpop.f32.mrb[46].mxu0 }
 0x76e   : > { %v6554_v47 = vadd.f32 %v5241_v3, %v4802_v49  ;;  %v2287_v16 = vpop.f32.mrb[47].mxu0 }
 0x76f   : > { %v6556_v36 = vadd.f32 %v4802_v49, %v2287_v16 }
 0x770   : > { %v2310_v19 = vpack.c.bf16 %v6554_v47, %v6549_v56  ;;  %5263 = vmatmul.mubr.msk.bf16.vlgmr.msra.gmra.mrb[56].mxu1 %vm1567_vm3, %v2302_v37  ;;  %v5561_v47 = vld [vmem:[%s6982_s8 + $0x20] sm:$0xff]  }
 0x771   : > { %v2309_v9 = vpack.c.bf16 %v6556_v36, %v6552_v27  ;;  %5273 = vmatpush3.bf16.msra.mxu1 %v2308_v22  ;;  %5274 = vmatprep.mubr.msk.bf16.mxu1 %vm5772_vm2, %v5771_v2  ;;  %v4819_v36 = vld [vmem:[%s6987_s13 + $0x4] sm:$0xf] }
 0x772   : > { %5284 = vmatprep.subr.bf16.mxu1 %v5771_v2 }
 0x833   : > { %v2354_v46 = vpop.f32.mrb[48].mxu1 }
 0x834   : > { %v5246_v13 = vpop.f32.mrb[49].mxu1  ;;  %v2355_v22 = vadd.f32 %v4809_v28, %v2354_v46 }
 0x835   : > { %v2357_v18 = vpop.f32.mrb[50].mxu1 }
 0x836   : > { %v5247_v23 = vpop.f32.mrb[51].mxu1  ;;  %v2358_v5 = vadd.f32 %v4810_v42, %v2357_v18  ;;  %v2502_v13 = vsel %vm580_vm0, %v2355_v22, -inf }
 0x83b   : > { %v2401_v57 = vpop.f32.mrb[52].mxu1  ;;  %v2448_v30 = vpop.f32.mrb[48].mxu0 }
 0x83c   : > { %v2402_v32 = vadd.f32 %v4809_v28, %v2401_v57  ;;  %v5252_v33 = vpop.f32.mrb[53].mxu1  ;;  %v5258_v37 = vpop.f32.mrb[49].mxu0  ;;  %v2449_v16 = vadd.f32 %v4809_v28, %v2448_v30  ;;  %v2505_v57 = vsel %vm580_vm0, %v2358_v5, -inf }
 0x83d   : > { %v2404_v14 = vpop.f32.mrb[54].mxu1  ;;  %v2451_v8 = vpop.f32.mrb[50].mxu0 }
 0x83e   : > { %v2405_v24 = vadd.f32 %v4810_v42, %v2404_v14  ;;  %v5253_v49 = vpop.f32.mrb[55].mxu1  ;;  %v5259_v48 = vpop.f32.mrb[51].mxu0  ;;  %v2508_v45 = vsel %vm580_vm0, %v2402_v32, -inf  ;;  %v2452_v23 = vadd.f32 %v4810_v42, %v2451_v8  ;;  %v2514_v33 = vsel %vm580_vm0, %v2449_v16, -inf }
 0x83f   : > { %2509 = vmax.xlane.f32.xlu0 %v2508_v45 }
 0x840   : > { %v2511_v1 = vsel %vm580_vm0, %v2405_v24, -inf  ;;  %v2517_v46 = vsel %vm580_vm0, %v2452_v23, -inf }
 0x841   : > { %2512 = vmax.xlane.f32.xlu1 %v2511_v1 }
 0x843   : > { %v2495_v20 = vpop.f32.mrb[56].mxu1 }
 0x844   : > { %v2496_v54 = vadd.f32 %v4809_v28, %v2495_v20  ;;  %v5264_v53 = vpop.f32.mrb[57].mxu1 }
 0x845   : > { %v2498_v6 = vpop.f32.mrb[58].mxu1 }
 0x846   : > { %v2499_v51 = vadd.f32 %v4810_v42, %v2498_v6  ;;  %v5265_v43 = vpop.f32.mrb[59].mxu1  ;;  %v2520_v21 = vsel %vm580_vm0, %v2496_v54, -inf }
 0x847   : > { %2521 = vmax.xlane.f32.xlu0 %v2520_v21 }
 0x848   : > { %v2523_v3 = vsel %vm580_vm0, %v2499_v51, -inf }
 0x849   : > { %2524 = vmax.xlane.f32.xlu1 %v2523_v3 }
 0x84b   : > { %2503 = vmax.xlane.f32.xlu0 %v2502_v13 }
 0x84d   : > { %2506 = vmax.xlane.f32.xlu1 %v2505_v57 }
 0x84f   : > { %2515 = vmax.xlane.f32.xlu0 %v2514_v33 }
 0x851   : > { %2518 = vmax.xlane.f32.xlu1 %v2517_v46 }
 0x8cc   : > { %v2510_v37 = vpop.xlane.xlu0 %2509 }
 0x8cd   : > { %v2528_v14 = vsub.f32 %v2402_v32, %v2510_v37 }
 0x8ce   : > { %v2513_v18 = vpop.xlane.xlu1 %2512 }
 0x8cf   : > { %v2538_v49 = vmul.f32 1.442695, %v2528_v14  ;;  %v2529_v48 = vsub.f32 %v2405_v24, %v2513_v18 }
 0x8d1   : > { %5667 = vpow2.f32 %v2538_v49  ;;  %v2540_v28 = vmul.f32 1.442695, %v2529_v48 }
 0x8d3   : > { %5669 = vpow2.f32 %v2540_v28 }
 0x8d4   : > { %v2522_v30 = vpop.xlane.xlu0 %2521 }
 0x8d5   : > { %v2532_v45 = vsub.f32 %v2496_v54, %v2522_v30 }
 0x8d6   : > { %v2525_v42 = vpop.xlane.xlu1 %2524 }
 0x8d7   : > { %v2546_v8 = vmul.f32 1.442695, %v2532_v45  ;;  %v2533_v1 = vsub.f32 %v2499_v51, %v2525_v42 }
 0x8d8   : > { %v2504_v20 = vpop.xlane.xlu0 %2503 }
 0x8d9   : > { %5671 = vpow2.f32 %v2546_v8  ;;  %v2548_v53 = vmul.f32 1.442695, %v2533_v1  ;;  %v2526_v6 = vsub.f32 %v2355_v22, %v2504_v20 }
 0x8da   : > { %v2507_v43 = vpop.xlane.xlu1 %2506 }
 0x8db   : > { %v5668_v21 = vpop.eup %5667  ;;  %5673 = vpow2.f32 %v2548_v53  ;;  %v2534_v3 = vmul.f32 1.442695, %v2526_v6  ;;  %v2527_v32 = vsub.f32 %v2358_v5, %v2507_v43 }
 0x8dc   : > { %v2516_v13 = vpop.xlane.xlu0 %2515  ;;  %v2556_v24 = vsel %vm580_vm0, %v5668_v21, 0.0 }
 0x8dd   : > { %v5670_v57 = vpop.eup %5669  ;;  %5675 = vpow2.f32 %v2534_v3  ;;  %v2536_v33 = vmul.f32 1.442695, %v2527_v32  ;;  %v2530_v46 = vsub.f32 %v2449_v16, %v2516_v13  ;;  %2557 = vadd.xlane.f32.xlu0 %v2556_v24 }
 0x8de   : > { %v2519_v54 = vpop.xlane.xlu1 %2518  ;;  %v2559_v51 = vsel %vm580_vm0, %v5670_v57, 0.0 }
 0x8df   : > { %5677 = vpow2.f32 %v2536_v33  ;;  %v2542_v37 = vmul.f32 1.442695, %v2530_v46  ;;  %v2531_v14 = vsub.f32 %v2452_v23, %v2519_v54  ;;  %2560 = vadd.xlane.f32.xlu1 %v2559_v51  ;;  %v5559_v51 = vld [vmem:[%s6980_s6 + $0x20] sm:$0xff]  }
 0x8e1   : > { %5679 = vpow2.f32 %v2542_v37  ;;  %v2544_v22 = vmul.f32 1.442695, %v2531_v14 }
 0x8e3   : > { %v5672_v18 = vpop.eup %5671  ;;  %5681 = vpow2.f32 %v2544_v22 }
 0x8e4   : > { %v2568_v5 = vsel %vm580_vm0, %v5672_v18, 0.0 }
 0x8e5   : > { %v5674_v49 = vpop.eup %5673  ;;  %2569 = vadd.xlane.f32.xlu0 %v2568_v5 }
 0x8e6   : > { %v2571_v48 = vsel %vm580_vm0, %v5674_v49, 0.0 }
 0x8e7   : > { %v5676_v28 = vpop.eup %5675  ;;  %2572 = vadd.xlane.f32.xlu1 %v2571_v48 }
 0x8e8   : > { %v2550_v16 = vsel %vm580_vm0, %v5676_v28, 0.0 }
 0x8e9   : > { %v5678_v30 = vpop.eup %5677  ;;  %2551 = vadd.xlane.f32.xlu0 %v2550_v16 }
 0x8ea   : > { %v2553_v45 = vsel %vm580_vm0, %v5678_v30, 0.0 }
 0x8eb   : > { %v5680_v23 = vpop.eup %5679  ;;  %2554 = vadd.xlane.f32.xlu1 %v2553_v45  ;;  %v5560_v45 = vld [vmem:[%s6980_s6 + $0x28] sm:$0xff]  }
 0x8ec   : > { %v2562_v42 = vsel %vm580_vm0, %v5680_v23, 0.0 }
 0x8ed   : > { %v5682_v8 = vpop.eup %5681  ;;  %2563 = vadd.xlane.f32.xlu0 %v2562_v42 }
 0x8ee   : > { %v2565_v1 = vsel %vm580_vm0, %v5682_v8, 0.0 }
 0x8ef   : > { %2566 = vadd.xlane.f32.xlu1 %v2565_v1 }
 0x96a   : > { %v2558_v20 = vpop.xlane.xlu0 %2557 }
 0x96b   : > { %5683 = vrcp.f32 %v2558_v20 }
 0x96c   : > { %v2561_v53 = vpop.xlane.xlu1 %2560 }
 0x96d   : > { %5685 = vrcp.f32 %v2561_v53 }
 0x972   : > { %v2570_v6 = vpop.xlane.xlu0 %2569 }
 0x973   : > { %5687 = vrcp.f32 %v2570_v6 }
 0x974   : > { %v2573_v43 = vpop.xlane.xlu1 %2572 }
 0x975   : > { %v5684_v3 = vpop.eup %5683  ;;  %5689 = vrcp.f32 %v2573_v43 }
 0x976   : > { %v2552_v32 = vpop.xlane.xlu0 %2551  ;;  %v2584_v24 = vmul.f32 %v5684_v3, %v5668_v21 }
 0x977   : > { %v5686_v13 = vpop.eup %5685  ;;  %5691 = vrcp.f32 %v2552_v32 }
 0x978   : > { %v2585_v33 = vmul.f32 %v5686_v13, %v5670_v57  ;;  %v2555_v46 = vpop.xlane.xlu1 %2554 }
 0x979   : > { %5693 = vrcp.f32 %v2555_v46 }
 0x97a   : > { %v2591_v54 = vpack.c.bf16 %v2585_v33, %v2584_v24  ;;  %v2564_v37 = vpop.xlane.xlu0 %2563 }
 0x97c   : > { %5275 = vmatmul.mubr.msk.bf16.vlgmr.msra.gmra.mrb[60].mxu1 %vm580_vm0, %v2591_v54  ;;  %v2567_v14 = vpop.xlane.xlu1 %2566 }
 0x97d   : > { %v5688_v22 = vpop.eup %5687  ;;  %5285 = vmatpush3.bf16.msra.mxu1 %v2310_v19  ;;  %5695 = vrcp.f32 %v2567_v14  ;;  %5286 = vmatprep.mubr.msk.bf16.mxu1 %vm5772_vm2, %v5771_v2 }
 0x97e   : > { %5310 = vmatprep.subr.bf16.mxu1 %v5559_v51  ;;  %5697 = vrcp.f32 %v2564_v37  ;;  %v2588_v57 = vmul.f32 %v5688_v22, %v5672_v18 }
 0x97f   : > { %v5690_v21 = vpop.eup %5689 }
 0x980   : > { %v2589_v5 = vmul.f32 %v5690_v21, %v5674_v49 }
 0x981   : > { %v5692_v48 = vpop.eup %5691 }
 0x982   : > { %v2593_v16 = vpack.c.bf16 %v2589_v5, %v2588_v57  ;;  %v2582_v1 = vmul.f32 %v5692_v48, %v5676_v28  ;;  %v5562_v28 = vld [vmem:[%s6982_s8 + $0x28] sm:$0xff]   ;;  %v4833_v57 = vld [vmem:[%s6981_s7 + $0x2] ss:$0 sm:$0xff] }
 0x983   : > { %v5694_v42 = vpop.eup %5693  ;;  %v5563_v48 = vld [vmem:[%s6984_s10 + $0x20] sm:$0xff]  }
 0x984   : > { %v2583_v20 = vmul.f32 %v5694_v42, %v5678_v30  ;;  %5287 = vmatmul.mubr.msk.bf16.vlgmr.msra.gmra.mrb[64].mxu1 %vm580_vm0, %v2593_v16 }
 0x985   : > { %5311 = vmatpush3.bf16.msra.mxu1 %v5559_v51  ;;  %5314 = vmatprep.mubr.msk.bf16.mxu1 %vm757_vm1, %v6305_v17 }
 0x986   : > { %v2590_v56 = vpack.c.bf16 %v2583_v20, %v2582_v1  ;;  %5312 = vmatprep.subr.bf16.mxu1 %v5560_v45 }
 0x987   : > { %v5696_v19 = vpop.eup %5695 }
 0x988   : > { %5269 = vmatmul.mubr.msk.bf16.vlgmr.msra.gmra.mrb[52].mxu0 %vm580_vm0, %v2590_v56  ;;  %v5698_v18 = vpop.eup %5697  ;;  %v2587_v49 = vmul.f32 %v5696_v19, %v5682_v8 }
 0x989   : > { %5279 = vmatpush3.bf16.msra.mxu0 %v2309_v9  ;;  %5313 = vmatpush3.bf16.msra.mxu1 %v5560_v45  ;;  %v2586_v30 = vmul.f32 %v5698_v18, %v5680_v23  ;;  %v2790_v9 = vsel %vm2788_vm4, %v4819_v36, 0  ;;  %v2028_v23 = vld [vmem:[%s6987_s13] sm:$0xf] }
 0x98a   : > { %5280 = vmatprep.mubr.msk.bf16.mxu0 %vm5772_vm2, %v5771_v2  ;;  %5322 = vmatprep.subr.bf16.mxu1 %v5561_v47  ;;  %v2870_v5 = vsel %vm2788_vm4, %v2028_v23, 0 }
 0x98b   : > { %v2592_v27 = vpack.c.bf16 %v2587_v49, %v2586_v30  ;;  %5524 = vmatprep.subr.msk.bf16.mxu0 %vm2788_vm4, %v4819_v36 }
 0x98c   : > { %5315 = vmatmul.mubr.msk.bf16.vlgmr.msra.gmra.mrb[68].mxu1 %vm757_vm1, %v6315_v29 }
 0x98d   : > { %5318 = vmatprep.mubr.msk.bf16.mxu1 %vm757_vm1, %v6347_v0  ;;  %5323 = vmatpush3.bf16.msra.mxu1 %v5561_v47 }
 0x98e   : > { %5324 = vmatprep.subr.bf16.mxu1 %v5562_v28 }
 0x990   : > { %5281 = vmatmul.mubr.msk.bf16.vlgmr.msra.gmra.mrb[56].mxu0 %vm580_vm0, %v2592_v27 }
 0x991   : > { %5325 = vmatpush3.bf16.msra.mxu1 %v5562_v28  ;;  %5291 = vmatpush3.bf16.msra.mxu0 %v2790_v9 }
 0x992   : > { %5346 = vmatprep.subr.bf16.mxu1 %v5771_v2  ;;  %5525 = vmatprep.subr.msk.bf16.mxu0 %vm2788_vm4, %v2028_v23 }
 0x994   : > { %5319 = vmatmul.mubr.msk.bf16.gmra.mrb[72].mxu1 %vm757_vm1, %v6354_v25 }
 0x995   : > { %5326 = vmatprep.mubr.msk.bf16.mxu1 %vm757_vm1, %v6283_v15 }
 0x99c   : > { %5327 = vmatmul.mubr.msk.bf16.vlgmr.msra.gmra.mrb[76].mxu1 %vm757_vm1, %v6293_v40 }
 0x99d   : > { %5330 = vmatprep.mubr.msk.bf16.mxu1 %vm757_vm1, %v6327_v34 }
 0x9a4   : > { %5331 = vmatmul.mubr.msk.bf16.gmra.mrb[80].mxu1 %vm757_vm1, %v6337_v41 }
 0x9a5   : > { %5348 = vmatprep.mubr.msk.bf16.mxu1 %vm5772_vm2, %v5771_v2 }
 0xa4f   : > { %v2675_v8 = vpop.f32.mrb[60].mxu1 }
 0xa50   : > { %v5276_v53 = vpop.f32.mrb[61].mxu1 }
 0xa51   : > { %v2678_v6 = vpop.f32.mrb[62].mxu1 }
 0xa52   : > { %v2771_v43 = vpack.c.bf16 %v2678_v6, %v2675_v8  ;;  %v5277_v3 = vpop.f32.mrb[63].mxu1 }
 0xa57   : > { %v2763_v32 = vpop.f32.mrb[64].mxu1 }
 0xa58   : > { %v5288_v13 = vpop.f32.mrb[65].mxu1 }
 0xa59   : > { %v2766_v24 = vpop.f32.mrb[66].mxu1 }
 0xa5a   : > { %v2773_v33 = vpack.c.bf16 %v2766_v24, %v2763_v32  ;;  %v5289_v46 = vpop.f32.mrb[67].mxu1 }
 0xa5b   : > { %v2631_v54 = vpop.f32.mrb[52].mxu0 }
 0xa5c   : > { %v5270_v51 = vpop.f32.mrb[53].mxu0 }
 0xa5d   : > { %v2634_v37 = vpop.f32.mrb[54].mxu0 }
 0xa5e   : > { %v2770_v14 = vpack.c.bf16 %v2634_v37, %v2631_v54  ;;  %v5271_v22 = vpop.f32.mrb[55].mxu0  ;;  %v4845_v54 = vld [vmem:[%s6983_s9 + $0x2] ss:$0 sm:$0xff] }
 0xa5f   : > { %v5316_v21 = vpop.f32.mrb[68].mxu1 }
 0xa60   : > { %5292 = vmatprep.mubr.msk.bf16.mxu0 %vm1567_vm3, %v2770_v14  ;;  %v2996_v16 = vpop.f32.mrb[69].mxu1  ;;  %v6651_v42 = vadd.f32 %v5316_v21, %v4833_v57 }
 0xa61   : > { %5293 = vmatmul.mubr.msk.bf16.vlgmr.msra.gmra.mrb[60].mxu0 %vm1567_vm3, %v2771_v43  ;;  %v5317_v45 = vpop.f32.mrb[70].mxu1  ;;  %v2997_v56 = vadd.f32 %v4833_v57, %v2996_v16 }
 0xa62   : > { %v6653_v1 = vadd.f32 %v5317_v45, %v4833_v57  ;;  %v2999_v20 = vpop.f32.mrb[71].mxu1  ;;  %5301 = vmatpush3.bf16.msra.mxu0 %v2870_v5 }
 0xa63   : > { %v3000_v47 = vadd.f32 %v4833_v57, %v2999_v20  ;;  %v2719_v19 = vpop.f32.mrb[56].mxu0  ;;  %5334 = vmatprep.subr.bf16.mxu0 %v5563_v48 }
 0xa64   : > { %v3208_v18 = vpack.c.bf16 %v6653_v1, %v6651_v42  ;;  %v5282_v49 = vpop.f32.mrb[57].mxu0 }
 0xa65   : > { %v3207_v28 = vpack.c.bf16 %v3000_v47, %v2997_v56  ;;  %v2722_v30 = vpop.f32.mrb[58].mxu0  ;;  %v4865_v56 = vld [vmem:[%s6986_s12 + $0x28] sm:$0xff]  ;;  %v4857_v49 = vld [vmem:[%s6985_s11 + $0x2] ss:$0 sm:$0xff] }
 0xa66   : > { %v2772_v27 = vpack.c.bf16 %v2722_v30, %v2719_v19  ;;  %v5283_v36 = vpop.f32.mrb[59].mxu0 }
 0xa67   : > { %v5320_v9 = vpop.f32.mrb[72].mxu1 }
 0xa68   : > { %5296 = vmatprep.mubr.msk.bf16.mxu0 %vm1567_vm3, %v2772_v27  ;;  %v3012_v23 = vpop.f32.mrb[73].mxu1  ;;  %v3021_v53 = vadd.f32 %v5320_v9, %v4833_v57 }
 0xa69   : > { %5297 = vmatmul.mubr.msk.bf16.gmra.mrb[64].mxu0 %vm1567_vm3, %v2773_v33  ;;  %v5321_v8 = vpop.f32.mrb[74].mxu1  ;;  %v3013_v3 = vadd.f32 %v4833_v57, %v3012_v23  ;;  %v5564_v33 = vld [vmem:[%s6984_s10 + $0x28] sm:$0xff]  }
 0xa6a   : > { %v3024_v6 = vadd.f32 %v5321_v8, %v4833_v57  ;;  %5302 = vmatprep.mubr.msk.bf16.mxu0 %vm1567_vm3, %v2024_v10  ;;  %v3015_v43 = vpop.f32.mrb[75].mxu1 }
 0xa6b   : > { %v3016_v32 = vadd.f32 %v4833_v57, %v3015_v43 }
 0xa6c   : > { %v3210_v13 = vpack.c.bf16 %v3024_v6, %v3021_v53 }
 0xa6d   : > { %v3209_v24 = vpack.c.bf16 %v3016_v32, %v3013_v3 }
 0xa6f   : > { %v5328_v46 = vpop.f32.mrb[76].mxu1 }
 0xa70   : > { %v3086_v51 = vpop.f32.mrb[77].mxu1  ;;  %v3095_v12 = vadd.f32 %v5328_v46, %v4845_v54 }
 0xa71   : > { %5303 = vmatmul.mubr.msk.bf16.vlgmr.msra.gmra.mrb[60].mxu0 %vm1567_vm3, %v2025_v61  ;;  %v5329_v63 = vpop.f32.mrb[78].mxu1  ;;  %v3087_v14 = vadd.f32 %v4845_v54, %v3086_v51 }
 0xa72   : > { %v3098_v10 = vadd.f32 %v5329_v63, %v4845_v54  ;;  %5306 = vmatprep.mubr.msk.bf16.mxu0 %vm1567_vm3, %v2026_v62  ;;  %v3089_v37 = vpop.f32.mrb[79].mxu1  ;;  %5335 = vmatpush3.bf16.msra.mxu0 %v5563_v48 }
 0xa73   : > { %v3090_v22 = vadd.f32 %v4845_v54, %v3089_v37  ;;  %5336 = vmatprep.subr.bf16.mxu0 %v5564_v33 }
 0xa74   : > { %v3212_v21 = vpack.c.bf16 %v3098_v10, %v3095_v12 }
 0xa75   : > { %v3211_v57 = vpack.c.bf16 %v3090_v22, %v3087_v14 }
 0xa76   : > { %5337 = vmatpush3.bf16.msra.mxu0 %v5564_v33  ;;  %v3273_v1 = vsel %vm1567_vm3, %v3212_v21, 0 }
 0xa77   : > { %v5332_v5 = vpop.f32.mrb[80].mxu1  ;;  %v3226_v26 = vsel %vm1567_vm3, %v3211_v57, 0  ;;  %5358 = vmatprep.subr.bf16.mxu0 %v5771_v2 }
 0xa78   : > { %v3102_v58 = vpop.f32.mrb[81].mxu1  ;;  %5347 = vmatpush3.bf16.xpose.msra.mxu1 %v3226_v26  ;;  %v3111_v52 = vadd.f32 %v5332_v5, %v4845_v54 }
 0xa79   : > { %5307 = vmatmul.mubr.msk.bf16.gmra.mrb[64].mxu0 %vm1567_vm3, %v2027_v11  ;;  %v5333_v61 = vpop.f32.mrb[82].mxu1  ;;  %5352 = vmatprep.subr.bf16.mxu1 %v5771_v2  ;;  %v3103_v48 = vadd.f32 %v4845_v54, %v3102_v58  ;;  %v4864_v11 = vld [vmem:[%s6986_s12 + $0x20] sm:$0xff] }
 0xa7a   : > { %v3114_v35 = vadd.f32 %v5333_v61, %v4845_v54  ;;  %v3105_v62 = vpop.f32.mrb[83].mxu1  ;;  %5338 = vmatprep.mubr.msk.bf16.mxu0 %vm757_vm1, %v6283_v15 }
 0xa7b   : > { %v3106_v16 = vadd.f32 %v4845_v54, %v3105_v62 }
 0xa7c   : > { %v3214_v45 = vpack.c.bf16 %v3114_v35, %v3111_v52 }
 0xa7d   : > { %v3213_v42 = vpack.c.bf16 %v3106_v16, %v3103_v48 }
 0xa7e   : > { %v3367_v31 = vsel %vm1567_vm3, %v3214_v45, 0 }
 0xa7f   : > { %5349 = vmatmul.mubr.msk.bf16.vlgmr.msra.gmra.mrb[84].mxu1 %vm1567_vm3, %v3207_v28  ;;  %v3320_v4 = vsel %vm1567_vm3, %v3213_v42, 0 }
 0xa80   : > { %5353 = vmatpush3.bf16.xpose.msra.mxu1 %v3273_v1  ;;  %5354 = vmatprep.mubr.msk.bf16.mxu1 %vm5772_vm2, %v5771_v2 }
 0xa81   : > { %5339 = vmatmul.mubr.msk.bf16.vlgmr.msra.gmra.mrb[68].mxu0 %vm757_vm1, %v6293_v40  ;;  %5364 = vmatprep.subr.bf16.mxu1 %v5771_v2 }
 0xa82   : > { %5359 = vmatpush3.bf16.xpose.msra.mxu0 %v3320_v4  ;;  %5342 = vmatprep.mubr.msk.bf16.mxu0 %vm757_vm1, %v6327_v34 }
 0xa83   : > { %5370 = vmatprep.subr.bf16.mxu0 %v5771_v2 }
 0xa87   : > { %5355 = vmatmul.mubr.msk.bf16.vlgmr.msra.gmra.mrb[88].mxu1 %vm1567_vm3, %v3208_v18 }
 0xa88   : > { %5365 = vmatpush3.bf16.xpose.msra.mxu1 %v3367_v31  ;;  %5366 = vmatprep.mubr.msk.bf16.mxu1 %vm5772_vm2, %v5771_v2 }
 0xa89   : > { %5343 = vmatmul.mubr.msk.bf16.gmra.mrb[72].mxu0 %vm757_vm1, %v6337_v41  ;;  %5376 = vmatprep.subr.bf16.mxu1 %v5771_v2 }
 0xa8a   : > { %5360 = vmatprep.mubr.msk.bf16.mxu0 %vm5772_vm2, %v5771_v2 }
 0xa8f   : > { %5367 = vmatmul.mubr.msk.bf16.vlgmr.msra.gmra.mrb[92].mxu1 %vm1567_vm3, %v3210_v13 }
 0xa90   : > { %5378 = vmatprep.mubr.msk.bf16.mxu1 %vm5772_vm2, %v5771_v2 }
 0xa91   : > { %5361 = vmatmul.mubr.msk.bf16.vlgmr.msra.gmra.mrb[76].mxu0 %vm1567_vm3, %v3209_v24 }
 0xa92   : > { %5372 = vmatprep.mubr.msk.bf16.mxu0 %vm5772_vm2, %v5771_v2 }
 0xb52   : > { %v3262_v20 = vpop.f32.mrb[84].mxu1 }
 0xb53   : > { %v6718_v47 = vadd.f32 %v4864_v11, %v3262_v20  ;;  %v5350_v19 = vpop.f32.mrb[85].mxu1 }
 0xb54   : > { %v5340_v18 = vpop.f32.mrb[68].mxu0  ;;  %v3265_v28 = vpop.f32.mrb[86].mxu1 }
 0xb55   : > { %v6723_v30 = vadd.f32 %v4865_v56, %v3265_v28  ;;  %v3176_v27 = vpop.f32.mrb[69].mxu0  ;;  %v5351_v36 = vpop.f32.mrb[87].mxu1  ;;  %v3410_v9 = vsel %vm580_vm0, %v6718_v47, -inf  ;;  %v3185_v8 = vadd.f32 %v5340_v18, %v4857_v49 }
 0xb56   : > { %v5341_v23 = vpop.f32.mrb[70].mxu0  ;;  %3411 = vmax.xlane.f32.xlu0 %v3410_v9  ;;  %v3177_v3 = vadd.f32 %v4857_v49, %v3176_v27 }
 0xb57   : > { %v3188_v53 = vadd.f32 %v5341_v23, %v4857_v49  ;;  %v3179_v6 = vpop.f32.mrb[71].mxu0  ;;  %v3413_v43 = vsel %vm580_vm0, %v6723_v30, -inf }
 0xb58   : > { %v3180_v32 = vadd.f32 %v4857_v49, %v3179_v6  ;;  %3414 = vmax.xlane.f32.xlu1 %v3413_v43 }
 0xb59   : > { %v3216_v13 = vpack.c.bf16 %v3188_v53, %v3185_v8 }
 0xb5a   : > { %v3215_v24 = vpack.c.bf16 %v3180_v32, %v3177_v3  ;;  %v3309_v46 = vpop.f32.mrb[88].mxu1 }
 0xb5b   : > { %v3310_v54 = vadd.f32 %v4864_v11, %v3309_v46  ;;  %v5356_v33 = vpop.f32.mrb[89].mxu1  ;;  %5377 = vmatpush3.bf16.msra.mxu1 %v3216_v13 }
 0xb5c   : > { %v5344_v51 = vpop.f32.mrb[72].mxu0  ;;  %v3312_v63 = vpop.f32.mrb[90].mxu1  ;;  %5371 = vmatpush3.bf16.msra.mxu0 %v3215_v24  ;;  %5388 = vmatprep.subr.bf16.mxu1 %v5771_v2 }
 0xb5d   : > { %v6730_v12 = vadd.f32 %v5344_v51, %v4857_v49  ;;  %v3313_v10 = vadd.f32 %v4865_v56, %v3312_v63  ;;  %v3192_v37 = vpop.f32.mrb[73].mxu0  ;;  %v5357_v14 = vpop.f32.mrb[91].mxu1  ;;  %v3416_v22 = vsel %vm580_vm0, %v3310_v54, -inf  ;;  %5382 = vmatprep.subr.bf16.mxu0 %v5771_v2 }
 0xb5e   : > { %v6734_v21 = vadd.f32 %v4857_v49, %v3192_v37  ;;  %v5345_v57 = vpop.f32.mrb[74].mxu0  ;;  %3417 = vmax.xlane.f32.xlu0 %v3416_v22 }
 0xb5f   : > { %v6736_v5 = vadd.f32 %v5345_v57, %v4857_v49  ;;  %v3195_v26 = vpop.f32.mrb[75].mxu0  ;;  %v3419_v58 = vsel %vm580_vm0, %v3313_v10, -inf }
 0xb60   : > { %v6739_v61 = vadd.f32 %v4857_v49, %v3195_v26  ;;  %3420 = vmax.xlane.f32.xlu1 %v3419_v58 }
 0xb61   : > { %v3218_v52 = vpack.c.bf16 %v6736_v5, %v6730_v12  ;;  %v5566_v12 = vld [vmem:[%s6980_s6 + $0x38] sm:$0xff]   ;;  %v5567_v5 = vld [vmem:[%s6984_s10 + $0x30] sm:$0xff]  }
 0xb62   : > { %v3217_v35 = vpack.c.bf16 %v6739_v61, %v6734_v21  ;;  %v3403_v62 = vpop.f32.mrb[92].mxu1 }
 0xb63   : > { %v5368_v48 = vpop.f32.mrb[93].mxu1  ;;  %v3404_v20 = vadd.f32 %v4864_v11, %v3403_v62 }
 0xb64   : > { %v3356_v16 = vpop.f32.mrb[76].mxu0  ;;  %v3406_v45 = vpop.f32.mrb[94].mxu1 }
 0xb65   : > { %v3357_v42 = vadd.f32 %v4864_v11, %v3356_v16  ;;  %v5362_v1 = vpop.f32.mrb[77].mxu0  ;;  %v5369_v4 = vpop.f32.mrb[95].mxu1  ;;  %v3407_v28 = vadd.f32 %v4865_v56, %v3406_v45  ;;  %v3428_v36 = vsel %vm580_vm0, %v3404_v20, -inf }
 0xb66   : > { %v3359_v31 = vpop.f32.mrb[78].mxu0 }
 0xb67   : > { %v3360_v19 = vadd.f32 %v4865_v56, %v3359_v31  ;;  %v5363_v18 = vpop.f32.mrb[79].mxu0  ;;  %v3422_v49 = vsel %vm580_vm0, %v3357_v42, -inf  ;;  %v3431_v9 = vsel %vm580_vm0, %v3407_v28, -inf }
 0xb68   : > { %3423 = vmax.xlane.f32.xlu0 %v3422_v49 }
 0xb69   : > { %v3425_v27 = vsel %vm580_vm0, %v3360_v19, -inf }
 0xb6a   : > { %3426 = vmax.xlane.f32.xlu1 %v3425_v27 }
 0xb6c   : > { %3429 = vmax.xlane.f32.xlu0 %v3428_v36 }
 0xb6e   : > { %3432 = vmax.xlane.f32.xlu1 %v3431_v9 }
 0xbe3   : > { %v3412_v23 = vpop.xlane.xlu0 %3411 }
 0xbe4   : > { %v3434_v8 = vsub.f32 %v6718_v47, %v3412_v23 }
 0xbe5   : > { %v3415_v53 = vpop.xlane.xlu1 %3414 }
 0xbe6   : > { %v3442_v11 = vmul.f32 1.442695, %v3434_v8  ;;  %v3435_v6 = vsub.f32 %v6723_v30, %v3415_v53 }
 0xbe8   : > { %5699 = vpow2.f32 %v3442_v11  ;;  %v3444_v43 = vmul.f32 1.442695, %v3435_v6 }
 0xbea   : > { %5701 = vpow2.f32 %v3444_v43 }
 0xbeb   : > { %v3418_v56 = vpop.xlane.xlu0 %3417 }
 0xbec   : > { %v3436_v3 = vsub.f32 %v3310_v54, %v3418_v56 }
 0xbed   : > { %v3421_v32 = vpop.xlane.xlu1 %3420 }
 0xbee   : > { %v3446_v13 = vmul.f32 1.442695, %v3436_v3  ;;  %v3437_v24 = vsub.f32 %v3313_v10, %v3421_v32 }
 0xbf0   : > { %5703 = vpow2.f32 %v3446_v13  ;;  %v3448_v46 = vmul.f32 1.442695, %v3437_v24 }
 0xbf2   : > { %v5700_v33 = vpop.eup %5699  ;;  %5705 = vpow2.f32 %v3448_v46 }
 0xbf3   : > { %v3458_v51 = vsel %vm580_vm0, %v5700_v33, 0.0 }
 0xbf4   : > { %v5702_v63 = vpop.eup %5701  ;;  %3459 = vadd.xlane.f32.xlu0 %v3458_v51 }
 0xbf5   : > { %v3424_v47 = vpop.xlane.xlu0 %3423  ;;  %v3461_v37 = vsel %vm580_vm0, %v5702_v63, 0.0 }
 0xbf6   : > { %v3438_v30 = vsub.f32 %v3357_v42, %v3424_v47  ;;  %3462 = vadd.xlane.f32.xlu1 %v3461_v37 }
 0xbf7   : > { %v3427_v14 = vpop.xlane.xlu1 %3426 }
 0xbf8   : > { %v3450_v22 = vmul.f32 1.442695, %v3438_v30  ;;  %v3439_v57 = vsub.f32 %v3360_v19, %v3427_v14  ;;  %v5565_v30 = vld [vmem:[%s6980_s6 + $0x30] sm:$0xff]  }
 0xbf9   : > { %v3430_v54 = vpop.xlane.xlu0 %3429 }
 0xbfa   : > { %v5704_v26 = vpop.eup %5703  ;;  %5707 = vpow2.f32 %v3450_v22  ;;  %v3452_v10 = vmul.f32 1.442695, %v3439_v57  ;;  %v3440_v58 = vsub.f32 %v3404_v20, %v3430_v54 }
 0xbfb   : > { %v3433_v62 = vpop.xlane.xlu1 %3432  ;;  %v3464_v48 = vsel %vm580_vm0, %v5704_v26, 0.0 }
 0xbfc   : > { %v5706_v16 = vpop.eup %5705  ;;  %5709 = vpow2.f32 %v3452_v10  ;;  %v3454_v45 = vmul.f32 1.442695, %v3440_v58  ;;  %v3441_v1 = vsub.f32 %v3407_v28, %v3433_v62  ;;  %3465 = vadd.xlane.f32.xlu0 %v3464_v48 }
 0xbfd   : > { %v3467_v4 = vsel %vm580_vm0, %v5706_v16, 0.0 }
 0xbfe   : > { %5711 = vpow2.f32 %v3454_v45  ;;  %v3456_v42 = vmul.f32 1.442695, %v3441_v1  ;;  %3468 = vadd.xlane.f32.xlu1 %v3467_v4 }
 0xc00   : > { %5713 = vpow2.f32 %v3456_v42 }
 0xc04   : > { %v5708_v31 = vpop.eup %5707 }
 0xc05   : > { %v3470_v19 = vsel %vm580_vm0, %v5708_v31, 0.0 }
 0xc06   : > { %v5710_v18 = vpop.eup %5709  ;;  %3471 = vadd.xlane.f32.xlu0 %v3470_v19 }
 0xc07   : > { %v3473_v20 = vsel %vm580_vm0, %v5710_v18, 0.0 }
 0xc08   : > { %v5712_v49 = vpop.eup %5711  ;;  %3474 = vadd.xlane.f32.xlu1 %v3473_v20 }
 0xc09   : > { %v3476_v27 = vsel %vm580_vm0, %v5712_v49, 0.0 }
 0xc0a   : > { %v5714_v36 = vpop.eup %5713  ;;  %3477 = vadd.xlane.f32.xlu0 %v3476_v27 }
 0xc0b   : > { %v3479_v28 = vsel %vm580_vm0, %v5714_v36, 0.0 }
 0xc0c   : > { %3480 = vadd.xlane.f32.xlu1 %v3479_v28 }
 0xc81   : > { %v3460_v9 = vpop.xlane.xlu0 %3459 }
 0xc82   : > { %5715 = vrcp.f32 %v3460_v9 }
 0xc83   : > { %v3463_v23 = vpop.xlane.xlu1 %3462 }
 0xc84   : > { %5717 = vrcp.f32 %v3463_v23 }
 0xc89   : > { %v3466_v8 = vpop.xlane.xlu0 %3465 }
 0xc8a   : > { %5719 = vrcp.f32 %v3466_v8 }
 0xc8b   : > { %v3469_v53 = vpop.xlane.xlu1 %3468 }
 0xc8c   : > { %v5716_v11 = vpop.eup %5715  ;;  %5721 = vrcp.f32 %v3469_v53 }
 0xc8d   : > { %v3490_v43 = vmul.f32 %v5716_v11, %v5700_v33 }
 0xc8e   : > { %v5718_v6 = vpop.eup %5717 }
 0xc8f   : > { %v3491_v56 = vmul.f32 %v5718_v6, %v5702_v63 }
 0xc91   : > { %v3498_v3 = vpack.c.bf16 %v3491_v56, %v3490_v43  ;;  %v4884_v43 = vld [vmem:[%s6981_s7 + $0x3] ss:$0 sm:$0xff] }
 0xc93   : > { %v3472_v32 = vpop.xlane.xlu0 %3471  ;;  %5373 = vmatmul.mubr.msk.bf16.vlgmr.msra.gmra.mrb[80].mxu0 %vm580_vm0, %v3498_v3 }
 0xc94   : > { %v5720_v13 = vpop.eup %5719  ;;  %5723 = vrcp.f32 %v3472_v32  ;;  %5383 = vmatpush3.bf16.msra.mxu0 %v3217_v35  ;;  %5384 = vmatprep.mubr.msk.bf16.mxu0 %vm5772_vm2, %v5771_v2 }
 0xc95   : > { %v3475_v24 = vpop.xlane.xlu1 %3474  ;;  %v3492_v51 = vmul.f32 %v5720_v13, %v5704_v26 }
 0xc96   : > { %v5722_v46 = vpop.eup %5721  ;;  %5725 = vrcp.f32 %v3475_v24 }
 0xc97   : > { %v3493_v47 = vmul.f32 %v5722_v46, %v5706_v16  ;;  %v3478_v33 = vpop.xlane.xlu0 %3477 }
 0xc98   : > { %5727 = vrcp.f32 %v3478_v33 }
 0xc99   : > { %v3481_v63 = vpop.xlane.xlu1 %3480  ;;  %v3499_v37 = vpack.c.bf16 %v3493_v47, %v3492_v51 }
 0xc9a   : > { %5729 = vrcp.f32 %v3481_v63 }
 0xc9b   : > { %5379 = vmatmul.mubr.msk.bf16.vlgmr.msra.gmra.mrb[96].mxu1 %vm580_vm0, %v3499_v37 }
 0xc9c   : > { %5389 = vmatpush3.bf16.msra.mxu1 %v3218_v52  ;;  %5390 = vmatprep.mubr.msk.bf16.mxu1 %vm5772_vm2, %v5771_v2  ;;  %v5568_v52 = vld [vmem:[%s6984_s10 + $0x38] sm:$0xff]  }
 0xc9d   : > { %5404 = vmatprep.subr.bf16.mxu1 %v5565_v30 }
 0xc9e   : > { %v5724_v21 = vpop.eup %5723 }
 0xc9f   : > { %v3494_v35 = vmul.f32 %v5724_v21, %v5708_v31 }
 0xca0   : > { %v5726_v61 = vpop.eup %5725 }
 0xca1   : > { %v3495_v14 = vmul.f32 %v5726_v61, %v5710_v18  ;;  %v5570_v18 = vld [vmem:[%s6982_s8 + $0x38] sm:$0xff]  }
 0xca2   : > { %v5728_v22 = vpop.eup %5727 }
 0xca3   : > { %v3500_v57 = vpack.c.bf16 %v3495_v14, %v3494_v35  ;;  %v3496_v26 = vmul.f32 %v5728_v22, %v5712_v49 }
 0xca4   : > { %v5730_v54 = vpop.eup %5729 }
 0xca5   : > { %v3497_v10 = vmul.f32 %v5730_v54, %v5714_v36  ;;  %5385 = vmatmul.mubr.msk.bf16.vlgmr.msra.gmra.mrb[84].mxu0 %vm580_vm0, %v3500_v57  ;;  %v4908_v57 = vld [vmem:[%s6985_s11 + $0x3] ss:$0 sm:$0xff] }
 0xca7   : > { %v3501_v58 = vpack.c.bf16 %v3497_v10, %v3496_v26 }
 0xca9   : > { %5391 = vmatmul.mubr.msk.bf16.vlgmr.msra.gmra.mrb[100].mxu1 %vm580_vm0, %v3501_v58 }
 0xcaa   : > { %5405 = vmatpush3.bf16.msra.mxu1 %v5565_v30  ;;  %5408 = vmatprep.mubr.msk.bf16.mxu1 %vm757_vm1, %v6305_v17  ;;  %v4874_v17 = vld [vmem:[%s6987_s13 + $0x8] sm:$0xf] }
 0xcab   : > { %5406 = vmatprep.subr.bf16.mxu1 %v5566_v12  ;;  %5526 = vmatprep.subr.msk.bf16.mxu0 %vm2788_vm4, %v4874_v17 }
 0xcae   : > { %5407 = vmatpush3.bf16.msra.mxu1 %v5566_v12 }
 0xcaf   : > { %5428 = vmatprep.subr.bf16.mxu1 %v5567_v5 }
 0xcb1   : > { %5409 = vmatmul.mubr.msk.bf16.vlgmr.msra.gmra.mrb[104].mxu1 %vm757_vm1, %v6315_v29  ;;  %v3697_v29 = vsel %vm2788_vm4, %v4874_v17, 0 }
 0xcb2   : > { %5412 = vmatprep.mubr.msk.bf16.mxu1 %vm757_vm1, %v6347_v0  ;;  %5429 = vmatpush3.bf16.msra.mxu1 %v5567_v5  ;;  %v5569_v0 = vld [vmem:[%s6982_s8 + $0x30] sm:$0xff]  }
 0xcb3   : > { %5430 = vmatprep.subr.bf16.mxu1 %v5568_v52  ;;  %5395 = vmatpush3.bf16.msra.mxu0 %v3697_v29 }
 0xcb4   : > { %5416 = vmatprep.subr.bf16.mxu0 %v5569_v0 }
 0xcb6   : > { %5431 = vmatpush3.bf16.msra.mxu1 %v5568_v52 }
 0xcb7   : > { %5446 = vmatprep.subr.bf16.mxu1 %v5771_v2 }
 0xcb9   : > { %5413 = vmatmul.mubr.msk.bf16.gmra.mrb[108].mxu1 %vm757_vm1, %v6354_v25 }
 0xcba   : > { %5432 = vmatprep.mubr.msk.bf16.mxu1 %vm757_vm1, %v6283_v15 }
 0xcc1   : > { %5433 = vmatmul.mubr.msk.bf16.vlgmr.msra.gmra.mrb[112].mxu1 %vm757_vm1, %v6293_v40 }
 0xcc2   : > { %5436 = vmatprep.mubr.msk.bf16.mxu1 %vm757_vm1, %v6327_v34 }
 0xcc9   : > { %5437 = vmatmul.mubr.msk.bf16.gmra.mrb[116].mxu1 %vm757_vm1, %v6337_v41 }
 0xcca   : > { %5448 = vmatprep.mubr.msk.bf16.mxu1 %vm5772_vm2, %v5771_v2 }
 0xd66   : > { %v3539_v25 = vpop.f32.mrb[80].mxu0 }
 0xd67   : > { %v5374_v62 = vpop.f32.mrb[81].mxu0 }
 0xd68   : > { %v3542_v48 = vpop.f32.mrb[82].mxu0 }
 0xd69   : > { %v3678_v16 = vpack.c.bf16 %v3542_v48, %v3539_v25  ;;  %v5375_v45 = vpop.f32.mrb[83].mxu0 }
 0xd6b   : > { %5396 = vmatprep.mubr.msk.bf16.mxu0 %vm1567_vm3, %v3678_v16 }
 0xd6e   : > { %v3583_v1 = vpop.f32.mrb[96].mxu1 }
 0xd6f   : > { %v5380_v4 = vpop.f32.mrb[97].mxu1 }
 0xd70   : > { %v3586_v42 = vpop.f32.mrb[98].mxu1 }
 0xd71   : > { %v3679_v31 = vpack.c.bf16 %v3586_v42, %v3583_v1  ;;  %v5381_v19 = vpop.f32.mrb[99].mxu1 }
 0xd72   : > { %v4896_v19 = vld [vmem:[%s6983_s9 + $0x3] ss:$0 sm:$0xff] }
 0xd73   : > { %5397 = vmatmul.mubr.msk.bf16.vlgmr.msra.gmra.mrb[60].mxu0 %vm1567_vm3, %v3679_v31 }
 0xd74   : > { %5417 = vmatpush3.bf16.msra.mxu0 %v5569_v0 }
 0xd75   : > { %5418 = vmatprep.subr.bf16.mxu0 %v5570_v18 }
 0xd78   : > { %v3627_v20 = vpop.f32.mrb[84].mxu0  ;;  %5419 = vmatpush3.bf16.msra.mxu0 %v5570_v18 }
 0xd79   : > { %v5386_v49 = vpop.f32.mrb[85].mxu0  ;;  %5440 = vmatprep.subr.bf16.mxu0 %v5771_v2 }
 0xd7a   : > { %v3630_v27 = vpop.f32.mrb[86].mxu0 }
 0xd7b   : > { %v3680_v36 = vpack.c.bf16 %v3630_v27, %v3627_v20  ;;  %v5387_v28 = vpop.f32.mrb[87].mxu0 }
 0xd7c   : > { %v3671_v9 = vpop.f32.mrb[100].mxu1 }
 0xd7d   : > { %v5392_v23 = vpop.f32.mrb[101].mxu1  ;;  %5400 = vmatprep.mubr.msk.bf16.mxu0 %vm1567_vm3, %v3680_v36 }
 0xd7e   : > { %v3674_v8 = vpop.f32.mrb[102].mxu1 }
 0xd7f   : > { %v3681_v53 = vpack.c.bf16 %v3674_v8, %v3671_v9  ;;  %v5393_v11 = vpop.f32.mrb[103].mxu1 }
 0xd81   : > { %5401 = vmatmul.mubr.msk.bf16.gmra.mrb[64].mxu0 %vm1567_vm3, %v3681_v53 }
 0xd82   : > { %5420 = vmatprep.mubr.msk.bf16.mxu0 %vm757_vm1, %v6283_v15 }
 0xd84   : > { %v5410_v6 = vpop.f32.mrb[104].mxu1 }
 0xd85   : > { %v3831_v56 = vpop.f32.mrb[105].mxu1  ;;  %v6825_v32 = vadd.f32 %v5410_v6, %v4884_v43 }
 0xd86   : > { %v5411_v3 = vpop.f32.mrb[106].mxu1  ;;  %v6829_v46 = vadd.f32 %v4884_v43, %v3831_v56 }
 0xd87   : > { %v6827_v13 = vadd.f32 %v5411_v3, %v4884_v43  ;;  %v3834_v24 = vpop.f32.mrb[107].mxu1 }
 0xd88   : > { %v6831_v51 = vadd.f32 %v4884_v43, %v3834_v24 }
 0xd89   : > { %v4043_v47 = vpack.c.bf16 %v6827_v13, %v6825_v32  ;;  %5421 = vmatmul.mubr.msk.bf16.vlgmr.msra.gmra.mrb[88].mxu0 %vm757_vm1, %v6293_v40  ;;  %v4915_v32 = vld [vmem:[%s6986_s12 + $0x30] sm:$0xff] }
 0xd8a   : > { %v4042_v15 = vpack.c.bf16 %v6831_v51, %v6829_v46  ;;  %5424 = vmatprep.mubr.msk.bf16.mxu0 %vm757_vm1, %v6327_v34 }
 0xd8c   : > { %v5414_v33 = vpop.f32.mrb[108].mxu1 }
 0xd8d   : > { %v3847_v63 = vpop.f32.mrb[109].mxu1  ;;  %v6841_v30 = vadd.f32 %v5414_v33, %v4884_v43 }
 0xd8e   : > { %v5415_v37 = vpop.f32.mrb[110].mxu1  ;;  %v6845_v35 = vadd.f32 %v4884_v43, %v3847_v63 }
 0xd8f   : > { %v6843_v21 = vadd.f32 %v5415_v37, %v4884_v43  ;;  %v3850_v61 = vpop.f32.mrb[111].mxu1 }
 0xd90   : > { %v6847_v14 = vadd.f32 %v4884_v43, %v3850_v61 }
 0xd91   : > { %v4045_v40 = vpack.c.bf16 %v6843_v21, %v6841_v30  ;;  %5425 = vmatmul.mubr.msk.bf16.gmra.mrb[92].mxu0 %vm757_vm1, %v6337_v41 }
 0xd92   : > { %v4044_v34 = vpack.c.bf16 %v6847_v14, %v6845_v35  ;;  %5442 = vmatprep.mubr.msk.bf16.mxu0 %vm5772_vm2, %v5771_v2 }
 0xd94   : > { %v5434_v22 = vpop.f32.mrb[112].mxu1 }
 0xd95   : > { %v4011_v54 = vpop.f32.mrb[113].mxu1  ;;  %v4020_v10 = vadd.f32 %v5434_v22, %v4908_v57 }
 0xd96   : > { %v5435_v26 = vpop.f32.mrb[114].mxu1  ;;  %v4012_v5 = vadd.f32 %v4908_v57, %v4011_v54 }
 0xd97   : > { %v4023_v58 = vadd.f32 %v5435_v26, %v4908_v57  ;;  %v4014_v12 = vpop.f32.mrb[115].mxu1 }
 0xd98   : > { %v4015_v52 = vadd.f32 %v4908_v57, %v4014_v12 }
 0xd99   : > { %v4051_v17 = vpack.c.bf16 %v4023_v58, %v4020_v10 }
 0xd9a   : > { %v4050_v41 = vpack.c.bf16 %v4015_v52, %v4012_v5 }
 0xd9c   : > { %v5438_v29 = vpop.f32.mrb[116].mxu1 }
 0xd9d   : > { %v6860_v0 = vadd.f32 %v5438_v29, %v4908_v57  ;;  %v4027_v25 = vpop.f32.mrb[117].mxu1 }
 0xd9e   : > { %v6862_v62 = vadd.f32 %v4908_v57, %v4027_v25  ;;  %v5439_v48 = vpop.f32.mrb[118].mxu1 }
 0xd9f   : > { %v6864_v16 = vadd.f32 %v5439_v48, %v4908_v57  ;;  %v4030_v45 = vpop.f32.mrb[119].mxu1 }
 0xda0   : > { %v6866_v1 = vadd.f32 %v4908_v57, %v4030_v45 }
 0xda1   : > { %v4053_v4 = vpack.c.bf16 %v6864_v16, %v6860_v0 }
 0xda2   : > { %v4052_v42 = vpack.c.bf16 %v6866_v1, %v6862_v62 }
 0xe5c   : > { %v5422_v31 = vpop.f32.mrb[88].mxu0 }
 0xe5d   : > { %v3921_v18 = vpop.f32.mrb[89].mxu0  ;;  %v3930_v49 = vadd.f32 %v5422_v31, %v4896_v19 }
 0xe5e   : > { %v5423_v20 = vpop.f32.mrb[90].mxu0  ;;  %v3922_v28 = vadd.f32 %v4896_v19, %v3921_v18 }
 0xe5f   : > { %v3933_v27 = vadd.f32 %v5423_v20, %v4896_v19  ;;  %v3924_v36 = vpop.f32.mrb[91].mxu0 }
 0xe60   : > { %v3925_v9 = vadd.f32 %v4896_v19, %v3924_v36 }
 0xe61   : > { %v4047_v23 = vpack.c.bf16 %v3933_v27, %v3930_v49 }
 0xe62   : > { %v4046_v8 = vpack.c.bf16 %v3925_v9, %v3922_v28 }
 0xe63   : > { %v4108_v53 = vsel %vm1567_vm3, %v4047_v23, 0 }
 0xe64   : > { %v5426_v11 = vpop.f32.mrb[92].mxu0  ;;  %5447 = vmatpush3.bf16.xpose.msra.mxu1 %v4108_v53  ;;  %v4061_v6 = vsel %vm1567_vm3, %v4046_v8, 0 }
 0xe65   : > { %v3937_v43 = vpop.f32.mrb[93].mxu0  ;;  %5441 = vmatpush3.bf16.xpose.msra.mxu0 %v4061_v6  ;;  %5458 = vmatprep.subr.bf16.mxu1 %v5771_v2  ;;  %v3946_v3 = vadd.f32 %v5426_v11, %v4896_v19 }
 0xe66   : > { %v5427_v56 = vpop.f32.mrb[94].mxu0  ;;  %5452 = vmatprep.subr.bf16.mxu0 %v5771_v2  ;;  %v3938_v63 = vadd.f32 %v4896_v19, %v3937_v43 }
 0xe67   : > { %v3949_v24 = vadd.f32 %v5427_v56, %v4896_v19  ;;  %v3940_v33 = vpop.f32.mrb[95].mxu0 }
 0xe68   : > { %v3941_v37 = vadd.f32 %v4896_v19, %v3940_v33 }
 0xe69   : > { %v4049_v30 = vpack.c.bf16 %v3949_v24, %v3946_v3 }
 0xe6a   : > { %v4048_v21 = vpack.c.bf16 %v3941_v37, %v3938_v63 }
 0xe6b   : > { %5449 = vmatmul.mubr.msk.bf16.vlgmr.msra.gmra.mrb[120].mxu1 %vm1567_vm3, %v4043_v47  ;;  %v4202_v61 = vsel %vm1567_vm3, %v4049_v30, 0  ;;  %v4916_v47 = vld [vmem:[%s6986_s12 + $0x38] sm:$0xff] }
 0xe6c   : > { %5443 = vmatmul.mubr.msk.bf16.vlgmr.msra.gmra.mrb[96].mxu0 %vm1567_vm3, %v4042_v15  ;;  %5459 = vmatpush3.bf16.xpose.msra.mxu1 %v4202_v61  ;;  %v4155_v35 = vsel %vm1567_vm3, %v4048_v21, 0 }
 0xe6d   : > { %5453 = vmatpush3.bf16.xpose.msra.mxu0 %v4155_v35  ;;  %5460 = vmatprep.mubr.msk.bf16.mxu1 %vm5772_vm2, %v5771_v2 }
 0xe6e   : > { %5454 = vmatprep.mubr.msk.bf16.mxu0 %vm5772_vm2, %v5771_v2  ;;  %5470 = vmatprep.subr.bf16.mxu1 %v5771_v2 }
 0xe6f   : > { %5464 = vmatprep.subr.bf16.mxu0 %v5771_v2 }
 0xe73   : > { %5461 = vmatmul.mubr.msk.bf16.vlgmr.msra.gmra.mrb[124].mxu1 %vm1567_vm3, %v4045_v40 }
 0xe74   : > { %5455 = vmatmul.mubr.msk.bf16.vlgmr.msra.gmra.mrb[100].mxu0 %vm1567_vm3, %v4044_v34  ;;  %5471 = vmatpush3.bf16.msra.mxu1 %v4051_v17 }
 0xe75   : > { %5465 = vmatpush3.bf16.msra.mxu0 %v4050_v41  ;;  %5466 = vmatprep.mubr.msk.bf16.mxu0 %vm5772_vm2, %v5771_v2 }
 0xe76   : > { %5476 = vmatprep.subr.bf16.mxu0 %v5771_v2  ;;  %5472 = vmatprep.mubr.msk.bf16.mxu1 %vm5772_vm2, %v5771_v2 }
 0xe77   : > { %5482 = vmatprep.subr.bf16.mxu1 %v5771_v2 }
 0xf3e   : > { %v4144_v13 = vpop.f32.mrb[120].mxu1 }
 0xf3f   : > { %v4097_v46 = vpop.f32.mrb[96].mxu0  ;;  %v5450_v51 = vpop.f32.mrb[121].mxu1  ;;  %v4145_v57 = vadd.f32 %v4915_v32, %v4144_v13 }
 0xf40   : > { %v4098_v15 = vadd.f32 %v4915_v32, %v4097_v46  ;;  %v5444_v14 = vpop.f32.mrb[97].mxu0  ;;  %v4147_v40 = vpop.f32.mrb[122].mxu1 }
 0xf41   : > { %v4100_v34 = vpop.f32.mrb[98].mxu0  ;;  %v5451_v22 = vpop.f32.mrb[123].mxu1  ;;  %v4148_v58 = vadd.f32 %v4916_v47, %v4147_v40  ;;  %v4251_v52 = vsel %vm580_vm0, %v4145_v57, -inf }
 0xf42   : > { %v4101_v54 = vadd.f32 %v4916_v47, %v4100_v34  ;;  %v5445_v26 = vpop.f32.mrb[99].mxu0  ;;  %v4245_v10 = vsel %vm580_vm0, %v4098_v15, -inf }
 0xf43   : > { %4246 = vmax.xlane.f32.xlu0 %v4245_v10  ;;  %v4254_v45 = vsel %vm580_vm0, %v4148_v58, -inf }
 0xf44   : > { %v4248_v12 = vsel %vm580_vm0, %v4101_v54, -inf }
 0xf45   : > { %4249 = vmax.xlane.f32.xlu1 %v4248_v12 }
 0xf46   : > { %v4238_v5 = vpop.f32.mrb[124].mxu1 }
 0xf47   : > { %v5462_v17 = vpop.f32.mrb[125].mxu1  ;;  %4252 = vmax.xlane.f32.xlu0 %v4251_v52  ;;  %v4191_v41 = vpop.f32.mrb[100].mxu0  ;;  %v4239_v18 = vadd.f32 %v4915_v32, %v4238_v5 }
 0xf48   : > { %v4192_v29 = vadd.f32 %v4915_v32, %v4191_v41  ;;  %v5456_v25 = vpop.f32.mrb[101].mxu0  ;;  %v4241_v48 = vpop.f32.mrb[126].mxu1 }
 0xf49   : > { %v5463_v31 = vpop.f32.mrb[127].mxu1  ;;  %4255 = vmax.xlane.f32.xlu1 %v4254_v45  ;;  %v4194_v19 = vpop.f32.mrb[102].mxu0  ;;  %v4242_v36 = vadd.f32 %v4916_v47, %v4241_v48  ;;  %v4263_v9 = vsel %vm580_vm0, %v4239_v18, -inf }
 0xf4a   : > { %v4195_v20 = vadd.f32 %v4916_v47, %v4194_v19  ;;  %v5457_v49 = vpop.f32.mrb[103].mxu0  ;;  %v4257_v27 = vsel %vm580_vm0, %v4192_v29, -inf }
 0xf4b   : > { %4258 = vmax.xlane.f32.xlu0 %v4257_v27  ;;  %v4266_v23 = vsel %vm580_vm0, %v4242_v36, -inf }
 0xf4c   : > { %v4260_v28 = vsel %vm580_vm0, %v4195_v20, -inf }
 0xf4d   : > { %4261 = vmax.xlane.f32.xlu1 %v4260_v28 }
 0xf4f   : > { %4264 = vmax.xlane.f32.xlu0 %v4263_v9 }
 0xf51   : > { %4267 = vmax.xlane.f32.xlu1 %v4266_v23 }
 0xfd0   : > { %v4247_v8 = vpop.xlane.xlu0 %4246 }
 0xfd1   : > { %v4269_v53 = vsub.f32 %v4098_v15, %v4247_v8 }
 0xfd2   : > { %v4250_v11 = vpop.xlane.xlu1 %4249 }
 0xfd3   : > { %v4277_v6 = vmul.f32 1.442695, %v4269_v53  ;;  %v4270_v43 = vsub.f32 %v4101_v54, %v4250_v11 }
 0xfd4   : > { %v4253_v56 = vpop.xlane.xlu0 %4252 }
 0xfd5   : > { %5731 = vpow2.f32 %v4277_v6  ;;  %v4279_v3 = vmul.f32 1.442695, %v4270_v43  ;;  %v4271_v24 = vsub.f32 %v4145_v57, %v4253_v56 }
 0xfd6   : > { %v4256_v33 = vpop.xlane.xlu1 %4255 }
 0xfd7   : > { %5733 = vpow2.f32 %v4279_v3  ;;  %v4281_v63 = vmul.f32 1.442695, %v4271_v24  ;;  %v4272_v37 = vsub.f32 %v4148_v58, %v4256_v33 }
 0xfd8   : > { %v4259_v30 = vpop.xlane.xlu0 %4258 }
 0xfd9   : > { %5735 = vpow2.f32 %v4281_v63  ;;  %v4283_v21 = vmul.f32 1.442695, %v4272_v37  ;;  %v4273_v61 = vsub.f32 %v4192_v29, %v4259_v30 }
 0xfda   : > { %v4262_v35 = vpop.xlane.xlu1 %4261 }
 0xfdb   : > { %5737 = vpow2.f32 %v4283_v21  ;;  %v4285_v32 = vmul.f32 1.442695, %v4273_v61  ;;  %v4274_v13 = vsub.f32 %v4195_v20, %v4262_v35 }
 0xfdc   : > { %v4265_v46 = vpop.xlane.xlu0 %4264 }
 0xfdd   : > { %5739 = vpow2.f32 %v4285_v32  ;;  %v4287_v51 = vmul.f32 1.442695, %v4274_v13  ;;  %v4275_v47 = vsub.f32 %v4239_v18, %v4265_v46  ;;  %v4925_v13 = vld [vmem:[%s6987_s13 + $0xc] sm:$0xf] }
 0xfde   : > { %v4268_v15 = vpop.xlane.xlu1 %4267  ;;  %v4532_v0 = vsel %vm2788_vm4, %v4925_v13, 0 }
 0xfdf   : > { %v5732_v14 = vpop.eup %5731  ;;  %5741 = vpow2.f32 %v4287_v51  ;;  %v4289_v40 = vmul.f32 1.442695, %v4275_v47  ;;  %v4276_v34 = vsub.f32 %v4242_v36, %v4268_v15 }
 0xfe0   : > { %v4293_v22 = vsel %vm580_vm0, %v5732_v14, 0.0 }
 0xfe1   : > { %v5734_v57 = vpop.eup %5733  ;;  %5743 = vpow2.f32 %v4289_v40  ;;  %v4291_v54 = vmul.f32 1.442695, %v4276_v34  ;;  %4294 = vadd.xlane.f32.xlu0 %v4293_v22 }
 0xfe2   : > { %v4296_v26 = vsel %vm580_vm0, %v5734_v57, 0.0 }
 0xfe3   : > { %v5736_v10 = vpop.eup %5735  ;;  %5745 = vpow2.f32 %v4291_v54  ;;  %4297 = vadd.xlane.f32.xlu1 %v4296_v26 }
 0xfe4   : > { %v4299_v58 = vsel %vm580_vm0, %v5736_v10, 0.0 }
 0xfe5   : > { %v5738_v12 = vpop.eup %5737  ;;  %4300 = vadd.xlane.f32.xlu0 %v4299_v58 }
 0xfe6   : > { %v4302_v5 = vsel %vm580_vm0, %v5738_v12, 0.0 }
 0xfe7   : > { %v5740_v52 = vpop.eup %5739  ;;  %4303 = vadd.xlane.f32.xlu1 %v4302_v5 }
 0xfe8   : > { %v4305_v17 = vsel %vm580_vm0, %v5740_v52, 0.0 }
 0xfe9   : > { %v5742_v41 = vpop.eup %5741  ;;  %4306 = vadd.xlane.f32.xlu0 %v4305_v17 }
 0xfea   : > { %v4308_v29 = vsel %vm580_vm0, %v5742_v41, 0.0 }
 0xfeb   : > { %v5744_v25 = vpop.eup %5743  ;;  %4309 = vadd.xlane.f32.xlu1 %v4308_v29 }
 0xfec   : > { %v4311_v48 = vsel %vm580_vm0, %v5744_v25, 0.0 }
 0xfed   : > { %v5746_v45 = vpop.eup %5745  ;;  %4312 = vadd.xlane.f32.xlu0 %v4311_v48 }
 0xfee   : > { %v4314_v31 = vsel %vm580_vm0, %v5746_v45, 0.0 }
 0xfef   : > { %4315 = vadd.xlane.f32.xlu1 %v4314_v31 }
0x106e   : > { %v4295_v19 = vpop.xlane.xlu0 %4294 }
0x106f   : > { %5747 = vrcp.f32 %v4295_v19 }
0x1070   : > { %v4298_v18 = vpop.xlane.xlu1 %4297 }
0x1071   : > { %5749 = vrcp.f32 %v4298_v18 }
0x1072   : > { %v4301_v20 = vpop.xlane.xlu0 %4300 }
0x1073   : > { %5751 = vrcp.f32 %v4301_v20 }
0x1074   : > { %v4304_v49 = vpop.xlane.xlu1 %4303 }
0x1075   : > { %5753 = vrcp.f32 %v4304_v49 }
0x1076   : > { %v4307_v27 = vpop.xlane.xlu0 %4306 }
0x1077   : > { %5755 = vrcp.f32 %v4307_v27 }
0x1078   : > { %v4310_v36 = vpop.xlane.xlu1 %4309 }
0x1079   : > { %v5748_v28 = vpop.eup %5747  ;;  %5757 = vrcp.f32 %v4310_v36 }
0x107a   : > { %v4313_v9 = vpop.xlane.xlu0 %4312  ;;  %v4325_v8 = vmul.f32 %v5748_v28, %v5732_v14 }
0x107b   : > { %v5750_v23 = vpop.eup %5749  ;;  %5759 = vrcp.f32 %v4313_v9 }
0x107c   : > { %v4326_v53 = vmul.f32 %v5750_v23, %v5734_v57  ;;  %v4316_v11 = vpop.xlane.xlu1 %4315 }
0x107d   : > { %v5752_v6 = vpop.eup %5751  ;;  %5761 = vrcp.f32 %v4316_v11 }
0x107e   : > { %v4333_v43 = vpack.c.bf16 %v4326_v53, %v4325_v8  ;;  %v4327_v3 = vmul.f32 %v5752_v6, %v5736_v10 }
0x107f   : > { %v5754_v56 = vpop.eup %5753 }
0x1080   : > { %v4328_v24 = vmul.f32 %v5754_v56, %v5738_v12  ;;  %5467 = vmatmul.mubr.msk.bf16.vlgmr.msra.gmra.mrb[104].mxu0 %vm580_vm0, %v4333_v43 }
0x1081   : > { %v5756_v33 = vpop.eup %5755  ;;  %5477 = vmatpush3.bf16.msra.mxu0 %v4052_v42  ;;  %5478 = vmatprep.mubr.msk.bf16.mxu0 %vm5772_vm2, %v5771_v2 }
0x1082   : > { %v4334_v63 = vpack.c.bf16 %v4328_v24, %v4327_v3  ;;  %v4329_v30 = vmul.f32 %v5756_v33, %v5740_v52  ;;  %5527 = vmatprep.subr.msk.bf16.mxu0 %vm2788_vm4, %v4925_v13 }
0x1083   : > { %v5758_v37 = vpop.eup %5757 }
0x1084   : > { %v4330_v21 = vmul.f32 %v5758_v37, %v5742_v41  ;;  %5473 = vmatmul.mubr.msk.bf16.vlgmr.msra.gmra.mrb[128].mxu1 %vm580_vm0, %v4334_v63 }
0x1085   : > { %v5760_v61 = vpop.eup %5759  ;;  %5483 = vmatpush3.bf16.msra.mxu1 %v4053_v4  ;;  %5484 = vmatprep.mubr.msk.bf16.mxu1 %vm5772_vm2, %v5771_v2 }
0x1086   : > { %v4335_v35 = vpack.c.bf16 %v4330_v21, %v4329_v30  ;;  %v4331_v1 = vmul.f32 %v5760_v61, %v5744_v25  ;;  %v4930_v25 = vld [vmem:[%s6988_s14] ss:$0 sm:$0xff] }
0x1087   : > { %v5762_v62 = vpop.eup %5761 }
0x1088   : > { %v4332_v42 = vmul.f32 %v5762_v62, %v5746_v45  ;;  %5479 = vmatmul.mubr.msk.bf16.vlgmr.msra.gmra.mrb[108].mxu0 %vm580_vm0, %v4335_v35 }
0x1089   : > { %5489 = vmatpush3.bf16.msra.mxu0 %v4532_v0 }
0x108a   : > { %v4336_v32 = vpack.c.bf16 %v4332_v42, %v4331_v1 }
0x108c   : > { %5485 = vmatmul.mubr.msk.bf16.vlgmr.msra.gmra.mrb[132].mxu1 %vm580_vm0, %v4336_v32 }
0x1153   : > { %v4374_v16 = vpop.f32.mrb[104].mxu0 }
0x1154   : > { %v5468_v2 = vpop.f32.mrb[105].mxu0 }
0x1155   : > { %v4377_v4 = vpop.f32.mrb[106].mxu0 }
0x1156   : > { %v4513_v46 = vpack.c.bf16 %v4377_v4, %v4374_v16  ;;  %v5469_v51 = vpop.f32.mrb[107].mxu0 }
0x1157   : > { %v4418_v47 = vpop.f32.mrb[128].mxu1 }
0x1158   : > { %v5474_v15 = vpop.f32.mrb[129].mxu1  ;;  %5490 = vmatprep.mubr.msk.bf16.mxu0 %vm1567_vm3, %v4513_v46 }
0x1159   : > { %v4421_v14 = vpop.f32.mrb[130].mxu1 }
0x115a   : > { %v4514_v40 = vpack.c.bf16 %v4421_v14, %v4418_v47  ;;  %v5475_v34 = vpop.f32.mrb[131].mxu1 }
0x115b   : > { %v4462_v22 = vpop.f32.mrb[108].mxu0 }
0x115c   : > { %v5480_v57 = vpop.f32.mrb[109].mxu0  ;;  %5491 = vmatmul.mubr.msk.bf16.vlgmr.msra.gmra.mrb[60].mxu0 %vm1567_vm3, %v4514_v40 }
0x115d   : > { %v4465_v54 = vpop.f32.mrb[110].mxu0 }
0x115e   : > { %v4515_v26 = vpack.c.bf16 %v4465_v54, %v4462_v22  ;;  %v5481_v10 = vpop.f32.mrb[111].mxu0 }
0x115f   : > { %v4506_v58 = vpop.f32.mrb[132].mxu1 }
0x1160   : > { %v5486_v12 = vpop.f32.mrb[133].mxu1  ;;  %5494 = vmatprep.mubr.msk.bf16.mxu0 %vm1567_vm3, %v4515_v26 }
0x1161   : > { %v4509_v5 = vpop.f32.mrb[134].mxu1 }
0x1162   : > { %v4516_v52 = vpack.c.bf16 %v4509_v5, %v4506_v58  ;;  %v5487_v17 = vpop.f32.mrb[135].mxu1 }
0x1164   : > { %5495 = vmatmul.mubr.msk.bf16.gmra.mrb[64].mxu0 %vm1567_vm3, %v4516_v52 }
0x122f   : > { %v5492_v41 = vpop.f32.mrb[60].mxu0 }
0x1230   : > { %v4609_v29 = vadd.f32 %v5492_v41, %v6082_v44  ;;  %v4568_v48 = vpop.f32.mrb[61].mxu0 }
0x1231   : > { %v4607_v45 = vadd.f32 %v4568_v48, %v6071_v39  ;;  %v5493_v31 = vpop.f32.mrb[62].mxu0 }
0x1232   : > { %v4610_v19 = vadd.f32 %v5493_v31, %v6092_v7  ;;  %v4571_v18 = vpop.f32.mrb[63].mxu0  ;;  %v4624_v27 = vadd.f32 %v4930_v25, %v4609_v29 }
0x1233   : > { %v4622_v20 = vadd.f32 %v4930_v25, %v4607_v45  ;;  %v4608_v49 = vadd.f32 %v4571_v18, %v6078_v55 }
0x1234   : > { %4632 = vst.msk [vmem:[%s526_s24 + $0x10] sm:$0xff] %vm757_vm1, %v4624_v27  ;;  %v4625_v36 = vadd.f32 %v4930_v25, %v4610_v19 }
0x1235   : > { %4630 = vst.msk [vmem:[%s526_s24] sm:$0xff] %vm757_vm1, %v4622_v20  ;;  %v4623_v44 = vadd.f32 %v4930_v25, %v4608_v49 }
0x1236   : > { %4633 = vst.msk [vmem:[%s526_s24 + $0x18] sm:$0xff] %vm757_vm1, %v4625_v36 }
0x1237   : > { %4631 = vst.msk [vmem:[%s526_s24 + $0x8] sm:$0xff] %vm757_vm1, %v4623_v44  ;;  %v5496_v39 = vpop.f32.mrb[64].mxu0 }
0x1238   : > { %v4613_v28 = vadd.f32 %v5496_v39, %v6138_v50  ;;  %v4584_v9 = vpop.f32.mrb[65].mxu0 }
0x1239   : > { %v4611_v7 = vadd.f32 %v4584_v9, %v6124_v60  ;;  %v5497_v23 = vpop.f32.mrb[66].mxu0 }
0x123a   : > { %v4614_v55 = vadd.f32 %v5497_v23, %v6146_v38  ;;  %v4587_v8 = vpop.f32.mrb[67].mxu0  ;;  %v4628_v6 = vadd.f32 %v4930_v25, %v4613_v28 }
0x123b   : > { %v4626_v53 = vadd.f32 %v4930_v25, %v4611_v7  ;;  %v4612_v11 = vadd.f32 %v4587_v8, %v6134_v59 }
0x123c   : > { %4636 = vst.msk [vmem:[%s526_s24 + $0x30] sm:$0xff] %vm757_vm1, %v4628_v6  ;;  %v4629_v56 = vadd.f32 %v4930_v25, %v4614_v55 }
0x123d   : > { %4634 = vst.msk [vmem:[%s526_s24 + $0x20] sm:$0xff] %vm757_vm1, %v4626_v53  ;;  %v4627_v43 = vadd.f32 %v4930_v25, %v4612_v11 }
0x123e   : > { %4637 = vst.msk [vmem:[%s526_s24 + $0x38] sm:$0xff] %vm757_vm1, %v4629_v56 }
0x123f   : > { %4635 = vst.msk [vmem:[%s526_s24 + $0x28] sm:$0xff] %vm757_vm1, %v4627_v43 }
0x1240 PF: > { %s25_s18 = sadd.s32 1, %s5769_s18  }
0x1241   : > { %p22_p4 = scmp.ge.s32.totalorder %s25_s18, 4  }
0x1243   :  { %24 = sbr.rel (!%p22_p4) target bundleno = 1 (0x1), region = 137 }

</bundles_post_ra>
